<compile_context>
chip_gen: v5e
topology: v5e:2x2
jax: 0.10.0
libtpu: 0.0.40
codegen_flags: <defaults>
</compile_context>

<pallas_src>
import functools

import jax
import jax.numpy as jnp
from jax.experimental import pallas as pl
from jax.experimental.pallas import tpu as pltpu


# ---------------------------------------------------------------------------
# Kernel
# ---------------------------------------------------------------------------
def _autoencoder_kernel(
    x_ref, nx_ref, nz_ref,
    w1_ref, b1_ref, w2_ref, b2_ref,
    w3_ref, b3_ref, w4_ref, b4_ref,
    out_ref,
):
    # x + randn_like(x) * 0.001   (noise arrives in bf16, add in f32)
    x = x_ref[...] + nx_ref[...].astype(jnp.float32) * jnp.float32(0.001)

    # encoder: Linear -> ReLU -> Linear  (bf16 MXU operands, f32 accumulation)
    h = jnp.dot(x.astype(jnp.bfloat16), w1_ref[...],
                preferred_element_type=jnp.float32) + b1_ref[...]
    h = jnp.maximum(h, 0.0)
    z = jnp.dot(h.astype(jnp.bfloat16), w2_ref[...],
                preferred_element_type=jnp.float32) + b2_ref[...]

    # z + randn_like(z) * 0.05
    z = z + nz_ref[...].astype(jnp.float32) * jnp.float32(0.05)

    # decoder: Linear -> ReLU -> Linear
    h2 = jnp.dot(z.astype(jnp.bfloat16), w3_ref[...],
                 preferred_element_type=jnp.float32) + b3_ref[...]
    h2 = jnp.maximum(h2, 0.0)
    out = jnp.dot(h2.astype(jnp.bfloat16), w4_ref[...],
                  preferred_element_type=jnp.float32) + b4_ref[...]

    out_ref[...] = out.astype(out_ref.dtype)


# ---------------------------------------------------------------------------
# VMEM budget / tile selection
# ---------------------------------------------------------------------------
def _vmem_bytes(tb, D, H, L, out_itemsize, nbuf_w):
    """Rough per-call VMEM footprint for the chosen tiling."""
    w = nbuf_w * 2 * (D * H + H * L + L * H + H * D)      # bf16 weights
    b = nbuf_w * 4 * (2 * H + L + D)                       # f32 biases
    act_in = 2 * tb * (4 * D + 2 * D + 2 * L)              # x f32 + bf16 noise, 2-buffered
    act_out = 2 * tb * D * out_itemsize                    # output, 2-buffered
    interm = 4 * tb * (2 * H + L + D)                       # h, z, h2, pre-store out (f32)
    return w + b + act_in + act_out + interm


# Keep the whole working set under the smallest per-core VMEM (v7x: 64 MiB
# physical) with headroom for compiler-internal scratch.
_VMEM_FIT_BYTES = 48 << 20


def _pick_batch_tile(B, D, H, L, out_itemsize, nbuf_w):
    """Return (padded_batch, batch_tile)."""
    if B <= 256:
        # Single grid step; full-extent block so the (8,128) rule is satisfied
        # for any B.  Weight-DMA-bound regime: tile shape doesn't matter.
        return B, B
    if B >= 1024:
        cands = [512, 256, 128]
    elif B > 512:
        cands = [256, 128]
    else:
        # 256 < B <= 512: keep >= 2 grid steps so both v7x TensorCores get a
        # batch tile (activation traffic dominates weight bytes here).
        half = ((-(-B // 2) + 7) // 8) * 8
        cands = [half, 256, 128]
    for tb in cands:
        if _vmem_bytes(tb, D, H, L, out_itemsize, nbuf_w) <= _VMEM_FIT_BYTES:
            return ((B + tb - 1) // tb) * tb, tb
    tb = 128
    return ((B + tb - 1) // tb) * tb, tb


# ---------------------------------------------------------------------------
# Wrapper
# ---------------------------------------------------------------------------
@functools.partial(jax.jit,
                   static_argnames=("tb", "single_buffer_weights", "out_dtype"))
def parameter_autoencoder_fwd(x, noise_x, noise_z, params, *, tb=None,
                              single_buffer_weights=True, out_dtype=None):
    """Pallas forward pass of ParameterAutoencoder (noise=True path).

    params: (w1, b1, w2, b2, w3, b3, w4, b4) with weights (in, out) bf16 and
    biases (out,) f32.  noise_x / noise_z are the `torch.randn_like` draws,
    generated by the caller so the result is deterministic / checkable; they
    are cast to bf16 before the DMA (they only perturb a bf16 MXU operand).
    """
    (w1, b1, w2, b2, w3, b3, w4, b4) = params
    B, D = x.shape
    H = w1.shape[1]
    L = w2.shape[1]
    out_dtype = x.dtype if out_dtype is None else jnp.dtype(out_dtype)
    out_itemsize = jnp.dtype(out_dtype).itemsize
    nbuf_w = 1 if single_buffer_weights else 2

    if tb is None:
        B_pad, tb = _pick_batch_tile(B, D, H, L, out_itemsize, nbuf_w)
    else:
        assert tb == B or tb % 8 == 0, "tb must be a multiple of 8 or equal B"
        B_pad = ((B + tb - 1) // tb) * tb

    # Pad ragged batches so every grid step gets a full tile; sliced back below.
    if B_pad != B:
        x = jnp.pad(x, ((0, B_pad - B), (0, 0)))
        noise_x = jnp.pad(noise_x, ((0, B_pad - B), (0, 0)))
        noise_z = jnp.pad(noise_z, ((0, B_pad - B), (0, 0)))

    # Halve the noise DMA streams: they feed a bf16 MXU operand anyway.
    noise_x = noise_x.astype(jnp.bfloat16)
    noise_z = noise_z.astype(jnp.bfloat16)

    # Biases as (1, out) f32 so they broadcast along the batch tile.
    b1 = b1.reshape(1, -1).astype(jnp.float32)
    b2 = b2.reshape(1, -1).astype(jnp.float32)
    b3 = b3.reshape(1, -1).astype(jnp.float32)
    b4 = b4.reshape(1, -1).astype(jnp.float32)

    grid = (B_pad // tb,)

    def row_spec(cols):
        return pl.BlockSpec((tb, cols), lambda i: (i, 0))

    def const_spec(shape):
        # Weight/bias blocks never change across the grid: single-buffer them
        # so they are not duplicated in VMEM (matters at D=H=1024, ~5 MB bf16).
        if single_buffer_weights:
            return pl.BlockSpec(shape, lambda i: (0, 0),
                                pipeline_mode=pl.Buffered(1))
        return pl.BlockSpec(shape, lambda i: (0, 0))

    # Explicit scoped-VMEM limit derived from the actual working set so the
    # v5e 16 MiB / v6e-v7x 32 MiB defaults never cap the batch tile.
    budget = _vmem_bytes(tb, D, H, L, out_itemsize, nbuf_w)
    vmem_limit = int(min(max(budget * 5 // 4 + (4 << 20), 32 << 20), 64 << 20))

    flops = 4 * B_pad * (D * H + H * L)
    bytes_accessed = (2 * (2 * D * H + 2 * H * L)          # bf16 weights
                      + 4 * (2 * H + L + D)                 # f32 biases
                      + B_pad * D * 4                       # x
                      + B_pad * (D + L) * 2                 # bf16 noise
                      + B_pad * D * out_itemsize)           # output

    out = pl.pallas_call(
        _autoencoder_kernel,
        out_shape=jax.ShapeDtypeStruct((B_pad, D), out_dtype),
        grid_spec=pltpu.PrefetchScalarGridSpec(
            num_scalar_prefetch=0,
            grid=grid,
            in_specs=[
                row_spec(D),               # x
                row_spec(D),               # noise on x (bf16)
                row_spec(L),               # noise on z (bf16)
                const_spec((D, H)), const_spec((1, H)),   # encoder layer 1
                const_spec((H, L)), const_spec((1, L)),   # encoder layer 2
                const_spec((L, H)), const_spec((1, H)),   # decoder layer 1
                const_spec((H, D)), const_spec((1, D)),   # decoder layer 2
            ],
            out_specs=row_spec(D),
        ),
        compiler_params=pltpu.CompilerParams(
            dimension_semantics=("parallel",),
            vmem_limit_bytes=vmem_limit,
        ),
        cost_estimate=pl.CostEstimate(
            flops=flops, transcendentals=0, bytes_accessed=bytes_accessed),
    )(x, noise_x, noise_z, w1, b1, w2, b2, w3, b3, w4, b4)

    # TODO(synk): generate the Gaussian noise in-kernel (pltpu.prng_seed +
    # pltpu.prng_random_bits) to drop the noise DMA streams entirely; kept
    # external here for deterministic parity with the reference.
    # TODO(synk): at small B (<= 64) the floor is the ~5 MB weight fetch;
    # hide it with a cross-pallas_call weight-prefetch future or by batching
    # several forward passes per call (can't be fixed by tile tuning).
    # TODO(synk): if model dims grow past ~hidden=2048, switch to a K/N-tiled
    # grid with an f32 accumulator scratch (all-weights-resident stops fitting
    # v7x's 64 MiB per-TC VMEM first).

    if B_pad != B:
        out = out[:B]
    return out


# ---------------------------------------------------------------------------
# Init + references
# ---------------------------------------------------------------------------
def init_params(key, input_dim, hidden_dim, latent_dim):
    """PyTorch-style (uniform +-1/sqrt(fan_in)) init.

    Weights stored as (in_features, out_features), cast to bf16 for the MXU;
    biases kept f32."""
    def linear(k, fan_in, fan_out):
        kw, kb = jax.random.split(k)
        bound = 1.0 / jnp.sqrt(jnp.float32(fan_in))
        w = jax.random.uniform(kw, (fan_in, fan_out), jnp.float32, -bound, bound)
        b = jax.random.uniform(kb, (fan_out,), jnp.float32, -bound, bound)
        return w.astype(jnp.bfloat16), b

    k1, k2, k3, k4 = jax.random.split(key, 4)
    w1, b1 = linear(k1, input_dim, hidden_dim)    # encoder[0]
    w2, b2 = linear(k2, hidden_dim, latent_dim)   # encoder[2]
    w3, b3 = linear(k3, latent_dim, hidden_dim)   # decoder[0]
    w4, b4 = linear(k4, hidden_dim, input_dim)    # decoder[2]
    return (w1, b1, w2, b2, w3, b3, w4, b4)


def reference_fwd_bf16(x, noise_x, noise_z, params):
    """Pure-JAX reference with the same bf16-matmul / f32-accumulate precision
    and bf16 noise as the kernel (tight-tolerance check)."""
    (w1, b1, w2, b2, w3, b3, w4, b4) = params
    x = x + noise_x.astype(jnp.bfloat16).astype(jnp.float32) * 0.001
    h = jnp.maximum(
        jnp.dot(x.astype(jnp.bfloat16), w1, preferred_element_type=jnp.float32) + b1, 0.0)
    z = jnp.dot(h.astype(jnp.bfloat16), w2, preferred_element_type=jnp.float32) + b2
    z = z + noise_z.astype(jnp.bfloat16).astype(jnp.float32) * 0.05
    h2 = jnp.maximum(
        jnp.dot(z.astype(jnp.bfloat16), w3, preferred_element_type=jnp.float32) + b3, 0.0)
    return jnp.dot(h2.astype(jnp.bfloat16), w4, preferred_element_type=jnp.float32) + b4


def reference_fwd_f32(x, noise_x, noise_z, params):
    """All-f32 reference matching the PyTorch module (loose-tolerance check)."""
    (w1, b1, w2, b2, w3, b3, w4, b4) = params
    hi = jax.lax.Precision.HIGHEST
    x = x + noise_x * 0.001
    h = jnp.maximum(jnp.dot(x, w1.astype(jnp.float32), precision=hi) + b1, 0.0)
    z = jnp.dot(h, w2.astype(jnp.float32), precision=hi) + b2
    z = z + noise_z * 0.05
    h2 = jnp.maximum(jnp.dot(z, w3.astype(jnp.float32), precision=hi) + b3, 0.0)
    return jnp.dot(h2, w4.astype(jnp.float32), precision=hi) + b4


# ---------------------------------------------------------------------------
# Demo / self-test
# ---------------------------------------------------------------------------
if __name__ == "__main__":
    # Small shapes consistent with the module (scaled-down 1024/256 defaults).
    batch = 16
    input_dim = 256
    hidden_dim = 512
    latent_dim = 128

    key = jax.random.PRNGKey(0)
    k_params, k_x, k_nx, k_nz = jax.random.split(key, 4)

    params = init_params(k_params, input_dim, hidden_dim, latent_dim)
    x = jax.random.normal(k_x, (batch, input_dim), jnp.float32)
    # torch.randn_like noise, generated deterministically and fed to the kernel.
    noise_x = jax.random.normal(k_nx, (batch, input_dim), jnp.float32)
    noise_z = jax.random.normal(k_nz, (batch, latent_dim), jnp.float32)

    try:
        out = jax.block_until_ready(
            parameter_autoencoder_fwd(x, noise_x, noise_z, params))
    except Exception:
        # Fallback only if this JAX build rejects single-buffered (Buffered(1))
        # constant weight blocks; doubles weight VMEM but remains correct.
        out = jax.block_until_ready(
            parameter_autoencoder_fwd(x, noise_x, noise_z, params,
                                      single_buffer_weights=False))

    ref_bf16 = jax.block_until_ready(
        reference_fwd_bf16(x, noise_x, noise_z, params))
    ref_f32 = jax.block_until_ready(
        reference_fwd_f32(x, noise_x, noise_z, params))

    assert out.shape == (batch, input_dim)
    assert out.dtype == x.dtype
    # Tight: kernel vs identical-precision reference.
    assert jnp.allclose(out, ref_bf16, atol=2e-3, rtol=2e-3), \
        "mismatch vs bf16 reference"
    # Loose: kernel (bf16 MXU operands) vs PyTorch-equivalent f32 math.
    assert jnp.allclose(out, ref_f32, atol=5e-2, rtol=5e-2), \
        "mismatch vs f32 reference"

    print("KERNEL_OK")
</pallas_src>

<mosaic_0001>
module attributes {stable_mosaic.version = 11 : i64} {
  func.func @_autoencoder_kernel(%arg0: i32, %arg1: memref<16x256xf32, #tpu.memory_space<vmem>>, %arg2: memref<16x256xbf16, #tpu.memory_space<vmem>>, %arg3: memref<16x128xbf16, #tpu.memory_space<vmem>>, %arg4: memref<256x512xbf16, #tpu.memory_space<vmem>>, %arg5: memref<1x512xf32, #tpu.memory_space<vmem>>, %arg6: memref<512x128xbf16, #tpu.memory_space<vmem>>, %arg7: memref<1x128xf32, #tpu.memory_space<vmem>>, %arg8: memref<128x512xbf16, #tpu.memory_space<vmem>>, %arg9: memref<1x512xf32, #tpu.memory_space<vmem>>, %arg10: memref<512x256xbf16, #tpu.memory_space<vmem>>, %arg11: memref<1x256xf32, #tpu.memory_space<vmem>>, %arg12: memref<16x256xf32, #tpu.memory_space<vmem>>) attributes {dimension_semantics = [#tpu.dimension_semantics<parallel>], iteration_bounds = array<i64: 1>, scalar_prefetch = 0 : i64, scratch_operands = 0 : i64, tpu.core_type = #tpu.core_type<tc>, window_params = [{transform_indices = @transform_0, window_bounds = array<i64: 16, 256>}, {transform_indices = @transform_1, window_bounds = array<i64: 16, 256>}, {transform_indices = @transform_2, window_bounds = array<i64: 16, 128>}, {pipeline_mode = #tpu.pipeline_mode<synchronous>, transform_indices = @transform_3, window_bounds = array<i64: 256, 512>}, {pipeline_mode = #tpu.pipeline_mode<synchronous>, transform_indices = @transform_4, window_bounds = array<i64: 1, 512>}, {pipeline_mode = #tpu.pipeline_mode<synchronous>, transform_indices = @transform_5, window_bounds = array<i64: 512, 128>}, {pipeline_mode = #tpu.pipeline_mode<synchronous>, transform_indices = @transform_6, window_bounds = array<i64: 1, 128>}, {pipeline_mode = #tpu.pipeline_mode<synchronous>, transform_indices = @transform_7, window_bounds = array<i64: 128, 512>}, {pipeline_mode = #tpu.pipeline_mode<synchronous>, transform_indices = @transform_8, window_bounds = array<i64: 1, 512>}, {pipeline_mode = #tpu.pipeline_mode<synchronous>, transform_indices = @transform_9, window_bounds = array<i64: 512, 256>}, {pipeline_mode = #tpu.pipeline_mode<synchronous>, transform_indices = @transform_10, window_bounds = array<i64: 1, 256>}, {transform_indices = @transform_11, window_bounds = array<i64: 16, 256>}]} {
    %c0 = arith.constant 0 : index
    %c0_0 = arith.constant 0 : index
    %0 = vector.load %arg1[%c0, %c0_0] : memref<16x256xf32, #tpu.memory_space<vmem>>, vector<16x256xf32>
    %c0_1 = arith.constant 0 : index
    %c0_2 = arith.constant 0 : index
    %1 = vector.load %arg2[%c0_1, %c0_2] : memref<16x256xbf16, #tpu.memory_space<vmem>>, vector<16x256xbf16>
    %2 = arith.extf %1 : vector<16x256xbf16> to vector<16x256xf32>
    %cst = arith.constant 1.000000e-03 : f32
    %3 = vector.broadcast %cst : f32 to vector<16x256xf32>
    %4 = arith.mulf %2, %3 : vector<16x256xf32>
    %5 = arith.addf %0, %4 : vector<16x256xf32>
    %6 = arith.truncf %5 : vector<16x256xf32> to vector<16x256xbf16>
    %c0_3 = arith.constant 0 : index
    %c0_4 = arith.constant 0 : index
    %7 = vector.load %arg4[%c0_3, %c0_4] : memref<256x512xbf16, #tpu.memory_space<vmem>>, vector<256x512xbf16>
    %cst_5 = arith.constant dense<0.000000e+00> : vector<16x512xf32>
    %8 = tpu.matmul %6, %7, %cst_5 {dimension_numbers = #tpu.dot_dimension_numbers<[1], [0], [0], [1], [0, 0, 1, 1], [], []>} : vector<16x256xbf16>, vector<256x512xbf16>, vector<16x512xf32> -> vector<16x512xf32>
    %c0_6 = arith.constant 0 : index
    %c0_7 = arith.constant 0 : index
    %9 = vector.load %arg5[%c0_6, %c0_7] : memref<1x512xf32, #tpu.memory_space<vmem>>, vector<1x512xf32>
    %10 = vector.broadcast %9 : vector<1x512xf32> to vector<16x512xf32>
    %11 = arith.addf %8, %10 : vector<16x512xf32>
    %cst_8 = arith.constant 0.000000e+00 : f32
    %12 = vector.broadcast %cst_8 : f32 to vector<16x512xf32>
    %13 = arith.maximumf %11, %12 : vector<16x512xf32>
    %14 = arith.truncf %13 : vector<16x512xf32> to vector<16x512xbf16>
    %c0_9 = arith.constant 0 : index
    %c0_10 = arith.constant 0 : index
    %15 = vector.load %arg6[%c0_9, %c0_10] : memref<512x128xbf16, #tpu.memory_space<vmem>>, vector<512x128xbf16>
    %cst_11 = arith.constant dense<0.000000e+00> : vector<16x128xf32>
    %16 = tpu.matmul %14, %15, %cst_11 {dimension_numbers = #tpu.dot_dimension_numbers<[1], [0], [0], [1], [0, 0, 1, 1], [], []>} : vector<16x512xbf16>, vector<512x128xbf16>, vector<16x128xf32> -> vector<16x128xf32>
    %c0_12 = arith.constant 0 : index
    %c0_13 = arith.constant 0 : index
    %17 = vector.load %arg7[%c0_12, %c0_13] : memref<1x128xf32, #tpu.memory_space<vmem>>, vector<1x128xf32>
    %18 = vector.broadcast %17 : vector<1x128xf32> to vector<16x128xf32>
    %19 = arith.addf %16, %18 : vector<16x128xf32>
    %c0_14 = arith.constant 0 : index
    %c0_15 = arith.constant 0 : index
    %20 = vector.load %arg3[%c0_14, %c0_15] : memref<16x128xbf16, #tpu.memory_space<vmem>>, vector<16x128xbf16>
    %21 = arith.extf %20 : vector<16x128xbf16> to vector<16x128xf32>
    %cst_16 = arith.constant 5.000000e-02 : f32
    %22 = vector.broadcast %cst_16 : f32 to vector<16x128xf32>
    %23 = arith.mulf %21, %22 : vector<16x128xf32>
    %24 = arith.addf %19, %23 : vector<16x128xf32>
    %25 = arith.truncf %24 : vector<16x128xf32> to vector<16x128xbf16>
    %c0_17 = arith.constant 0 : index
    %c0_18 = arith.constant 0 : index
    %26 = vector.load %arg8[%c0_17, %c0_18] : memref<128x512xbf16, #tpu.memory_space<vmem>>, vector<128x512xbf16>
    %cst_19 = arith.constant dense<0.000000e+00> : vector<16x512xf32>
    %27 = tpu.matmul %25, %26, %cst_19 {dimension_numbers = #tpu.dot_dimension_numbers<[1], [0], [0], [1], [0, 0, 1, 1], [], []>} : vector<16x128xbf16>, vector<128x512xbf16>, vector<16x512xf32> -> vector<16x512xf32>
    %c0_20 = arith.constant 0 : index
    %c0_21 = arith.constant 0 : index
    %28 = vector.load %arg9[%c0_20, %c0_21] : memref<1x512xf32, #tpu.memory_space<vmem>>, vector<1x512xf32>
    %29 = vector.broadcast %28 : vector<1x512xf32> to vector<16x512xf32>
    %30 = arith.addf %27, %29 : vector<16x512xf32>
    %cst_22 = arith.constant 0.000000e+00 : f32
    %31 = vector.broadcast %cst_22 : f32 to vector<16x512xf32>
    %32 = arith.maximumf %30, %31 : vector<16x512xf32>
    %33 = arith.truncf %32 : vector<16x512xf32> to vector<16x512xbf16>
    %c0_23 = arith.constant 0 : index
    %c0_24 = arith.constant 0 : index
    %34 = vector.load %arg10[%c0_23, %c0_24] : memref<512x256xbf16, #tpu.memory_space<vmem>>, vector<512x256xbf16>
    %cst_25 = arith.constant dense<0.000000e+00> : vector<16x256xf32>
    %35 = tpu.matmul %33, %34, %cst_25 {dimension_numbers = #tpu.dot_dimension_numbers<[1], [0], [0], [1], [0, 0, 1, 1], [], []>} : vector<16x512xbf16>, vector<512x256xbf16>, vector<16x256xf32> -> vector<16x256xf32>
    %c0_26 = arith.constant 0 : index
    %c0_27 = arith.constant 0 : index
    %36 = vector.load %arg11[%c0_26, %c0_27] : memref<1x256xf32, #tpu.memory_space<vmem>>, vector<1x256xf32>
    %37 = vector.broadcast %36 : vector<1x256xf32> to vector<16x256xf32>
    %38 = arith.addf %35, %37 : vector<16x256xf32>
    %c0_28 = arith.constant 0 : index
    %c0_29 = arith.constant 0 : index
    %39 = vector.load %arg12[%c0_28, %c0_29] : memref<16x256xf32, #tpu.memory_space<vmem>>, vector<16x256xf32>
    tpu.vector_store %arg12[%c0_28, %c0_29], %38 {strides = array<i32>} : memref<16x256xf32, #tpu.memory_space<vmem>>, vector<16x256xf32>,
    return
  }
  func.func @transform_0(%arg0: i32) -> (i32, i32) {
    %c0_i32 = arith.constant 0 : i32
    %c0_i32_0 = arith.constant 0 : i32
    return %arg0, %c0_i32 : i32, i32
  }
  func.func @transform_1(%arg0: i32) -> (i32, i32) {
    %c0_i32 = arith.constant 0 : i32
    %c0_i32_0 = arith.constant 0 : i32
    return %arg0, %c0_i32 : i32, i32
  }
  func.func @transform_2(%arg0: i32) -> (i32, i32) {
    %c0_i32 = arith.constant 0 : i32
    %c0_i32_0 = arith.constant 0 : i32
    return %arg0, %c0_i32 : i32, i32
  }
  func.func @transform_3(%arg0: i32) -> (i32, i32) {
    %c0_i32 = arith.constant 0 : i32
    %c0_i32_0 = arith.constant 0 : i32
    %c0_i32_1 = arith.constant 0 : i32
    return %c0_i32, %c0_i32_0 : i32, i32
  }
  func.func @transform_4(%arg0: i32) -> (i32, i32) {
    %c0_i32 = arith.constant 0 : i32
    %c0_i32_0 = arith.constant 0 : i32
    %c0_i32_1 = arith.constant 0 : i32
    return %c0_i32, %c0_i32_0 : i32, i32
  }
  func.func @transform_5(%arg0: i32) -> (i32, i32) {
    %c0_i32 = arith.constant 0 : i32
    %c0_i32_0 = arith.constant 0 : i32
    %c0_i32_1 = arith.constant 0 : i32
    return %c0_i32, %c0_i32_0 : i32, i32
  }
  func.func @transform_6(%arg0: i32) -> (i32, i32) {
    %c0_i32 = arith.constant 0 : i32
    %c0_i32_0 = arith.constant 0 : i32
    %c0_i32_1 = arith.constant 0 : i32
    return %c0_i32, %c0_i32_0 : i32, i32
  }
  func.func @transform_7(%arg0: i32) -> (i32, i32) {
    %c0_i32 = arith.constant 0 : i32
    %c0_i32_0 = arith.constant 0 : i32
    %c0_i32_1 = arith.constant 0 : i32
    return %c0_i32, %c0_i32_0 : i32, i32
  }
  func.func @transform_8(%arg0: i32) -> (i32, i32) {
    %c0_i32 = arith.constant 0 : i32
    %c0_i32_0 = arith.constant 0 : i32
    %c0_i32_1 = arith.constant 0 : i32
    return %c0_i32, %c0_i32_0 : i32, i32
  }
  func.func @transform_9(%arg0: i32) -> (i32, i32) {
    %c0_i32 = arith.constant 0 : i32
    %c0_i32_0 = arith.constant 0 : i32
    %c0_i32_1 = arith.constant 0 : i32
    return %c0_i32, %c0_i32_0 : i32, i32
  }
  func.func @transform_10(%arg0: i32) -> (i32, i32) {
    %c0_i32 = arith.constant 0 : i32
    %c0_i32_0 = arith.constant 0 : i32
    %c0_i32_1 = arith.constant 0 : i32
    return %c0_i32, %c0_i32_0 : i32, i32
  }
  func.func @transform_11(%arg0: i32) -> (i32, i32) {
    %c0_i32 = arith.constant 0 : i32
    %c0_i32_0 = arith.constant 0 : i32
    return %arg0, %c0_i32 : i32, i32
  }
}

module attributes {stable_mosaic.version = 11 : i64} {
  func.func @_autoencoder_kernel(%arg0: i32, %arg1: memref<16x256xf32, #tpu.memory_space<vmem>>, %arg2: memref<16x256xbf16, #tpu.memory_space<vmem>>, %arg3: memref<16x128xbf16, #tpu.memory_space<vmem>>, %arg4: memref<256x512xbf16, #tpu.memory_space<vmem>>, %arg5: memref<1x512xf32, #tpu.memory_space<vmem>>, %arg6: memref<512x128xbf16, #tpu.memory_space<vmem>>, %arg7: memref<1x128xf32, #tpu.memory_space<vmem>>, %arg8: memref<128x512xbf16, #tpu.memory_space<vmem>>, %arg9: memref<1x512xf32, #tpu.memory_space<vmem>>, %arg10: memref<512x256xbf16, #tpu.memory_space<vmem>>, %arg11: memref<1x256xf32, #tpu.memory_space<vmem>>, %arg12: memref<16x256xf32, #tpu.memory_space<vmem>>) attributes {dimension_semantics = [#tpu.dimension_semantics<parallel>], iteration_bounds = array<i64: 1>, scalar_prefetch = 0 : i64, scratch_operands = 0 : i64, tpu.core_type = #tpu.core_type<tc>, window_params = [{transform_indices = @transform_0, window_bounds = array<i64: 16, 256>}, {transform_indices = @transform_1, window_bounds = array<i64: 16, 256>}, {transform_indices = @transform_2, window_bounds = array<i64: 16, 128>}, {pipeline_mode = #tpu.pipeline_mode<synchronous>, transform_indices = @transform_3, window_bounds = array<i64: 256, 512>}, {pipeline_mode = #tpu.pipeline_mode<synchronous>, transform_indices = @transform_4, window_bounds = array<i64: 1, 512>}, {pipeline_mode = #tpu.pipeline_mode<synchronous>, transform_indices = @transform_5, window_bounds = array<i64: 512, 128>}, {pipeline_mode = #tpu.pipeline_mode<synchronous>, transform_indices = @transform_6, window_bounds = array<i64: 1, 128>}, {pipeline_mode = #tpu.pipeline_mode<synchronous>, transform_indices = @transform_7, window_bounds = array<i64: 128, 512>}, {pipeline_mode = #tpu.pipeline_mode<synchronous>, transform_indices = @transform_8, window_bounds = array<i64: 1, 512>}, {pipeline_mode = #tpu.pipeline_mode<synchronous>, transform_indices = @transform_9, window_bounds = array<i64: 512, 256>}, {pipeline_mode = #tpu.pipeline_mode<synchronous>, transform_indices = @transform_10, window_bounds = array<i64: 1, 256>}, {transform_indices = @transform_11, window_bounds = array<i64: 16, 256>}]} {
    %c0 = arith.constant 0 : index
    %c0_0 = arith.constant 0 : index
    %0 = vector.load %arg1[%c0, %c0_0] : memref<16x256xf32, #tpu.memory_space<vmem>>, vector<16x256xf32>
    %c0_1 = arith.constant 0 : index
    %c0_2 = arith.constant 0 : index
    %1 = vector.load %arg2[%c0_1, %c0_2] : memref<16x256xbf16, #tpu.memory_space<vmem>>, vector<16x256xbf16>
    %2 = arith.extf %1 : vector<16x256xbf16> to vector<16x256xf32>
    %cst = arith.constant 1.000000e-03 : f32
    %3 = vector.broadcast %cst : f32 to vector<16x256xf32>
    %4 = arith.mulf %2, %3 : vector<16x256xf32>
    %5 = arith.addf %0, %4 : vector<16x256xf32>
    %6 = arith.truncf %5 : vector<16x256xf32> to vector<16x256xbf16>
    %c0_3 = arith.constant 0 : index
    %c0_4 = arith.constant 0 : index
    %7 = vector.load %arg4[%c0_3, %c0_4] : memref<256x512xbf16, #tpu.memory_space<vmem>>, vector<256x512xbf16>
    %cst_5 = arith.constant dense<0.000000e+00> : vector<16x512xf32>
    %8 = tpu.matmul %6, %7, %cst_5 {dimension_numbers = #tpu.dot_dimension_numbers<[1], [0], [0], [1], [0, 0, 1, 1], [], []>} : vector<16x256xbf16>, vector<256x512xbf16>, vector<16x512xf32> -> vector<16x512xf32>
    %c0_6 = arith.constant 0 : index
    %c0_7 = arith.constant 0 : index
    %9 = vector.load %arg5[%c0_6, %c0_7] : memref<1x512xf32, #tpu.memory_space<vmem>>, vector<1x512xf32>
    %10 = vector.broadcast %9 : vector<1x512xf32> to vector<16x512xf32>
    %11 = arith.addf %8, %10 : vector<16x512xf32>
    %cst_8 = arith.constant 0.000000e+00 : f32
    %12 = vector.broadcast %cst_8 : f32 to vector<16x512xf32>
    %13 = arith.maximumf %11, %12 : vector<16x512xf32>
    %14 = arith.truncf %13 : vector<16x512xf32> to vector<16x512xbf16>
    %c0_9 = arith.constant 0 : index
    %c0_10 = arith.constant 0 : index
    %15 = vector.load %arg6[%c0_9, %c0_10] : memref<512x128xbf16, #tpu.memory_space<vmem>>, vector<512x128xbf16>
    %cst_11 = arith.constant dense<0.000000e+00> : vector<16x128xf32>
    %16 = tpu.matmul %14, %15, %cst_11 {dimension_numbers = #tpu.dot_dimension_numbers<[1], [0], [0], [1], [0, 0, 1, 1], [], []>} : vector<16x512xbf16>, vector<512x128xbf16>, vector<16x128xf32> -> vector<16x128xf32>
    %c0_12 = arith.constant 0 : index
    %c0_13 = arith.constant 0 : index
    %17 = vector.load %arg7[%c0_12, %c0_13] : memref<1x128xf32, #tpu.memory_space<vmem>>, vector<1x128xf32>
    %18 = vector.broadcast %17 : vector<1x128xf32> to vector<16x128xf32>
    %19 = arith.addf %16, %18 : vector<16x128xf32>
    %c0_14 = arith.constant 0 : index
    %c0_15 = arith.constant 0 : index
    %20 = vector.load %arg3[%c0_14, %c0_15] : memref<16x128xbf16, #tpu.memory_space<vmem>>, vector<16x128xbf16>
    %21 = arith.extf %20 : vector<16x128xbf16> to vector<16x128xf32>
    %cst_16 = arith.constant 5.000000e-02 : f32
    %22 = vector.broadcast %cst_16 : f32 to vector<16x128xf32>
    %23 = arith.mulf %21, %22 : vector<16x128xf32>
    %24 = arith.addf %19, %23 : vector<16x128xf32>
    %25 = arith.truncf %24 : vector<16x128xf32> to vector<16x128xbf16>
    %c0_17 = arith.constant 0 : index
    %c0_18 = arith.constant 0 : index
    %26 = vector.load %arg8[%c0_17, %c0_18] : memref<128x512xbf16, #tpu.memory_space<vmem>>, vector<128x512xbf16>
    %cst_19 = arith.constant dense<0.000000e+00> : vector<16x512xf32>
    %27 = tpu.matmul %25, %26, %cst_19 {dimension_numbers = #tpu.dot_dimension_numbers<[1], [0], [0], [1], [0, 0, 1, 1], [], []>} : vector<16x128xbf16>, vector<128x512xbf16>, vector<16x512xf32> -> vector<16x512xf32>
    %c0_20 = arith.constant 0 : index
    %c0_21 = arith.constant 0 : index
    %28 = vector.load %arg9[%c0_20, %c0_21] : memref<1x512xf32, #tpu.memory_space<vmem>>, vector<1x512xf32>
    %29 = vector.broadcast %28 : vector<1x512xf32> to vector<16x512xf32>
    %30 = arith.addf %27, %29 : vector<16x512xf32>
    %cst_22 = arith.constant 0.000000e+00 : f32
    %31 = vector.broadcast %cst_22 : f32 to vector<16x512xf32>
    %32 = arith.maximumf %30, %31 : vector<16x512xf32>
    %33 = arith.truncf %32 : vector<16x512xf32> to vector<16x512xbf16>
    %c0_23 = arith.constant 0 : index
    %c0_24 = arith.constant 0 : index
    %34 = vector.load %arg10[%c0_23, %c0_24] : memref<512x256xbf16, #tpu.memory_space<vmem>>, vector<512x256xbf16>
    %cst_25 = arith.constant dense<0.000000e+00> : vector<16x256xf32>
    %35 = tpu.matmul %33, %34, %cst_25 {dimension_numbers = #tpu.dot_dimension_numbers<[1], [0], [0], [1], [0, 0, 1, 1], [], []>} : vector<16x512xbf16>, vector<512x256xbf16>, vector<16x256xf32> -> vector<16x256xf32>
    %c0_26 = arith.constant 0 : index
    %c0_27 = arith.constant 0 : index
    %36 = vector.load %arg11[%c0_26, %c0_27] : memref<1x256xf32, #tpu.memory_space<vmem>>, vector<1x256xf32>
    %37 = vector.broadcast %36 : vector<1x256xf32> to vector<16x256xf32>
    %38 = arith.addf %35, %37 : vector<16x256xf32>
    %c0_28 = arith.constant 0 : index
    %c0_29 = arith.constant 0 : index
    %39 = vector.load %arg12[%c0_28, %c0_29] : memref<16x256xf32, #tpu.memory_space<vmem>>, vector<16x256xf32>
    tpu.vector_store %arg12[%c0_28, %c0_29], %38 {strides = array<i32>} : memref<16x256xf32, #tpu.memory_space<vmem>>, vector<16x256xf32>,
    return
  }
  func.func @transform_0(%arg0: i32) -> (i32, i32) {
    %c0_i32 = arith.constant 0 : i32
    %c0_i32_0 = arith.constant 0 : i32
    return %arg0, %c0_i32 : i32, i32
  }
  func.func @transform_1(%arg0: i32) -> (i32, i32) {
    %c0_i32 = arith.constant 0 : i32
    %c0_i32_0 = arith.constant 0 : i32
    return %arg0, %c0_i32 : i32, i32
  }
  func.func @transform_2(%arg0: i32) -> (i32, i32) {
    %c0_i32 = arith.constant 0 : i32
    %c0_i32_0 = arith.constant 0 : i32
    return %arg0, %c0_i32 : i32, i32
  }
  func.func @transform_3(%arg0: i32) -> (i32, i32) {
    %c0_i32 = arith.constant 0 : i32
    %c0_i32_0 = arith.constant 0 : i32
    %c0_i32_1 = arith.constant 0 : i32
    return %c0_i32, %c0_i32_0 : i32, i32
  }
  func.func @transform_4(%arg0: i32) -> (i32, i32) {
    %c0_i32 = arith.constant 0 : i32
    %c0_i32_0 = arith.constant 0 : i32
    %c0_i32_1 = arith.constant 0 : i32
    return %c0_i32, %c0_i32_0 : i32, i32
  }
  func.func @transform_5(%arg0: i32) -> (i32, i32) {
    %c0_i32 = arith.constant 0 : i32
    %c0_i32_0 = arith.constant 0 : i32
    %c0_i32_1 = arith.constant 0 : i32
    return %c0_i32, %c0_i32_0 : i32, i32
  }
  func.func @transform_6(%arg0: i32) -> (i32, i32) {
    %c0_i32 = arith.constant 0 : i32
    %c0_i32_0 = arith.constant 0 : i32
    %c0_i32_1 = arith.constant 0 : i32
    return %c0_i32, %c0_i32_0 : i32, i32
  }
  func.func @transform_7(%arg0: i32) -> (i32, i32) {
    %c0_i32 = arith.constant 0 : i32
    %c0_i32_0 = arith.constant 0 : i32
    %c0_i32_1 = arith.constant 0 : i32
    return %c0_i32, %c0_i32_0 : i32, i32
  }
  func.func @transform_8(%arg0: i32) -> (i32, i32) {
    %c0_i32 = arith.constant 0 : i32
    %c0_i32_0 = arith.constant 0 : i32
    %c0_i32_1 = arith.constant 0 : i32
    return %c0_i32, %c0_i32_0 : i32, i32
  }
  func.func @transform_9(%arg0: i32) -> (i32, i32) {
    %c0_i32 = arith.constant 0 : i32
    %c0_i32_0 = arith.constant 0 : i32
    %c0_i32_1 = arith.constant 0 : i32
    return %c0_i32, %c0_i32_0 : i32, i32
  }
  func.func @transform_10(%arg0: i32) -> (i32, i32) {
    %c0_i32 = arith.constant 0 : i32
    %c0_i32_0 = arith.constant 0 : i32
    %c0_i32_1 = arith.constant 0 : i32
    return %c0_i32, %c0_i32_0 : i32, i32
  }
  func.func @transform_11(%arg0: i32) -> (i32, i32) {
    %c0_i32 = arith.constant 0 : i32
    %c0_i32_0 = arith.constant 0 : i32
    return %arg0, %c0_i32 : i32, i32
  }
}

</mosaic_0001>

<bundles_post_ra>
// kernel: parameter_autoencoder_fwd.1
= control target key start
LH: loop header
LB: loop body
LE: loop exit
PB: predicated region body
PF: predicated region fallthrough
CT: control target
= control target key end

     0   :  { %16 = vsyncpa [#allocation3], 0  ;;  %s3012_s0 = inlined_call_operand.vmem [shape: f32[16,256], index: 0, kind: input, shape index: {}]   ;;  %s3013_s1 = inlined_call_operand.vmem [shape: bf16[16,256], index: 1, kind: input, shape index: {}]   ;;  %s3014_s2 = inlined_call_operand.vmem [shape: bf16[16,128], index: 2, kind: input, shape index: {}]   ;;  %s3015_s3 = inlined_call_operand.hbm [shape: bf16[256,512], index: 3, kind: input, shape index: {}]   ;;  %s3016_s4 = inlined_call_operand.vmem [shape: f32[1,512], index: 4, kind: input, shape index: {}]   ;;  %s3017_s5 = inlined_call_operand.hbm [shape: bf16[512,128], index: 5, kind: input, shape index: {}]   ;;  %s3018_s6 = inlined_call_operand.vmem [shape: f32[1,128], index: 6, kind: input, shape index: {}]   ;;  %s3019_s7 = inlined_call_operand.hbm [shape: bf16[128,512], index: 7, kind: input, shape index: {}]   ;;  %s3020_s8 = inlined_call_operand.vmem [shape: f32[1,512], index: 8, kind: input, shape index: {}]   ;;  %s3021_s9 = inlined_call_operand.hbm [shape: bf16[512,256], index: 9, kind: input, shape index: {}]   ;;  %s3022_s10 = inlined_call_operand.vmem [shape: f32[1,256], index: 10, kind: input, shape index: {}]   ;;  %s3023_s11 = inlined_call_operand.hbm [shape: f32[16,256], index: 11, kind: output, shape index: {}]  }
   0x1   :  { %17 = vsyncpa [#allocation6], 0 }
   0x2   :  { %18 = vsyncpa [#allocation9], 0  ;;  %s45_s19 = sshll.u32 %s3017_s5, 4  ;;  %s46_s19 = int_to_ptr.hbm [resolvable:$true] %s45_s19 }
   0x3   :  { %19 = vsyncpa [#allocation4], 0  ;;  %s2866_s20 = smov [#allocation5]   ;;  %s30_s24 = sshll.u32 %s3015_s3, 4  ;;  %s31_s24 = int_to_ptr.hbm [resolvable:$true] %s30_s24 }
   0x4   :  { %s47_s21 = sshll.u32 %s2866_s20, 4  ;;  %s2867_s25 = smov 64   ;;  %s48_s21 = int_to_ptr.vmem [resolvable:$true] %s47_s21 }
   0x5   :  { %s2868_s26 = smov 4   ;;  %s2869_s27 = smov [#allocation2]  }
   0x6   :  { %53 = dma.hbm_to_vmem [thread:$0]  %s46_s19, 4096, %s48_s21, [#allocation6], %s2867_s25, %s2867_s25, %s2868_s26  }
   0x7   :  { %s32_s28 = sshll.u32 %s2869_s27, 4  ;;  %s2870_s29 = smov 256   ;;  %s33_s28 = int_to_ptr.vmem [resolvable:$true] %s32_s28 }
   0x8   :  { %s2871_s30 = smov 16   ;;  %s60_s13 = sshll.u32 %s3019_s7, 4  ;;  %s61_s13 = int_to_ptr.hbm [resolvable:$true] %s60_s13 }
   0x9   :  { %38 = dma.hbm_to_vmem [thread:$0]  %s31_s24, 8192, %s33_s28, [#allocation3], %s2870_s29, %s2870_s29, %s2871_s30  }
   0xa   :  { %s2872_s14 = smov [#allocation7]   ;;  %s75_s17 = sshll.u32 %s3021_s9, 4  ;;  %s76_s17 = int_to_ptr.hbm [resolvable:$true] %s75_s17 }
   0xb   :  { %s62_s3 = sshll.u32 %s2872_s14, 4  ;;  %s2873_s18 = smov [#allocation8]   ;;  %s63_s3 = int_to_ptr.vmem [resolvable:$true] %s62_s3 }
   0xc   :  { %68 = dma.hbm_to_vmem [thread:$0]  %s61_s13, 4096, %s63_s3, [#allocation6], %s2870_s29, %s2870_s29, %s2871_s30  }
   0xd   :  { %s77_s19 = sshll.u32 %s2873_s18, 4  ;;  %s2874_s20 = smov 128   ;;  %s78_s19 = int_to_ptr.vmem [resolvable:$true] %s77_s19 }
   0xe   :  { %s2875_s21 = smov 8  }
   0xf   :  { %83 = dma.hbm_to_vmem [thread:$0]  %s76_s17, 8192, %s78_s19, [#allocation9], %s2874_s20, %s2874_s20, %s2875_s21  }
  0x10   :  { %2858 = dma.done.wait [#allocation3], 8192  }
  0x11   :  { %2859 = vsyncadd [#allocation3], 4294959104 }
  0x12   :  { %2860 = dma.done.wait [#allocation6], 8192  }
  0x13   :  { %2861 = vsyncadd [#allocation6], 4294959104 }
  0x14   :  { %2862 = dma.done.wait [#allocation9], 8192  }
  0x15   :  { %2863 = vsyncadd [#allocation9], 4294959104  ;;  %v1876_v0 = vld [vmem:[#allocation2 + $0xe0] sm:$0xf]  ;;  %v2560_v1 = vld [vmem:[#allocation2 + $0xec] sm:$0xf0] }
  0x16   :  { %v2004_v2 = vld [vmem:[#allocation2 + $0x1e0] sm:$0xf]  ;;  %v1877_v3 = vor.u32 %v2560_v1, %v1876_v0  ;;  %v2592_v4 = vld [vmem:[#allocation2 + $0x1ec] sm:$0xf0]  ;;  %v2558_v5 = vld [vmem:[#allocation2 + $0xe4] sm:$0xf] }
  0x17   :  { %v1878_v6 = vld [vmem:[#allocation2 + $0xf0] sm:$0xf0]  ;;  %v2005_v7 = vor.u32 %v2592_v4, %v2004_v2  ;;  %v2590_v9 = vld [vmem:[#allocation2 + $0x1e4] sm:$0xf]  ;;  %v1860_v11 = vld [vmem:[#allocation2 + $0xc0] sm:$0xf] }
  0x18   :  { %v1881_v8 = vor.u32 %v2558_v5, %v1878_v6  ;;  %v2006_v10 = vld [vmem:[#allocation2 + $0x1f0] sm:$0xf0]  ;;  %516 = vmatpush.bf16.msra.mxu0 %v1877_v3  ;;  %v2556_v13 = vld [vmem:[#allocation2 + $0xcc] sm:$0xf0]  ;;  %v1988_v14 = vld [vmem:[#allocation2 + $0x1c0] sm:$0xf] }
  0x19   :  { %v2009_v12 = vor.u32 %v2590_v9, %v2006_v10  ;;  %v2588_v15 = vld [vmem:[#allocation2 + $0x1cc] sm:$0xf0]  ;;  %530 = vmatpush.bf16.msra.mxu1 %v2005_v7  ;;  %v1861_v16 = vor.u32 %v2556_v13, %v1860_v11  ;;  %v2554_v18 = vld [vmem:[#allocation2 + $0xc4] sm:$0xf]  ;;  %v1862_v19 = vld [vmem:[#allocation2 + $0xd0] sm:$0xf0] }
  0x1a   :  { %544 = vmatpush.bf16.msra.mxu2 %v1881_v8  ;;  %v1989_v17 = vor.u32 %v2588_v15, %v1988_v14  ;;  %v2586_v20 = vld [vmem:[#allocation2 + $0x1c4] sm:$0xf]  ;;  %v1865_v21 = vor.u32 %v2554_v18, %v1862_v19  ;;  %v1990_v22 = vld [vmem:[#allocation2 + $0x1d0] sm:$0xf0]  ;;  %v1844_v23 = vld [vmem:[#allocation2 + $0xa0] sm:$0xf] }
  0x1b   :  { %558 = vmatpush.bf16.msra.mxu3 %v2009_v12  ;;  %v2552_v24 = vld [vmem:[#allocation2 + $0xac] sm:$0xf0]  ;;  %v1993_v25 = vor.u32 %v2586_v20, %v1990_v22  ;;  %v1972_v26 = vld [vmem:[#allocation2 + $0x1a0] sm:$0xf]  ;;  %v2550_v28 = vld [vmem:[#allocation2 + $0xa4] sm:$0xf] }
  0x1c   :  { %v2584_v27 = vld [vmem:[#allocation2 + $0x1ac] sm:$0xf0]  ;;  %517 = vmatpush.bf16.msra.mxu0 %v1861_v16  ;;  %v1845_v29 = vor.u32 %v2552_v24, %v1844_v23  ;;  %v1846_v30 = vld [vmem:[#allocation2 + $0xb0] sm:$0xf0]  ;;  %v2582_v31 = vld [vmem:[#allocation2 + $0x1a4] sm:$0xf] }
  0x1d   :  { %v1974_v32 = vld [vmem:[#allocation2 + $0x1b0] sm:$0xf0]  ;;  %531 = vmatpush.bf16.msra.mxu1 %v1989_v17  ;;  %v1973_v33 = vor.u32 %v2584_v27, %v1972_v26  ;;  %v1849_v34 = vor.u32 %v2550_v28, %v1846_v30  ;;  %v1828_v35 = vld [vmem:[#allocation2 + $0x80] sm:$0xf]  ;;  %v2548_v36 = vld [vmem:[#allocation2 + $0x8c] sm:$0xf0] }
  0x1e   :  { %545 = vmatpush.bf16.msra.mxu2 %v1865_v21  ;;  %v1956_v37 = vld [vmem:[#allocation2 + $0x180] sm:$0xf]  ;;  %v1977_v38 = vor.u32 %v2582_v31, %v1974_v32  ;;  %v2580_v39 = vld [vmem:[#allocation2 + $0x18c] sm:$0xf0]  ;;  %v2546_v40 = vld [vmem:[#allocation2 + $0x84] sm:$0xf]  ;;  %v1829_v44 = vor.u32 %v2548_v36, %v1828_v35 }
  0x1f   :  { %559 = vmatpush.bf16.msra.mxu3 %v1993_v25  ;;  %v1830_v41 = vld [vmem:[#allocation2 + $0x90] sm:$0xf0]  ;;  %v2578_v42 = vld [vmem:[#allocation2 + $0x184] sm:$0xf]  ;;  %v1957_v45 = vor.u32 %v2580_v39, %v1956_v37  ;;  %v1812_v47 = vld [vmem:[#allocation2 + $0x60] sm:$0xf] }
  0x20   :  { %v1958_v43 = vld [vmem:[#allocation2 + $0x190] sm:$0xf0]  ;;  %518 = vmatpush.bf16.msra.mxu0 %v1845_v29  ;;  %v1833_v46 = vor.u32 %v2546_v40, %v1830_v41  ;;  %v2544_v48 = vld [vmem:[#allocation2 + $0x6c] sm:$0xf0]  ;;  %v1940_v49 = vld [vmem:[#allocation2 + $0x160] sm:$0xf] }
  0x21   :  { %532 = vmatpush.bf16.msra.mxu1 %v1973_v33  ;;  %v1961_v50 = vor.u32 %v2578_v42, %v1958_v43  ;;  %v2576_v51 = vld [vmem:[#allocation2 + $0x16c] sm:$0xf0]  ;;  %v2542_v52 = vld [vmem:[#allocation2 + $0x64] sm:$0xf]  ;;  %v1814_v53 = vld [vmem:[#allocation2 + $0x70] sm:$0xf0]  ;;  %v1813_v56 = vor.u32 %v2544_v48, %v1812_v47 }
  0x22   :  { %546 = vmatpush.bf16.msra.mxu2 %v1849_v34  ;;  %v2574_v54 = vld [vmem:[#allocation2 + $0x164] sm:$0xf]  ;;  %v1942_v55 = vld [vmem:[#allocation2 + $0x170] sm:$0xf0]  ;;  %v1941_v57 = vor.u32 %v2576_v51, %v1940_v49  ;;  %v1817_v58 = vor.u32 %v2542_v52, %v1814_v53  ;;  %v1796_v59 = vld [vmem:[#allocation2 + $0x40] sm:$0xf] }
  0x23   :  { %560 = vmatpush.bf16.msra.mxu3 %v1977_v38  ;;  %v2540_v60 = vld [vmem:[#allocation2 + $0x4c] sm:$0xf0]  ;;  %v1924_v61 = vld [vmem:[#allocation2 + $0x140] sm:$0xf]  ;;  %v1945_v62 = vor.u32 %v2574_v54, %v1942_v55  ;;  %v2538_v0 = vld [vmem:[#allocation2 + $0x44] sm:$0xf] }
  0x24   :  { %519 = vmatpush.bf16.msra.mxu0 %v1829_v44  ;;  %v2572_v63 = vld [vmem:[#allocation2 + $0x14c] sm:$0xf0]  ;;  %v1798_v1 = vld [vmem:[#allocation2 + $0x50] sm:$0xf0]  ;;  %v2570_v2 = vld [vmem:[#allocation2 + $0x144] sm:$0xf]  ;;  %v1797_v4 = vor.u32 %v2540_v60, %v1796_v59 }
  0x25   :  { %533 = vmatpush.bf16.msra.mxu1 %v1957_v45  ;;  %v1926_v3 = vld [vmem:[#allocation2 + $0x150] sm:$0xf0]  ;;  %v1780_v5 = vld [vmem:[#allocation2 + $0x20] sm:$0xf]  ;;  %v1925_v6 = vor.u32 %v2572_v63, %v1924_v61  ;;  %v1801_v7 = vor.u32 %v2538_v0, %v1798_v1  ;;  %v2536_v8 = vld [vmem:[#allocation2 + $0x2c] sm:$0xf0] }
  0x26   :  { %547 = vmatpush.bf16.msra.mxu2 %v1833_v46  ;;  %v1908_v9 = vld [vmem:[#allocation2 + $0x120] sm:$0xf]  ;;  %v2568_v10 = vld [vmem:[#allocation2 + $0x12c] sm:$0xf0]  ;;  %v1929_v11 = vor.u32 %v2570_v2, %v1926_v3  ;;  %v2534_v12 = vld [vmem:[#allocation2 + $0x24] sm:$0xf]  ;;  %v1781_v18 = vor.u32 %v2536_v8, %v1780_v5 }
  0x27   :  { %561 = vmatpush.bf16.msra.mxu3 %v1961_v50  ;;  %v1782_v13 = vld [vmem:[#allocation2 + $0x30] sm:$0xf0]  ;;  %v2566_v14 = vld [vmem:[#allocation2 + $0x124] sm:$0xf]  ;;  %v1764_v16 = vld [vmem:[#allocation2] sm:$0xf]  ;;  %v1909_v23 = vor.u32 %v2568_v10, %v1908_v9 }
  0x28   :  { %520 = vmatpush.bf16.msra.mxu0 %v1813_v56  ;;  %v1910_v15 = vld [vmem:[#allocation2 + $0x130] sm:$0xf0]  ;;  %v2532_v17 = vld [vmem:[#allocation2 + $0xc] sm:$0xf0]  ;;  %v1892_v19 = vld [vmem:[#allocation2 + $0x100] sm:$0xf]  ;;  %v1785_v24 = vor.u32 %v2534_v12, %v1782_v13 }
  0x29   :  { %534 = vmatpush.bf16.msra.mxu1 %v1941_v57  ;;  %v2564_v20 = vld [vmem:[#allocation2 + $0x10c] sm:$0xf0]  ;;  %v2530_v21 = vld [vmem:[#allocation2 + $0x4] sm:$0xf]  ;;  %v1766_v22 = vld [vmem:[#allocation2 + $0x10] sm:$0xf0]  ;;  %v1913_v30 = vor.u32 %v2566_v14, %v1910_v15  ;;  %v1765_v43 = vor.u32 %v2532_v17, %v1764_v16 }
  0x2a   :  { %548 = vmatpush.bf16.msra.mxu2 %v1817_v58  ;;  %v2562_v25 = vld [vmem:[#allocation2 + $0x104] sm:$0xf]  ;;  %v1894_v26 = vld [vmem:[#allocation2 + $0x110] sm:$0xf0]  ;;  %v1884_v27 = vld [vmem:[#allocation2 + $0xe8] sm:$0xf]  ;;  %v1893_v48 = vor.u32 %v2564_v20, %v1892_v19  ;;  %v1769_v49 = vor.u32 %v2530_v21, %v1766_v22 }
  0x2b   :  { %562 = vmatpush.bf16.msra.mxu3 %v1945_v62  ;;  %v2561_v28 = vld [vmem:[#allocation2 + $0xf4] sm:$0xf0]  ;;  %v106_v29 = vld [vmem:[%s3013_s1] sm:$0xff]  ;;  %v2012_v31 = vld [vmem:[#allocation2 + $0x1e8] sm:$0xf]  ;;  %v1897_v53 = vor.u32 %v2562_v25, %v1894_v26  ;;  %s1747_s20 = sshll.u32 %s3023_s11, 4  ;;  %s1748_s20 = int_to_ptr.hbm [resolvable:$true] %s1747_s20 }
  0x2c   :  { %521 = vmatpush.bf16.msra.mxu0 %v1797_v4  ;;  %v2593_v32 = vld [vmem:[#allocation2 + $0x1f4] sm:$0xf0]  ;;  %v2559_v33 = vld [vmem:[#allocation2 + $0xec] sm:$0xf]  ;;  %v1886_v34 = vld [vmem:[#allocation2 + $0xf8] sm:$0xf0]  ;;  %v108_v36 = vunpack.c.l.bf16 %v106_v29  ;;  %v109_v37 = vunpack.c.h.bf16 %v106_v29  ;;  %v1885_v54 = vor.u32 %v2561_v28, %v1884_v27 }
  0x2d   :  { %535 = vmatpush.bf16.msra.mxu1 %v1925_v6  ;;  %v107_v35 = vld [vmem:[%s3013_s1 + $0x8] sm:$0xff]  ;;  %v102_v39 = vld [vmem:[%s3012_s0] sm:$0xff]  ;;  %v104_v44 = vld [vmem:[%s3012_s0 + $0x10] sm:$0xff]  ;;  %v2013_v57 = vor.u32 %v2593_v32, %v2012_v31  ;;  %v1889_v58 = vor.u32 %v2559_v33, %v1886_v34 }
  0x2e   :  { %549 = vmatpush.bf16.msra.mxu2 %v1801_v7  ;;  %v2591_v38 = vld [vmem:[#allocation2 + $0x1ec] sm:$0xf]  ;;  %v110_v40 = vunpack.c.l.bf16 %v107_v35  ;;  %v111_v42 = vunpack.c.h.bf16 %v107_v35  ;;  %v112_v45 = vmul.f32 0.001, %v108_v36  ;;  %v105_v46 = vld [vmem:[%s3012_s0 + $0x18] sm:$0xff] }
  0x2f   :  { %563 = vmatpush.bf16.msra.mxu3 %v1929_v11  ;;  %v103_v41 = vld [vmem:[%s3012_s0 + $0x8] sm:$0xff]  ;;  %v113_v47 = vmul.f32 0.001, %v109_v37  ;;  %v2014_v50 = vld [vmem:[#allocation2 + $0x1f8] sm:$0xf0] }
  0x30   :  { %522 = vmatpush.bf16.msra.mxu0 %v1781_v18  ;;  %v114_v51 = vmul.f32 0.001, %v110_v40  ;;  %v115_v52 = vmul.f32 0.001, %v111_v42  ;;  %v116_v55 = vadd.f32 %v112_v45, %v102_v39  ;;  %v1868_v61 = vld [vmem:[#allocation2 + $0xc8] sm:$0xf]  ;;  %v2017_v0 = vor.u32 %v2591_v38, %v2014_v50 }
  0x31   :  { %536 = vmatpush.bf16.msra.mxu1 %v1909_v23  ;;  %v117_v56 = vadd.f32 %v113_v47, %v103_v41  ;;  %v2557_v62 = vld [vmem:[#allocation2 + $0xd4] sm:$0xf0]  ;;  %v1996_v63 = vld [vmem:[#allocation2 + $0x1c8] sm:$0xf]  ;;  %v2555_v2 = vld [vmem:[#allocation2 + $0xcc] sm:$0xf] }
  0x32   :  { %550 = vmatpush.bf16.msra.mxu2 %v1785_v24  ;;  %v118_v59 = vadd.f32 %v114_v51, %v104_v44  ;;  %v119_v60 = vadd.f32 %v115_v52, %v105_v46  ;;  %v2589_v1 = vld [vmem:[#allocation2 + $0x1d4] sm:$0xf0]  ;;  %v1870_v3 = vld [vmem:[#allocation2 + $0xd8] sm:$0xf0]  ;;  %v2587_v6 = vld [vmem:[#allocation2 + $0x1cc] sm:$0xf]  ;;  %v1869_v8 = vor.u32 %v2557_v62, %v1868_v61 }
  0x33   :  { %564 = vmatpush.bf16.msra.mxu3 %v1913_v30  ;;  %v1998_v7 = vld [vmem:[#allocation2 + $0x1d8] sm:$0xf0]  ;;  %v1997_v9 = vor.u32 %v2589_v1, %v1996_v63  ;;  %v1873_v10 = vor.u32 %v2555_v2, %v1870_v3  ;;  %v1852_v11 = vld [vmem:[#allocation2 + $0xa8] sm:$0xf]  ;;  %v2553_v12 = vld [vmem:[#allocation2 + $0xb4] sm:$0xf0] }
  0x34   :  { %523 = vmatpush.bf16.msra.mxu0 %v1765_v43  ;;  %v2973_v4 = vpack.c.bf16 %v118_v59, %v116_v55  ;;  %v2975_v5 = vpack.c.bf16 %v119_v60, %v117_v56  ;;  %v1980_v13 = vld [vmem:[#allocation2 + $0x1a8] sm:$0xf]  ;;  %v2001_v14 = vor.u32 %v2587_v6, %v1998_v7  ;;  %v2585_v15 = vld [vmem:[#allocation2 + $0x1b4] sm:$0xf0]  ;;  %v2551_v16 = vld [vmem:[#allocation2 + $0xac] sm:$0xf]  ;;  %v1853_v20 = vor.u32 %v2553_v12, %v1852_v11 }
  0x35   :  { %537 = vmatpush.bf16.msra.mxu1 %v1893_v48  ;;  %v1854_v17 = vld [vmem:[#allocation2 + $0xb8] sm:$0xf0]  ;;  %v2583_v18 = vld [vmem:[#allocation2 + $0x1ac] sm:$0xf]  ;;  %v1981_v21 = vor.u32 %v2585_v15, %v1980_v13  ;;  %v1836_v23 = vld [vmem:[#allocation2 + $0x88] sm:$0xf] }
  0x36   :  { %551 = vmatpush.bf16.msra.mxu2 %v1769_v49  ;;  %v1982_v19 = vld [vmem:[#allocation2 + $0x1b8] sm:$0xf0]  ;;  %v1857_v22 = vor.u32 %v2551_v16, %v1854_v17  ;;  %v2549_v24 = vld [vmem:[#allocation2 + $0x94] sm:$0xf0]  ;;  %v1964_v25 = vld [vmem:[#allocation2 + $0x188] sm:$0xf] }
  0x37   :  { %565 = vmatpush.bf16.msra.mxu3 %v1897_v53  ;;  %524 = vmatmul.bf16.vlgmr.msra.gmra.mxu0 %v2973_v4  ;;  %v1985_v26 = vor.u32 %v2583_v18, %v1982_v19  ;;  %v2581_v27 = vld [vmem:[#allocation2 + $0x194] sm:$0xf0]  ;;  %v2547_v28 = vld [vmem:[#allocation2 + $0x8c] sm:$0xf]  ;;  %v1838_v29 = vld [vmem:[#allocation2 + $0x98] sm:$0xf0]  ;;  %v1837_v32 = vor.u32 %v2549_v24, %v1836_v23 }
  0x38   :  { %572 = vmatpush.bf16.msrb.mxu0 %v1885_v54  ;;  %538 = vmatmul.bf16.vlgmr.msra.gmra.mxu1 %v2975_v5  ;;  %v2579_v30 = vld [vmem:[#allocation2 + $0x18c] sm:$0xf]  ;;  %v1966_v31 = vld [vmem:[#allocation2 + $0x198] sm:$0xf0]  ;;  %v1965_v33 = vor.u32 %v2581_v27, %v1964_v25  ;;  %v1841_v34 = vor.u32 %v2547_v28, %v1838_v29  ;;  %v1820_v35 = vld [vmem:[#allocation2 + $0x68] sm:$0xf] }
  0x39   :  { %586 = vmatpush.bf16.msrb.mxu1 %v2013_v57  ;;  %552 = vmatmul.bf16.vlgmr.msra.gmra.mxu2 %v2973_v4  ;;  %v2545_v36 = vld [vmem:[#allocation2 + $0x74] sm:$0xf0]  ;;  %v1948_v37 = vld [vmem:[#allocation2 + $0x168] sm:$0xf]  ;;  %v1969_v38 = vor.u32 %v2579_v30, %v1966_v31  ;;  %v2543_v40 = vld [vmem:[#allocation2 + $0x6c] sm:$0xf] }
  0x3a   :  { %600 = vmatpush.bf16.msrb.mxu2 %v1889_v58  ;;  %566 = vmatmul.bf16.vlgmr.msra.gmra.mxu3 %v2975_v5  ;;  %v2577_v39 = vld [vmem:[#allocation2 + $0x174] sm:$0xf0]  ;;  %v1822_v41 = vld [vmem:[#allocation2 + $0x78] sm:$0xf0]  ;;  %v2575_v42 = vld [vmem:[#allocation2 + $0x16c] sm:$0xf]  ;;  %v1821_v44 = vor.u32 %v2545_v36, %v1820_v35 }
  0x3b   :  { %614 = vmatpush.bf16.msrb.mxu3 %v2017_v0  ;;  %v1950_v43 = vld [vmem:[#allocation2 + $0x178] sm:$0xf0]  ;;  %v1949_v45 = vor.u32 %v2577_v39, %v1948_v37  ;;  %v1825_v46 = vor.u32 %v2543_v40, %v1822_v41  ;;  %v1804_v47 = vld [vmem:[#allocation2 + $0x48] sm:$0xf]  ;;  %v2541_v48 = vld [vmem:[#allocation2 + $0x54] sm:$0xf0] }
  0x3c   :  { %573 = vmatpush.bf16.msrb.mxu0 %v1869_v8  ;;  %v1932_v49 = vld [vmem:[#allocation2 + $0x148] sm:$0xf]  ;;  %v1953_v50 = vor.u32 %v2575_v42, %v1950_v43  ;;  %v2573_v51 = vld [vmem:[#allocation2 + $0x154] sm:$0xf0]  ;;  %v2539_v52 = vld [vmem:[#allocation2 + $0x4c] sm:$0xf]  ;;  %v1805_v56 = vor.u32 %v2541_v48, %v1804_v47 }
  0x3d   :  { %587 = vmatpush.bf16.msrb.mxu1 %v1997_v9  ;;  %v1806_v53 = vld [vmem:[#allocation2 + $0x58] sm:$0xf0]  ;;  %v2571_v54 = vld [vmem:[#allocation2 + $0x14c] sm:$0xf]  ;;  %v1933_v57 = vor.u32 %v2573_v51, %v1932_v49  ;;  %v1788_v59 = vld [vmem:[#allocation2 + $0x28] sm:$0xf] }
  0x3e   :  { %601 = vmatpush.bf16.msrb.mxu2 %v1873_v10  ;;  %v1934_v55 = vld [vmem:[#allocation2 + $0x158] sm:$0xf0]  ;;  %v1809_v58 = vor.u32 %v2539_v52, %v1806_v53  ;;  %v2537_v60 = vld [vmem:[#allocation2 + $0x34] sm:$0xf0]  ;;  %v1916_v61 = vld [vmem:[#allocation2 + $0x128] sm:$0xf] }
  0x3f   :  { %615 = vmatpush.bf16.msrb.mxu3 %v2001_v14  ;;  %v1937_v62 = vor.u32 %v2571_v54, %v1934_v55  ;;  %v2569_v63 = vld [vmem:[#allocation2 + $0x134] sm:$0xf0]  ;;  %v2535_v0 = vld [vmem:[#allocation2 + $0x2c] sm:$0xf]  ;;  %v1790_v1 = vld [vmem:[#allocation2 + $0x38] sm:$0xf0]  ;;  %v1789_v6 = vor.u32 %v2537_v60, %v1788_v59 }
  0x40   :  { %574 = vmatpush.bf16.msrb.mxu0 %v1853_v20  ;;  %v2567_v2 = vld [vmem:[#allocation2 + $0x12c] sm:$0xf]  ;;  %v1918_v3 = vld [vmem:[#allocation2 + $0x138] sm:$0xf0]  ;;  %v1917_v7 = vor.u32 %v2569_v63, %v1916_v61  ;;  %v1793_v8 = vor.u32 %v2535_v0, %v1790_v1  ;;  %v1772_v9 = vld [vmem:[#allocation2 + $0x8] sm:$0xf] }
  0x41   :  { %588 = vmatpush.bf16.msrb.mxu1 %v1981_v21  ;;  %v2533_v10 = vld [vmem:[#allocation2 + $0x14] sm:$0xf0]  ;;  %v1900_v11 = vld [vmem:[#allocation2 + $0x108] sm:$0xf]  ;;  %v1921_v12 = vor.u32 %v2567_v2, %v1918_v3  ;;  %v2531_v14 = vld [vmem:[#allocation2 + $0xc] sm:$0xf] }
  0x42   :  { %602 = vmatpush.bf16.msrb.mxu2 %v1857_v22  ;;  %v2565_v13 = vld [vmem:[#allocation2 + $0x114] sm:$0xf0]  ;;  %v1774_v15 = vld [vmem:[#allocation2 + $0x18] sm:$0xf0]  ;;  %v2563_v16 = vld [vmem:[#allocation2 + $0x10c] sm:$0xf]  ;;  %v1773_v18 = vor.u32 %v2533_v10, %v1772_v9 }
  0x43   :  { %616 = vmatpush.bf16.msrb.mxu3 %v1985_v26  ;;  %v1902_v17 = vld [vmem:[#allocation2 + $0x118] sm:$0xf0]  ;;  %v1901_v19 = vor.u32 %v2565_v13, %v1900_v11  ;;  %v1777_v20 = vor.u32 %v2531_v14, %v1774_v15  ;;  %v2600_v24 = vld [vmem:[#allocation5 + $0x30] sm:$0xff]  ;;  %v2599_v26 = vld [vmem:[#allocation5 + $0x28] sm:$0xff] }
  0x44   :  { %575 = vmatpush.bf16.msrb.mxu0 %v1837_v32  ;;  %v1905_v21 = vor.u32 %v2563_v16, %v1902_v17  ;;  %v2601_v22 = vld [vmem:[#allocation5 + $0x38] sm:$0xff]  ;;  %v2608_v25 = vld [vmem:[#allocation5 + $0x70] sm:$0xff]  ;;  %v2607_v27 = vld [vmem:[#allocation5 + $0x68] sm:$0xff] }
  0x45   :  { %589 = vmatpush.bf16.msrb.mxu1 %v1965_v33  ;;  %v2609_v23 = vld [vmem:[#allocation5 + $0x78] sm:$0xff]  ;;  %v2598_v28 = vld [vmem:[#allocation5 + $0x20] sm:$0xff]  ;;  %v2596_v31 = vld [vmem:[#allocation5 + $0x10] sm:$0xff] }
  0x46   :  { %603 = vmatpush.bf16.msrb.mxu2 %v1841_v34  ;;  %v2597_v29 = vld [vmem:[#allocation5 + $0x18] sm:$0xff]  ;;  %v2606_v30 = vld [vmem:[#allocation5 + $0x60] sm:$0xff]  ;;  %v2595_v33 = vld [vmem:[#allocation5 + $0x8] sm:$0xff] }
  0x47   :  { %617 = vmatpush.bf16.msrb.mxu3 %v1969_v38  ;;  %v2605_v32 = vld [vmem:[#allocation5 + $0x58] sm:$0xff]  ;;  %v2603_v35 = vld [vmem:[#allocation5 + $0x48] sm:$0xff]  ;;  %v2616_v36 = vld [vmem:[#allocation5 + $0xb0] sm:$0xff] }
  0x48   :  { %576 = vmatpush.bf16.msrb.mxu0 %v1821_v44  ;;  %v2617_v34 = vld [vmem:[#allocation5 + $0xb8] sm:$0xff]  ;;  %v2602_v37 = vld [vmem:[#allocation5 + $0x40] sm:$0xff]  ;;  %v2615_v39 = vld [vmem:[#allocation5 + $0xa8] sm:$0xff] }
  0x49   :  { %590 = vmatpush.bf16.msrb.mxu1 %v1949_v45  ;;  %v2625_v38 = vld [vmem:[#allocation5 + $0xf8] sm:$0xff]  ;;  %v2624_v40 = vld [vmem:[#allocation5 + $0xf0] sm:$0xff]  ;;  %v2614_v41 = vld [vmem:[#allocation5 + $0xa0] sm:$0xff] }
  0x4a   :  { %604 = vmatpush.bf16.msrb.mxu2 %v1825_v46  ;;  %v2988_v42 = vld [vmem:[%s3016_s4] sm:$0xf]  ;;  %v2623_v43 = vld [vmem:[#allocation5 + $0xe8] sm:$0xff]  ;;  %v2613_v44 = vld [vmem:[#allocation5 + $0x98] sm:$0xff] }
  0x4b   :  { %618 = vmatpush.bf16.msrb.mxu3 %v1953_v50  ;;  %v188_v45 = vperm.slane %v2988_v42, 0  ;;  %v2622_v47 = vld [vmem:[#allocation5 + $0xe0] sm:$0xff]  ;;  %v2612_v49 = vld [vmem:[#allocation5 + $0x90] sm:$0xff]  ;;  %v189_v51 = vperm.slane %v2988_v42, 1  ;;  %v2621_v52 = vld [vmem:[#allocation5 + $0xd8] sm:$0xff]  ;;  %v190_v16 = vperm.slane %v2988_v42, 2 }
  0x4c   :  { %577 = vmatpush.bf16.msrb.mxu0 %v1805_v56  ;;  %v2611_v55 = vld [vmem:[#allocation5 + $0x88] sm:$0xff]  ;;  %v2620_v59 = vld [vmem:[#allocation5 + $0xd0] sm:$0xff] }
  0x4d   :  { %591 = vmatpush.bf16.msrb.mxu1 %v1933_v57  ;;  %v2619_v2 = vld [vmem:[#allocation5 + $0xc8] sm:$0xff] }
  0x4e   :  { %605 = vmatpush.bf16.msrb.mxu2 %v1809_v58 }
  0x4f   :  { %619 = vmatpush.bf16.msrb.mxu3 %v1937_v62  ;;  %v2610_v62 = vld [vmem:[#allocation5 + $0x80] sm:$0xff] }
  0x50   :  { %578 = vmatpush.bf16.msrb.mxu0 %v1789_v6 }
  0x51   :  { %592 = vmatpush.bf16.msrb.mxu1 %v1917_v7 }
  0x52   :  { %606 = vmatpush.bf16.msrb.mxu2 %v1793_v8 }
  0x53   :  { %620 = vmatpush.bf16.msrb.mxu3 %v1921_v12  ;;  %v2618_v12 = vld [vmem:[#allocation5 + $0xc0] sm:$0xff] }
  0x54   :  { %579 = vmatpush.bf16.msrb.mxu0 %v1773_v18 }
  0x55   :  { %593 = vmatpush.bf16.msrb.mxu1 %v1901_v19 }
  0x56   :  { %607 = vmatpush.bf16.msrb.mxu2 %v1777_v20  ;;  %v191_v20 = vperm.slane %v2988_v42, 3  ;;  %v2268_v42 = vld [vmem:[#allocation7 + $0xe8] sm:$0xf] }
  0x57   :  { %621 = vmatpush.bf16.msrb.mxu3 %v1905_v21  ;;  %580 = vmatmul.bf16.vlgmr.msrb.gmra.mxu0 %v2973_v4 }
  0x58   :  { %900 = vmatpush.bf16.msra.mxu0 %v2601_v22  ;;  %594 = vmatmul.bf16.vlgmr.msrb.gmra.mxu1 %v2975_v5 }
  0x59   :  { %914 = vmatpush.bf16.msra.mxu1 %v2609_v23  ;;  %608 = vmatmul.bf16.vlgmr.msrb.gmra.mxu2 %v2973_v4  ;;  %v2604_v4 = vld [vmem:[#allocation5 + $0x50] sm:$0xff] }
  0x5a   :  { %622 = vmatmul.bf16.vlgmr.msrb.gmra.mxu3 %v2975_v5  ;;  %v2594_v5 = vld [vmem:[#allocation5] sm:$0xff]  ;;  %928 = vmatpush.bf16.msra.mxu2 %v2617_v34 }
  0x5b   :  { %942 = vmatpush.bf16.msra.mxu3 %v2625_v38  ;;  %v2656_v38 = vld [vmem:[#allocation7 + $0xec] sm:$0xf0] }
  0x5c   :  { %901 = vmatpush.bf16.msra.mxu0 %v2600_v24 }
  0x5d   :  { %915 = vmatpush.bf16.msra.mxu1 %v2608_v25 }
  0x5e   :  { %929 = vmatpush.bf16.msra.mxu2 %v2616_v36 }
  0x5f   :  { %943 = vmatpush.bf16.msra.mxu3 %v2624_v40 }
  0x60   :  { %902 = vmatpush.bf16.msra.mxu0 %v2599_v26 }
  0x61   :  { %916 = vmatpush.bf16.msra.mxu1 %v2607_v27 }
  0x62   :  { %930 = vmatpush.bf16.msra.mxu2 %v2615_v39  ;;  %v2654_v39 = vld [vmem:[#allocation7 + $0xe4] sm:$0xf] }
  0x63   :  { %944 = vmatpush.bf16.msra.mxu3 %v2623_v43  ;;  %v2657_v43 = vld [vmem:[#allocation7 + $0xf4] sm:$0xf0] }
  0x64   :  { %903 = vmatpush.bf16.msra.mxu0 %v2598_v28 }
  0x65   :  { %917 = vmatpush.bf16.msra.mxu1 %v2606_v30 }
  0x66   :  { %931 = vmatpush.bf16.msra.mxu2 %v2614_v41  ;;  %v2262_v41 = vld [vmem:[#allocation7 + $0xf0] sm:$0xf0] }
  0x67   :  { %945 = vmatpush.bf16.msra.mxu3 %v2622_v47  ;;  %v2270_v47 = vld [vmem:[#allocation7 + $0xf8] sm:$0xf0] }
  0x68   :  { %904 = vmatpush.bf16.msra.mxu0 %v2597_v29 }
  0x69   :  { %918 = vmatpush.bf16.msra.mxu1 %v2605_v32 }
  0x6a   :  { %932 = vmatpush.bf16.msra.mxu2 %v2613_v44  ;;  %v2265_v44 = vor.u32 %v2654_v39, %v2262_v41  ;;  %v2635_v41 = vld [vmem:[#allocation7 + $0x4c] sm:$0xf] }
  0x6b   :  { %946 = vmatpush.bf16.msra.mxu3 %v2621_v52  ;;  %v2246_v52 = vld [vmem:[#allocation7 + $0xd0] sm:$0xf0] }
  0x6c   :  { %905 = vmatpush.bf16.msra.mxu0 %v2596_v31 }
  0x6d   :  { %919 = vmatpush.bf16.msra.mxu1 %v2604_v4 }
  0x6e   :  { %933 = vmatpush.bf16.msra.mxu2 %v2612_v49 }
  0x6f   :  { %947 = vmatpush.bf16.msra.mxu3 %v2620_v59  ;;  %v2254_v59 = vld [vmem:[#allocation7 + $0xd8] sm:$0xf0] }
  0x70   :  { %906 = vmatpush.bf16.msra.mxu0 %v2595_v33 }
  0x71   :  { %920 = vmatpush.bf16.msra.mxu1 %v2603_v35 }
  0x72   :  { %934 = vmatpush.bf16.msra.mxu2 %v2611_v55  ;;  %v2252_v55 = vld [vmem:[#allocation7 + $0xc8] sm:$0xf] }
  0x73   :  { %948 = vmatpush.bf16.msra.mxu3 %v2619_v2 }
  0x74   :  { %907 = vmatpush.bf16.msra.mxu0 %v2594_v5 }
  0x75   :  { %921 = vmatpush.bf16.msra.mxu1 %v2602_v37  ;;  %v2260_v37 = vld [vmem:[#allocation7 + $0xe0] sm:$0xf] }
  0x76   :  { %935 = vmatpush.bf16.msra.mxu2 %v2610_v62  ;;  %v2261_v40 = vor.u32 %v2656_v38, %v2260_v37  ;;  %v2182_v37 = vld [vmem:[#allocation7 + $0x50] sm:$0xf0]  ;;  %v2188_v38 = vld [vmem:[#allocation7 + $0x48] sm:$0xf] }
  0x77   :  { %949 = vmatpush.bf16.msra.mxu3 %v2618_v12  ;;  %v2644_v12 = vld [vmem:[#allocation7 + $0x8c] sm:$0xf0] }
  0x78   :  { %1167 = vmatpush.bf16.msrb.mxu0 %v2261_v40  ;;  %v2637_v40 = vld [vmem:[#allocation7 + $0x54] sm:$0xf0] }
  0x79   :  { %1181 = vmatpush.bf16.msrb.mxu1 %v2265_v44 }
  0xb4   :  { %v525_v46 = vpop.f32.mrf.mxu0 }
  0xb5   :  { %v539_v48 = vpop.f32.mrf.mxu1  ;;  %v526_v50 = vadd.f32 %v525_v46, %v188_v45  ;;  %v2655_v46 = vld [vmem:[#allocation7 + $0xec] sm:$0xf] }
  0xb6   :  { %v2273_v49 = vor.u32 %v2655_v46, %v2270_v47  ;;  %v2632_v46 = vld [vmem:[#allocation7 + $0x2c] sm:$0xf0]  ;;  %v2630_v47 = vld [vmem:[#allocation7 + $0x24] sm:$0xf] }
  0xb7   :  { %v540_v56 = vadd.f32 %v539_v48, %v526_v50  ;;  %v2244_v48 = vld [vmem:[#allocation7 + $0xc0] sm:$0xf]  ;;  %v2652_v50 = vld [vmem:[#allocation7 + $0xcc] sm:$0xf0] }
  0xb8   :  { %1209 = vmatpush.bf16.msrb.mxu3 %v2273_v49  ;;  %v2166_v49 = vld [vmem:[#allocation7 + $0x30] sm:$0xf0] }
  0xb9   :  { %v628_v63 = vmax.f32 %v540_v56, 0.0  ;;  %v2653_v56 = vld [vmem:[#allocation7 + $0xd4] sm:$0xf0] }
  0xbc   :  { %v553_v53 = vpop.f32.mrf.mxu2  ;;  %v527_v58 = vpop.f32.mrf.mxu0 }
  0xbd   :  { %v567_v54 = vpop.f32.mrf.mxu3  ;;  %v554_v57 = vadd.f32 %v553_v53, %v189_v51  ;;  %v528_v60 = vadd.f32 %v527_v58, %v188_v45  ;;  %v541_v61 = vpop.f32.mrf.mxu1  ;;  %v2269_v45 = vor.u32 %v2657_v43, %v2268_v42  ;;  %v2245_v53 = vor.u32 %v2652_v50, %v2244_v48  ;;  %v2190_v42 = vld [vmem:[#allocation7 + $0x58] sm:$0xf0]  ;;  %v2172_v50 = vld [vmem:[#allocation7 + $0x28] sm:$0xf] }
  0xbe   :  { %v2253_v58 = vor.u32 %v2653_v56, %v2252_v55  ;;  %v2189_v43 = vor.u32 %v2637_v40, %v2188_v38  ;;  %v2193_v44 = vor.u32 %v2635_v41, %v2190_v42  ;;  %v2174_v55 = vld [vmem:[#allocation7 + $0x38] sm:$0xf0]  ;;  %v2701_v40 = vld [vmem:[#allocation8 + $0x154] sm:$0xf0]  ;;  %v2508_v41 = vld [vmem:[#allocation8 + $0x1d0] sm:$0xf] }
  0xbf   :  { %v542_v0 = vadd.f32 %v541_v61, %v528_v60  ;;  %v568_v1 = vadd.f32 %v567_v54, %v554_v57  ;;  %1195 = vmatpush.bf16.msrb.mxu2 %v2269_v45  ;;  %v2651_v57 = vld [vmem:[#allocation7 + $0xcc] sm:$0xf]  ;;  %v2228_v60 = vld [vmem:[#allocation7 + $0xa0] sm:$0xf]  ;;  %v2648_v61 = vld [vmem:[#allocation7 + $0xac] sm:$0xf0]  ;;  %1168 = vmatpush.bf16.msrb.mxu0 %v2245_v53 }
  0xc0   :  { %v2257_v62 = vor.u32 %v2651_v57, %v2254_v59  ;;  %v2229_v2 = vor.u32 %v2648_v61, %v2228_v60  ;;  %v2164_v45 = vld [vmem:[#allocation7 + $0x20] sm:$0xf]  ;;  %v2626_v60 = vld [vmem:[#allocation7 + $0x4] sm:$0xf]  ;;  %v2150_v61 = vld [vmem:[#allocation7 + $0x10] sm:$0xf0] }
  0xc1   :  { %v632_v3 = vmax.f32 %v542_v0, 0.0  ;;  %v629_v10 = vmax.f32 %v568_v1, 0.0  ;;  %v2230_v0 = vld [vmem:[#allocation7 + $0xb0] sm:$0xf0]  ;;  %v2236_v1 = vld [vmem:[#allocation7 + $0xa8] sm:$0xf]  ;;  %v2165_v48 = vor.u32 %v2632_v46, %v2164_v45 }
  0xc2   :  { %1210 = vmatpush.bf16.msrb.mxu3 %v2257_v62  ;;  %v2148_v57 = vld [vmem:[#allocation7] sm:$0xf]  ;;  %v2156_v62 = vld [vmem:[#allocation7 + $0x8] sm:$0xf] }
  0xc3   :  { %v636_v9 = vpack.c.bf16 %v632_v3, %v628_v63  ;;  %v2646_v63 = vld [vmem:[#allocation7 + $0xa4] sm:$0xf]  ;;  %v2649_v3 = vld [vmem:[#allocation7 + $0xb4] sm:$0xf0]  ;;  %1196 = vmatpush.bf16.msrb.mxu2 %v2253_v58  ;;  %1169 = vmatpush.bf16.msrb.mxu0 %v2229_v2  ;;  %v2628_v58 = vld [vmem:[#allocation7 + $0xc] sm:$0xf0] }
  0xc4   :  { %v555_v6 = vpop.f32.mrf.mxu2  ;;  %v2149_v59 = vor.u32 %v2628_v58, %v2148_v57  ;;  %v2158_v2 = vld [vmem:[#allocation7 + $0x18] sm:$0xf0]  ;;  %v2372_v42 = vld [vmem:[#allocation8 + $0xc0] sm:$0xf]  ;;  %v2364_v57 = vld [vmem:[#allocation8 + $0xb0] sm:$0xf] }
  0xc5   :  { %v556_v7 = vadd.f32 %v555_v6, %v189_v51  ;;  %v569_v8 = vpop.f32.mrf.mxu3  ;;  %908 = vmatmul.bf16.vlgmr.msra.gmra.mxu0 %v636_v9  ;;  %v2650_v51 = vld [vmem:[#allocation7 + $0xc4] sm:$0xf]  ;;  %v2647_v6 = vld [vmem:[#allocation7 + $0xac] sm:$0xf]  ;;  %v2237_v9 = vor.u32 %v2649_v3, %v2236_v1  ;;  %v2737_v45 = vld [vmem:[%s3018_s6] ss:$0 sm:$0xff] }
  0xc6   :  { %v2249_v54 = vor.u32 %v2650_v51, %v2246_v52  ;;  %v2633_v51 = vld [vmem:[#allocation7 + $0x34] sm:$0xf0]  ;;  %v2169_v52 = vor.u32 %v2630_v47, %v2166_v49  ;;  %v2627_v1 = vld [vmem:[#allocation7 + $0xc] sm:$0xf]  ;;  %v2436_v49 = vld [vmem:[#allocation8 + $0x140] sm:$0xf] }
  0xc7   :  { %v570_v11 = vadd.f32 %v569_v8, %v556_v7  ;;  %v2238_v7 = vld [vmem:[#allocation7 + $0xb8] sm:$0xf0]  ;;  %v2233_v8 = vor.u32 %v2646_v63, %v2230_v0  ;;  %1197 = vmatpush.bf16.msrb.mxu2 %v2237_v9  ;;  %v2173_v53 = vor.u32 %v2633_v51, %v2172_v50  ;;  %v2153_v63 = vor.u32 %v2626_v60, %v2150_v61  ;;  %v2629_v0 = vld [vmem:[#allocation7 + $0x14] sm:$0xf0]  ;;  %v2396_v9 = vld [vmem:[#allocation8 + $0xf0] sm:$0xf] }
  0xc8   :  { %1182 = vmatpush.bf16.msrb.mxu1 %v2249_v54  ;;  %v2631_v54 = vld [vmem:[#allocation7 + $0x2c] sm:$0xf]  ;;  %v2157_v3 = vor.u32 %v2629_v0, %v2156_v62  ;;  %v2699_v51 = vld [vmem:[#allocation8 + $0x144] sm:$0xf0]  ;;  %v2681_v58 = vld [vmem:[#allocation8 + $0xb4] sm:$0xf0] }
  0xc9   :  { %v633_v13 = vmax.f32 %v570_v11, 0.0  ;;  %v2212_v11 = vld [vmem:[#allocation7 + $0x80] sm:$0xf]  ;;  %v2177_v56 = vor.u32 %v2631_v54, %v2174_v55  ;;  %v2300_v55 = vld [vmem:[#allocation8 + $0x30] sm:$0xf]  ;;  %v2437_v60 = vor.u32 %v2699_v51, %v2436_v49 }
  0xca   :  { %v2428_v62 = vld [vmem:[#allocation8 + $0x130] sm:$0xf]  ;;  %v2334_v51 = vld [vmem:[#allocation8 + $0x78] sm:$0xf0] }
  0xcb   :  { %v637_v14 = vpack.c.bf16 %v633_v13, %v629_v10  ;;  %v2241_v10 = vor.u32 %v2647_v6, %v2238_v7  ;;  %v2642_v13 = vld [vmem:[#allocation7 + $0x84] sm:$0xf]  ;;  %v2161_v6 = vor.u32 %v2627_v1, %v2158_v2  ;;  %v2332_v7 = vld [vmem:[#allocation8 + $0x70] sm:$0xf]  ;;  %v2697_v1 = vld [vmem:[#allocation8 + $0x134] sm:$0xf0] }
  0xcc   :  { %1183 = vmatpush.bf16.msrb.mxu1 %v2233_v8  ;;  %v2673_v8 = vld [vmem:[#allocation8 + $0x74] sm:$0xf0]  ;;  %v2492_v2 = vld [vmem:[#allocation8 + $0x1b0] sm:$0xf] }
  0xcd   :  { %922 = vmatmul.bf16.vlgmr.msra.gmra.mxu1 %v637_v14  ;;  %1211 = vmatpush.bf16.msrb.mxu3 %v2241_v10  ;;  %v2213_v14 = vor.u32 %v2644_v12, %v2212_v11  ;;  %v2333_v10 = vor.u32 %v2673_v8, %v2332_v7  ;;  %v2689_v11 = vld [vmem:[#allocation8 + $0xf4] sm:$0xf0]  ;;  %v2324_v12 = vld [vmem:[#allocation8 + $0x60] sm:$0xf]  ;;  %v2365_v8 = vor.u32 %v2681_v58, %v2364_v57 }
  0xcf   :  { %1170 = vmatpush.bf16.msrb.mxu0 %v2213_v14  ;;  %v2397_v14 = vor.u32 %v2689_v11, %v2396_v9  ;;  %v2292_v9 = vld [vmem:[#allocation8 + $0x20] sm:$0xf] }
  0xd0   :  { %v2356_v11 = vld [vmem:[#allocation8 + $0xa0] sm:$0xf] }
  0xd4   :  { %v581_v15 = vpop.f32.mrf.mxu0 }
  0xd5   :  { %v595_v17 = vpop.f32.mrf.mxu1  ;;  %v582_v18 = vadd.f32 %v581_v15, %v190_v16  ;;  %v2214_v15 = vld [vmem:[#allocation7 + $0x90] sm:$0xf0] }
  0xd7   :  { %v596_v23 = vadd.f32 %v595_v17, %v582_v18  ;;  %v2645_v17 = vld [vmem:[#allocation7 + $0x94] sm:$0xf0]  ;;  %v2217_v18 = vor.u32 %v2642_v13, %v2214_v15  ;;  %v2671_v13 = vld [vmem:[#allocation8 + $0x64] sm:$0xf0]  ;;  %v2388_v15 = vld [vmem:[#allocation8 + $0xe0] sm:$0xf] }
  0xd9   :  { %v630_v28 = vmax.f32 %v596_v23, 0.0  ;;  %1184 = vmatpush.bf16.msrb.mxu1 %v2217_v18  ;;  %v2196_v23 = vld [vmem:[#allocation7 + $0x60] sm:$0xf]  ;;  %v2325_v18 = vor.u32 %v2671_v13, %v2324_v12  ;;  %v2679_v12 = vld [vmem:[#allocation8 + $0xa4] sm:$0xf0] }
  0xdc   :  { %v609_v19 = vpop.f32.mrf.mxu2  ;;  %v583_v22 = vpop.f32.mrf.mxu0 }
  0xdd   :  { %v623_v21 = vpop.f32.mrf.mxu3  ;;  %v584_v24 = vadd.f32 %v583_v22, %v190_v16  ;;  %v597_v25 = vpop.f32.mrf.mxu1  ;;  %v610_v27 = vadd.f32 %v609_v19, %v191_v20  ;;  %v2220_v16 = vld [vmem:[#allocation7 + $0x88] sm:$0xf] }
  0xde   :  { %v2221_v19 = vor.u32 %v2645_v17, %v2220_v16  ;;  %v2687_v16 = vld [vmem:[#allocation8 + $0xe4] sm:$0xf0]  ;;  %v2460_v17 = vld [vmem:[#allocation8 + $0x170] sm:$0xf] }
  0xdf   :  { %v598_v26 = vadd.f32 %v597_v25, %v584_v24  ;;  %v624_v32 = vadd.f32 %v623_v21, %v610_v27  ;;  %v2222_v21 = vld [vmem:[#allocation7 + $0x98] sm:$0xf0]  ;;  %v2640_v24 = vld [vmem:[#allocation7 + $0x6c] sm:$0xf0]  ;;  %v2638_v25 = vld [vmem:[#allocation7 + $0x64] sm:$0xf] }
  0xe0   :  { %1198 = vmatpush.bf16.msrb.mxu2 %v2221_v19  ;;  %v2198_v27 = vld [vmem:[#allocation7 + $0x70] sm:$0xf0]  ;;  %v2705_v19 = vld [vmem:[#allocation8 + $0x174] sm:$0xf0] }
  0xe1   :  { %v634_v29 = vmax.f32 %v598_v26, 0.0  ;;  %v631_v34 = vmax.f32 %v624_v32, 0.0  ;;  %v2197_v26 = vor.u32 %v2640_v24, %v2196_v23  ;;  %v2206_v32 = vld [vmem:[#allocation7 + $0x78] sm:$0xf0]  ;;  %v2461_v23 = vor.u32 %v2705_v19, %v2460_v17  ;;  %v2420_v17 = vld [vmem:[#allocation8 + $0x120] sm:$0xf] }
  0xe3   :  { %v638_v30 = vpack.c.bf16 %v634_v29, %v630_v28  ;;  %v2204_v28 = vld [vmem:[#allocation7 + $0x68] sm:$0xf]  ;;  %v2201_v29 = vor.u32 %v2638_v25, %v2198_v27  ;;  %1171 = vmatpush.bf16.msrb.mxu0 %v2197_v26  ;;  %v2316_v25 = vld [vmem:[#allocation8 + $0x50] sm:$0xf]  ;;  %v2669_v26 = vld [vmem:[#allocation8 + $0x54] sm:$0xf0] }
  0xe4   :  { %v611_v31 = vpop.f32.mrf.mxu2  ;;  %v2380_v27 = vld [vmem:[#allocation8 + $0xd0] sm:$0xf] }
  0xe5   :  { %v612_v33 = vadd.f32 %v611_v31, %v191_v20  ;;  %v625_v4 = vpop.f32.mrf.mxu3  ;;  %936 = vmatmul.bf16.vlgmr.msra.gmra.mxu2 %v638_v30  ;;  %v2643_v20 = vld [vmem:[#allocation7 + $0x8c] sm:$0xf]  ;;  %v2641_v30 = vld [vmem:[#allocation7 + $0x74] sm:$0xf0]  ;;  %1185 = vmatpush.bf16.msrb.mxu1 %v2201_v29  ;;  %v2452_v29 = vld [vmem:[#allocation8 + $0x160] sm:$0xf] }
  0xe6   :  { %v2225_v22 = vor.u32 %v2643_v20, %v2222_v21  ;;  %v2639_v31 = vld [vmem:[#allocation7 + $0x6c] sm:$0xf]  ;;  %v2524_v20 = vld [vmem:[#allocation8 + $0x1f0] sm:$0xf]  ;;  %v2721_v21 = vld [vmem:[#allocation8 + $0x1f4] sm:$0xf0] }
  0xe7   :  { %v626_v5 = vadd.f32 %v625_v4, %v612_v33  ;;  %v2205_v33 = vor.u32 %v2641_v30, %v2204_v28  ;;  %v2209_v4 = vor.u32 %v2639_v31, %v2206_v32  ;;  %v2525_v24 = vor.u32 %v2721_v21, %v2524_v20  ;;  %v2685_v28 = vld [vmem:[#allocation8 + $0xd4] sm:$0xf0]  ;;  %v2703_v30 = vld [vmem:[#allocation8 + $0x164] sm:$0xf0] }
  0xe8   :  { %1212 = vmatpush.bf16.msrb.mxu3 %v2225_v22  ;;  %v2389_v22 = vor.u32 %v2687_v16, %v2388_v15  ;;  %v2453_v32 = vor.u32 %v2703_v30, %v2452_v29  ;;  %v2381_v38 = vor.u32 %v2685_v28, %v2380_v27  ;;  %v2429_v15 = vor.u32 %v2697_v1, %v2428_v62  ;;  %v2284_v27 = vld [vmem:[#allocation8 + $0x10] sm:$0xf]  ;;  %v2661_v28 = vld [vmem:[#allocation8 + $0x14] sm:$0xf0]  ;;  %v2670_v62 = vld [vmem:[#allocation8 + $0x64] sm:$0xf] }
  0xe9   :  { %v635_v35 = vmax.f32 %v626_v5, 0.0  ;;  %v2180_v5 = vld [vmem:[#allocation7 + $0x40] sm:$0xf]  ;;  %1199 = vmatpush.bf16.msrb.mxu2 %v2205_v33 }
  0xea   :  { %v2516_v33 = vld [vmem:[#allocation8 + $0x1e0] sm:$0xf] }
  0xeb   :  { %v639_v36 = vpack.c.bf16 %v635_v35, %v631_v34  ;;  %v2636_v34 = vld [vmem:[#allocation7 + $0x4c] sm:$0xf0] }
  0xec   :  { %1213 = vmatpush.bf16.msrb.mxu3 %v2209_v4  ;;  %v2181_v35 = vor.u32 %v2636_v34, %v2180_v5  ;;  %v2719_v4 = vld [vmem:[#allocation8 + $0x1e4] sm:$0xf0]  ;;  %v2317_v5 = vor.u32 %v2669_v26, %v2316_v25  ;;  %v2357_v26 = vor.u32 %v2679_v12, %v2356_v11  ;;  %v2704_v12 = vld [vmem:[#allocation8 + $0x174] sm:$0xf] }
  0xed   :  { %950 = vmatmul.bf16.vlgmr.msra.gmra.mxu3 %v639_v36  ;;  %v2634_v36 = vld [vmem:[#allocation7 + $0x44] sm:$0xf]  ;;  %1200 = vmatpush.bf16.msrb.mxu2 %v2189_v43  ;;  %v2517_v34 = vor.u32 %v2719_v4, %v2516_v33  ;;  %v2683_v43 = vld [vmem:[#allocation8 + $0xc4] sm:$0xf0] }
  0xee   :  { %v2185_v39 = vor.u32 %v2634_v36, %v2182_v37  ;;  %1172 = vmatpush.bf16.msrb.mxu0 %v2181_v35  ;;  %v2308_v35 = vld [vmem:[#allocation8 + $0x40] sm:$0xf]  ;;  %v2667_v36 = vld [vmem:[#allocation8 + $0x44] sm:$0xf0]  ;;  %v2373_v54 = vor.u32 %v2683_v43, %v2372_v42 }
  0xef   :  { %v2309_v50 = vor.u32 %v2667_v36, %v2308_v35  ;;  %v2659_v42 = vld [vmem:[#allocation8 + $0x4] sm:$0xf0]  ;;  %v2340_v43 = vld [vmem:[#allocation8 + $0x80] sm:$0xf] }
  0xf0   :  { %1186 = vmatpush.bf16.msrb.mxu1 %v2185_v39  ;;  %1214 = vmatpush.bf16.msrb.mxu3 %v2193_v44  ;;  %v2444_v39 = vld [vmem:[#allocation8 + $0x150] sm:$0xf]  ;;  %v2717_v44 = vld [vmem:[#allocation8 + $0x1d4] sm:$0xf0] }
  0xf1   :  { %1201 = vmatpush.bf16.msrb.mxu2 %v2173_v53  ;;  %v2445_v47 = vor.u32 %v2701_v40, %v2444_v39  ;;  %v2715_v53 = vld [vmem:[#allocation8 + $0x1c4] sm:$0xf0] }
  0xf2   :  { %1173 = vmatpush.bf16.msrb.mxu0 %v2165_v48  ;;  %v2509_v48 = vor.u32 %v2717_v44, %v2508_v41  ;;  %v2276_v41 = vld [vmem:[#allocation8] sm:$0xf]  ;;  %v2675_v44 = vld [vmem:[#allocation8 + $0x84] sm:$0xf0] }
  0xf3   :  { %v2341_v49 = vor.u32 %v2675_v44, %v2340_v43  ;;  %v2366_v44 = vld [vmem:[#allocation8 + $0xb8] sm:$0xf0] }
  0xf4   :  { %1187 = vmatpush.bf16.msrb.mxu1 %v2169_v52  ;;  %1215 = vmatpush.bf16.msrb.mxu3 %v2177_v56  ;;  %v2500_v52 = vld [vmem:[#allocation8 + $0x1c0] sm:$0xf]  ;;  %v2665_v56 = vld [vmem:[#allocation8 + $0x34] sm:$0xf0] }
  0xf5   :  { %1202 = vmatpush.bf16.msrb.mxu2 %v2157_v3  ;;  %v2501_v61 = vor.u32 %v2715_v53, %v2500_v52  ;;  %v2301_v0 = vor.u32 %v2665_v56, %v2300_v55  ;;  %v2713_v3 = vld [vmem:[#allocation8 + $0x1b4] sm:$0xf0]  ;;  %v2688_v52 = vld [vmem:[#allocation8 + $0xf4] sm:$0xf]  ;;  %v2412_v55 = vld [vmem:[#allocation8 + $0x110] sm:$0xf] }
  0xf6   :  { %1174 = vmatpush.bf16.msrb.mxu0 %v2149_v59  ;;  %v2723_v59 = vld [vmem:[%s3014_s2] sm:$0xff]   ;;  %v2493_v16 = vor.u32 %v2713_v3, %v2492_v2  ;;  %v2693_v56 = vld [vmem:[#allocation8 + $0x114] sm:$0xf0]  ;;  %v2390_v2 = vld [vmem:[#allocation8 + $0xe8] sm:$0xf0] }
  0xf7   :  { %v2725_v20 = vunpack.c.h.bf16 %v2723_v59  ;;  %v2413_v58 = vor.u32 %v2693_v56, %v2412_v55  ;;  %v2404_v3 = vld [vmem:[#allocation8 + $0x100] sm:$0xf]  ;;  %v2358_v56 = vld [vmem:[#allocation8 + $0xa8] sm:$0xf0] }
  0xf8   :  { %1188 = vmatpush.bf16.msrb.mxu1 %v2153_v63  ;;  %1216 = vmatpush.bf16.msrb.mxu3 %v2161_v6 }
  0xf9   :  { %1653 = vmatpush.bf16.msra.mxu2 %v2461_v23  ;;  %v2484_v23 = vld [vmem:[#allocation8 + $0x1a0] sm:$0xf]  ;;  %v961_v36 = vmul.f32 0.05, %v2725_v20  ;;  %v2684_v20 = vld [vmem:[#allocation8 + $0xd4] sm:$0xf] }
  0xfa   :  { %1625 = vmatpush.bf16.msra.mxu0 %v2333_v10  ;;  %v2663_v10 = vld [vmem:[#allocation8 + $0x24] sm:$0xf0] }
  0xfb   :  { %v2293_v21 = vor.u32 %v2663_v10, %v2292_v9  ;;  %v2468_v9 = vld [vmem:[#allocation8 + $0x180] sm:$0xf]  ;;  %v2707_v10 = vld [vmem:[#allocation8 + $0x184] sm:$0xf0] }
  0xfc   :  { %1639 = vmatpush.bf16.msra.mxu1 %v2397_v14  ;;  %1667 = vmatpush.bf16.msra.mxu3 %v2525_v24  ;;  %v2724_v14 = vunpack.c.l.bf16 %v2723_v59  ;;  %v2711_v24 = vld [vmem:[#allocation8 + $0x1a4] sm:$0xf0]  ;;  %v2476_v59 = vld [vmem:[#allocation8 + $0x190] sm:$0xf]  ;;  %v2469_v11 = vor.u32 %v2707_v10, %v2468_v9 }
  0xfd   :  { %1654 = vmatpush.bf16.msra.mxu2 %v2453_v32  ;;  %v2677_v32 = vld [vmem:[#allocation8 + $0x94] sm:$0xf0] }
  0xfe   :  { %1626 = vmatpush.bf16.msra.mxu0 %v2325_v18  ;;  %v960_v33 = vmul.f32 0.05, %v2724_v14  ;;  %v2720_v14 = vld [vmem:[#allocation8 + $0x1f4] sm:$0xf] }
 0x100   :  { %1640 = vmatpush.bf16.msra.mxu1 %v2389_v22  ;;  %1668 = vmatpush.bf16.msra.mxu3 %v2517_v34  ;;  %v2695_v22 = vld [vmem:[#allocation8 + $0x124] sm:$0xf0] }
 0x101   :  { %1655 = vmatpush.bf16.msra.mxu2 %v2445_v47  ;;  %v2421_v4 = vor.u32 %v2695_v22, %v2420_v17  ;;  %v2668_v17 = vld [vmem:[#allocation8 + $0x54] sm:$0xf] }
 0x102   :  { %1627 = vmatpush.bf16.msra.mxu0 %v2317_v5  ;;  %v2485_v5 = vor.u32 %v2711_v24, %v2484_v23  ;;  %v2702_v24 = vld [vmem:[#allocation8 + $0x164] sm:$0xf] }
 0x104   :  { %1641 = vmatpush.bf16.msra.mxu1 %v2381_v38  ;;  %1669 = vmatpush.bf16.msra.mxu3 %v2509_v48  ;;  %v2277_v48 = vor.u32 %v2659_v42, %v2276_v41  ;;  %v2302_v41 = vld [vmem:[#allocation8 + $0x38] sm:$0xf0]  ;;  %v2680_v42 = vld [vmem:[#allocation8 + $0xb4] sm:$0xf] }
 0x105   :  { %1656 = vmatpush.bf16.msra.mxu2 %v2437_v60  ;;  %v2709_v60 = vld [vmem:[#allocation8 + $0x194] sm:$0xf0] }
 0x106   :  { %1628 = vmatpush.bf16.msra.mxu0 %v2309_v50  ;;  %v2672_v50 = vld [vmem:[#allocation8 + $0x74] sm:$0xf] }
 0x107   :  { %v2337_v53 = vor.u32 %v2672_v50, %v2334_v51  ;;  %v2502_v50 = vld [vmem:[#allocation8 + $0x1c8] sm:$0xf0] }
 0x108   :  { %1642 = vmatpush.bf16.msra.mxu1 %v2373_v54  ;;  %1670 = vmatpush.bf16.msra.mxu3 %v2501_v61  ;;  %v2398_v54 = vld [vmem:[#allocation8 + $0xf8] sm:$0xf0]  ;;  %v2477_v61 = vor.u32 %v2709_v60, %v2476_v59  ;;  %v2712_v60 = vld [vmem:[#allocation8 + $0x1b4] sm:$0xf] }
 0x109   :  { %1657 = vmatpush.bf16.msra.mxu2 %v2429_v15  ;;  %v2401_v57 = vor.u32 %v2688_v52, %v2398_v54  ;;  %v2662_v52 = vld [vmem:[#allocation8 + $0x24] sm:$0xf]  ;;  %v2430_v59 = vld [vmem:[#allocation8 + $0x138] sm:$0xf0] }
 0x10a   :  { %1629 = vmatpush.bf16.msra.mxu0 %v2301_v0  ;;  %v2686_v0 = vld [vmem:[#allocation8 + $0xe4] sm:$0xf] }
 0x10b   :  { %v2678_v54 = vld [vmem:[#allocation8 + $0xa4] sm:$0xf] }
 0x10c   :  { %1643 = vmatpush.bf16.msra.mxu1 %v2365_v8  ;;  %1671 = vmatpush.bf16.msra.mxu3 %v2493_v16  ;;  %v2526_v16 = vld [vmem:[#allocation8 + $0x1f8] sm:$0xf0] }
 0x10d   :  { %1658 = vmatpush.bf16.msra.mxu2 %v2421_v4  ;;  %v2374_v4 = vld [vmem:[#allocation8 + $0xc8] sm:$0xf0] }
 0x10e   :  { %1630 = vmatpush.bf16.msra.mxu0 %v2293_v21  ;;  %v2382_v21 = vld [vmem:[#allocation8 + $0xd8] sm:$0xf0] }
 0x10f   :  { %v2385_v23 = vor.u32 %v2684_v20, %v2382_v21  ;;  %v2692_v20 = vld [vmem:[#allocation8 + $0x114] sm:$0xf]  ;;  %v2414_v21 = vld [vmem:[#allocation8 + $0x118] sm:$0xf0] }
 0x110   :  { %1644 = vmatpush.bf16.msra.mxu1 %v2357_v26  ;;  %1672 = vmatpush.bf16.msra.mxu3 %v2485_v5  ;;  %v2718_v26 = vld [vmem:[#allocation8 + $0x1e4] sm:$0xf] }
 0x111   :  { %1659 = vmatpush.bf16.msra.mxu2 %v2413_v58  ;;  %v2696_v58 = vld [vmem:[#allocation8 + $0x134] sm:$0xf] }
 0x114   :  { %1673 = vmatpush.bf16.msra.mxu3 %v2477_v61  ;;  %v2433_v61 = vor.u32 %v2696_v58, %v2430_v59 }
 0x118   :  { %1674 = vmatpush.bf16.msra.mxu3 %v2469_v11  ;;  %v2710_v11 = vld [vmem:[#allocation8 + $0x1a4] sm:$0xf] }
 0x142   :  { %v909_v31 = vpop.f32.mrf.mxu0 }
 0x143   :  { %v910_v63 = vadd.f32 %v2737_v45, %v909_v31  ;;  %v2348_v31 = vld [vmem:[#allocation8 + $0x90] sm:$0xf] }
 0x144   :  { %v2349_v39 = vor.u32 %v2677_v32, %v2348_v31  ;;  %v2310_v31 = vld [vmem:[#allocation8 + $0x48] sm:$0xf0]  ;;  %v2682_v32 = vld [vmem:[#allocation8 + $0xc4] sm:$0xf] }
 0x145   :  { %v2377_v5 = vor.u32 %v2682_v32, %v2374_v4 }
 0x146   :  { %1645 = vmatpush.bf16.msra.mxu1 %v2349_v39 }
 0x14a   :  { %v923_v37 = vpop.f32.mrf.mxu1  ;;  %v911_v6 = vpop.f32.mrf.mxu0  ;;  %1646 = vmatpush.bf16.msra.mxu1 %v2341_v49 }
 0x14b   :  { %v924_v18 = vadd.f32 %v923_v37, %v910_v63  ;;  %v912_v19 = vadd.f32 %v2737_v45, %v911_v6  ;;  %v2285_v37 = vor.u32 %v2661_v28, %v2284_v27  ;;  %v2326_v63 = vld [vmem:[#allocation8 + $0x68] sm:$0xf0]  ;;  %v2691_v6 = vld [vmem:[#allocation8 + $0x104] sm:$0xf0] }
 0x14c   :  { %v2329_v1 = vor.u32 %v2670_v62, %v2326_v63  ;;  %v2405_v8 = vor.u32 %v2691_v6, %v2404_v3  ;;  %v2518_v28 = vld [vmem:[#allocation8 + $0x1e8] sm:$0xf0]  ;;  %v2494_v62 = vld [vmem:[#allocation8 + $0x1b8] sm:$0xf0] }
 0x14d   :  { %1631 = vmatpush.bf16.msra.mxu0 %v2285_v37  ;;  %v2497_v63 = vor.u32 %v2712_v60, %v2494_v62  ;;  %v2350_v6 = vld [vmem:[#allocation8 + $0x98] sm:$0xf0] }
 0x14e   :  { %1660 = vmatpush.bf16.msra.mxu2 %v2405_v8  ;;  %v2422_v8 = vld [vmem:[#allocation8 + $0x128] sm:$0xf0] }
 0x151   :  { %1632 = vmatpush.bf16.msra.mxu0 %v2277_v48  ;;  %v2714_v48 = vld [vmem:[#allocation8 + $0x1c4] sm:$0xf] }
 0x152   :  { %v925_v13 = vpop.f32.mrf.mxu1  ;;  %v2505_v51 = vor.u32 %v2714_v48, %v2502_v50 }
 0x153   :  { %v926_v29 = vadd.f32 %v925_v13, %v912_v19  ;;  %v2462_v13 = vld [vmem:[#allocation8 + $0x178] sm:$0xf0] }
 0x154   :  { %v2465_v15 = vor.u32 %v2704_v12, %v2462_v13  ;;  %v2318_v19 = vld [vmem:[#allocation8 + $0x58] sm:$0xf0]  ;;  %v2486_v12 = vld [vmem:[#allocation8 + $0x1a8] sm:$0xf0]  ;;  %v2658_v13 = vld [vmem:[#allocation8 + $0x4] sm:$0xf] }
 0x155   :  { %v2321_v22 = vor.u32 %v2668_v17, %v2318_v19  ;;  %v2342_v17 = vld [vmem:[#allocation8 + $0x88] sm:$0xf0] }
 0x168   :  { %v937_v46 = vpop.f32.mrf.mxu2 }
 0x169   :  { %v938_v30 = vadd.f32 %v937_v46, %v924_v18  ;;  %v2529_v18 = vor.u32 %v2720_v14, %v2526_v16  ;;  %v2489_v14 = vor.u32 %v2710_v11, %v2486_v12  ;;  %v2674_v16 = vld [vmem:[#allocation8 + $0x84] sm:$0xf] }
 0x16a   :  { %v2345_v19 = vor.u32 %v2674_v16, %v2342_v17 }
 0x170   :  { %v951_v7 = vpop.f32.mrf.mxu3  ;;  %v939_v25 = vpop.f32.mrf.mxu2 }
 0x171   :  { %v952_v34 = vadd.f32 %v951_v7, %v938_v30  ;;  %v940_v35 = vadd.f32 %v939_v25, %v926_v29  ;;  %v2393_v7 = vor.u32 %v2686_v0, %v2390_v2  ;;  %v2454_v25 = vld [vmem:[#allocation8 + $0x168] sm:$0xf0]  ;;  %v2521_v29 = vor.u32 %v2718_v26, %v2518_v28  ;;  %v2666_v30 = vld [vmem:[#allocation8 + $0x44] sm:$0xf]  ;;  %v2660_v0 = vld [vmem:[#allocation8 + $0x14] sm:$0xf] }
 0x172   :  { %v2457_v27 = vor.u32 %v2702_v24, %v2454_v25  ;;  %v2676_v2 = vld [vmem:[#allocation8 + $0x94] sm:$0xf]  ;;  %v2417_v24 = vor.u32 %v2692_v20, %v2414_v21  ;;  %v2690_v26 = vld [vmem:[#allocation8 + $0x104] sm:$0xf] }
 0x173   :  { %v962_v45 = vadd.f32 %v960_v33, %v952_v34  ;;  %v2313_v33 = vor.u32 %v2666_v30, %v2310_v31  ;;  %v2700_v34 = vld [vmem:[#allocation8 + $0x154] sm:$0xf]  ;;  %v2353_v9 = vor.u32 %v2676_v2, %v2350_v6  ;;  %v2706_v28 = vld [vmem:[#allocation8 + $0x184] sm:$0xf] }
 0x178   :  { %v953_v38 = vpop.f32.mrf.mxu3 }
 0x179   :  { %v954_v40 = vadd.f32 %v953_v38, %v940_v35  ;;  %v2446_v35 = vld [vmem:[#allocation8 + $0x158] sm:$0xf0] }
 0x17a   :  { %v2449_v37 = vor.u32 %v2700_v34, %v2446_v35  ;;  %v2510_v38 = vld [vmem:[#allocation8 + $0x1d8] sm:$0xf0] }
 0x17b   :  { %v963_v46 = vadd.f32 %v961_v36, %v954_v40  ;;  %v2716_v36 = vld [vmem:[#allocation8 + $0x1d4] sm:$0xf] }
 0x17c   :  { %v2513_v39 = vor.u32 %v2716_v36, %v2510_v38  ;;  %v2664_v40 = vld [vmem:[#allocation8 + $0x34] sm:$0xf] }
 0x17d   :  { %v964_v47 = vpack.c.bf16 %v963_v46, %v962_v45  ;;  %v2305_v43 = vor.u32 %v2664_v40, %v2302_v41  ;;  %v2369_v45 = vor.u32 %v2680_v42, %v2366_v44  ;;  %v2698_v46 = vld [vmem:[#allocation8 + $0x144] sm:$0xf] }
 0x17f   :  { %1175 = vmatmul.bf16.vlgmr.msrb.gmra.mxu0 %v964_v47  ;;  %1189 = vmatmul.bf16.vlgmr.msrb.gmra.mxu1 %v964_v47 }
 0x180   :  { %1203 = vmatmul.bf16.vlgmr.msrb.gmra.mxu2 %v964_v47  ;;  %1217 = vmatmul.bf16.vlgmr.msrb.gmra.mxu3 %v964_v47  ;;  %v2438_v47 = vld [vmem:[#allocation8 + $0x148] sm:$0xf0] }
 0x181   :  { %1681 = vmatpush.bf16.msrb.mxu0 %v2337_v53  ;;  %1695 = vmatpush.bf16.msrb.mxu1 %v2401_v57  ;;  %v2441_v49 = vor.u32 %v2698_v46, %v2438_v47  ;;  %v2294_v53 = vld [vmem:[#allocation8 + $0x28] sm:$0xf0]  ;;  %v2361_v57 = vor.u32 %v2678_v54, %v2358_v56 }
 0x182   :  { %1709 = vmatpush.bf16.msrb.mxu2 %v2465_v15  ;;  %1723 = vmatpush.bf16.msrb.mxu3 %v2529_v18  ;;  %v2297_v55 = vor.u32 %v2662_v52, %v2294_v53  ;;  %v2278_v15 = vld [vmem:[#allocation8 + $0x8] sm:$0xf0] }
 0x183   :  { %v2281_v18 = vor.u32 %v2658_v13, %v2278_v15 }
 0x185   :  { %1682 = vmatpush.bf16.msrb.mxu0 %v2329_v1  ;;  %1696 = vmatpush.bf16.msrb.mxu1 %v2393_v7  ;;  %v2286_v1 = vld [vmem:[#allocation8 + $0x18] sm:$0xf0]  ;;  %v2694_v7 = vld [vmem:[#allocation8 + $0x124] sm:$0xf] }
 0x186   :  { %1710 = vmatpush.bf16.msrb.mxu2 %v2457_v27  ;;  %1724 = vmatpush.bf16.msrb.mxu3 %v2521_v29  ;;  %v2289_v3 = vor.u32 %v2660_v0, %v2286_v1  ;;  %v2425_v10 = vor.u32 %v2694_v7, %v2422_v8  ;;  %v2406_v27 = vld [vmem:[#allocation8 + $0x108] sm:$0xf0]  ;;  %v997_v29 = vld [vmem:[%s3020_s8] sm:$0xf] }
 0x187   :  { %v2409_v32 = vor.u32 %v2690_v26, %v2406_v27  ;;  %v1000_v34 = vperm.slane %v997_v29, 1  ;;  %v1002_v44 = vperm.slane %v997_v29, 3  ;;  %v1299_v0 = vld [vmem:[%s3022_s10] sm:$0x3]  ;;  %s2876_s10 = smov [#allocation10]  }
 0x188   :  { %v1301_v1 = vperm.slane %v1299_v0, 0  ;;  %v1302_v16 = vperm.slane %v1299_v0, 1  ;;  %s1745_s17 = sshll.u32 %s2876_s10, 4  ;;  %s1746_s17 = int_to_ptr.vmem [resolvable:$true] %s1745_s17 }
 0x189   :  { %1683 = vmatpush.bf16.msrb.mxu0 %v2321_v22  ;;  %1697 = vmatpush.bf16.msrb.mxu1 %v2385_v23  ;;  %v2708_v22 = vld [vmem:[#allocation8 + $0x194] sm:$0xf]  ;;  %v2478_v23 = vld [vmem:[#allocation8 + $0x198] sm:$0xf0] }
 0x18a   :  { %1711 = vmatpush.bf16.msrb.mxu2 %v2449_v37  ;;  %1725 = vmatpush.bf16.msrb.mxu3 %v2513_v39  ;;  %v2481_v25 = vor.u32 %v2708_v22, %v2478_v23 }
 0x18d   :  { %1684 = vmatpush.bf16.msrb.mxu0 %v2313_v33  ;;  %1698 = vmatpush.bf16.msrb.mxu1 %v2377_v5  ;;  %v2470_v33 = vld [vmem:[#allocation8 + $0x188] sm:$0xf0]  ;;  %v999_v5 = vperm.slane %v997_v29, 0 }
 0x18e   :  { %1712 = vmatpush.bf16.msrb.mxu2 %v2441_v49  ;;  %1726 = vmatpush.bf16.msrb.mxu3 %v2505_v51  ;;  %v2473_v4 = vor.u32 %v2706_v28, %v2470_v33 }
 0x191   :  { %1685 = vmatpush.bf16.msrb.mxu0 %v2305_v43  ;;  %1699 = vmatpush.bf16.msrb.mxu1 %v2369_v45  ;;  %v1001_v43 = vperm.slane %v997_v29, 2 }
 0x192   :  { %1713 = vmatpush.bf16.msrb.mxu2 %v2433_v61  ;;  %1727 = vmatpush.bf16.msrb.mxu3 %v2497_v63 }
 0x195   :  { %1686 = vmatpush.bf16.msrb.mxu0 %v2297_v55  ;;  %1700 = vmatpush.bf16.msrb.mxu1 %v2361_v57 }
 0x196   :  { %1714 = vmatpush.bf16.msrb.mxu2 %v2425_v10  ;;  %1728 = vmatpush.bf16.msrb.mxu3 %v2489_v14 }
 0x199   :  { %1687 = vmatpush.bf16.msrb.mxu0 %v2289_v3  ;;  %1701 = vmatpush.bf16.msrb.mxu1 %v2353_v9 }
 0x19a   :  { %1715 = vmatpush.bf16.msrb.mxu2 %v2417_v24  ;;  %1729 = vmatpush.bf16.msrb.mxu3 %v2481_v25 }
 0x19d   :  { %1688 = vmatpush.bf16.msrb.mxu0 %v2281_v18  ;;  %1702 = vmatpush.bf16.msrb.mxu1 %v2345_v19 }
 0x19e   :  { %1716 = vmatpush.bf16.msrb.mxu2 %v2409_v32  ;;  %1730 = vmatpush.bf16.msrb.mxu3 %v2473_v4 }
 0x1fc   :  { %v1176_v30 = vpop.f32.mrf.mxu0  ;;  %v1190_v31 = vpop.f32.mrf.mxu1 }
 0x1fd   :  { %v1177_v35 = vadd.f32 %v1176_v30, %v999_v5  ;;  %v1191_v36 = vadd.f32 %v1190_v31, %v1000_v34 }
 0x1ff   :  { %v1223_v45 = vmax.f32 %v1177_v35, 0.0  ;;  %v1224_v46 = vmax.f32 %v1191_v36, 0.0 }
 0x203   :  { %v1204_v37 = vpop.f32.mrf.mxu2  ;;  %v1218_v38 = vpop.f32.mrf.mxu3 }
 0x204   :  { %v1178_v39 = vpop.f32.mrf.mxu0  ;;  %v1192_v40 = vpop.f32.mrf.mxu1  ;;  %v1205_v51 = vadd.f32 %v1204_v37, %v1001_v43  ;;  %v1219_v52 = vadd.f32 %v1218_v38, %v1002_v44 }
 0x205   :  { %v1179_v41 = vadd.f32 %v1178_v39, %v999_v5  ;;  %v1193_v42 = vadd.f32 %v1192_v40, %v1000_v34 }
 0x206   :  { %v1225_v57 = vmax.f32 %v1205_v51, 0.0  ;;  %v1226_v58 = vmax.f32 %v1219_v52, 0.0 }
 0x207   :  { %v1227_v47 = vmax.f32 %v1179_v41, 0.0  ;;  %v1228_v48 = vmax.f32 %v1193_v42, 0.0 }
 0x209   :  { %v1231_v49 = vpack.c.bf16 %v1227_v47, %v1223_v45  ;;  %v1232_v50 = vpack.c.bf16 %v1228_v48, %v1224_v46 }
 0x20b   :  { %v1206_v53 = vpop.f32.mrf.mxu2  ;;  %v1220_v54 = vpop.f32.mrf.mxu3  ;;  %1633 = vmatmul.bf16.vlgmr.msra.gmra.mxu0 %v1231_v49  ;;  %1647 = vmatmul.bf16.vlgmr.msra.gmra.mxu1 %v1232_v50 }
 0x20c   :  { %v1207_v55 = vadd.f32 %v1206_v53, %v1001_v43  ;;  %v1221_v56 = vadd.f32 %v1220_v54, %v1002_v44 }
 0x20e   :  { %v1229_v59 = vmax.f32 %v1207_v55, 0.0  ;;  %v1230_v60 = vmax.f32 %v1221_v56, 0.0 }
 0x210   :  { %v1233_v61 = vpack.c.bf16 %v1229_v59, %v1225_v57  ;;  %v1234_v62 = vpack.c.bf16 %v1230_v60, %v1226_v58 }
 0x212   :  { %1661 = vmatmul.bf16.vlgmr.msra.gmra.mxu2 %v1233_v61  ;;  %1675 = vmatmul.bf16.vlgmr.msra.gmra.mxu3 %v1234_v62 }
 0x21b   :  { %1689 = vmatmul.bf16.vlgmr.msrb.gmra.mxu0 %v1231_v49  ;;  %1703 = vmatmul.bf16.vlgmr.msrb.gmra.mxu1 %v1232_v50 }
 0x222   :  { %1717 = vmatmul.bf16.vlgmr.msrb.gmra.mxu2 %v1233_v61  ;;  %1731 = vmatmul.bf16.vlgmr.msrb.gmra.mxu3 %v1234_v62 }
 0x288   :  { %v1634_v63 = vpop.f32.mrf.mxu0  ;;  %v1648_v2 = vpop.f32.mrf.mxu1 }
 0x289   :  { %v1635_v3 = vadd.f32 %v1634_v63, %v1301_v1 }
 0x28b   :  { %v1649_v7 = vadd.f32 %v1648_v2, %v1635_v3 }
 0x290   :  { %v1636_v6 = vpop.f32.mrf.mxu0  ;;  %v1650_v11 = vpop.f32.mrf.mxu1 }
 0x291   :  { %v1637_v12 = vadd.f32 %v1636_v6, %v1301_v1 }
 0x293   :  { %v1651_v15 = vadd.f32 %v1650_v11, %v1637_v12 }
 0x295   :  { %v1662_v8 = vpop.f32.mrf.mxu2  ;;  %v1676_v9 = vpop.f32.mrf.mxu3 }
 0x296   :  { %v1663_v10 = vadd.f32 %v1662_v8, %v1649_v7 }
 0x298   :  { %v1677_v13 = vadd.f32 %v1676_v9, %v1663_v10  ;;  %v1690_v14 = vpop.f32.mrf.mxu0  ;;  %v1704_v22 = vpop.f32.mrf.mxu1 }
 0x299   :  { %v1691_v20 = vadd.f32 %v1690_v14, %v1302_v16 }
 0x29a   :  { %1737 = vst [vmem:[#allocation10] sm:$0xff] %v1677_v13 }
 0x29b   :  { %v1705_v23 = vadd.f32 %v1704_v22, %v1691_v20 }
 0x29d   :  { %v1664_v17 = vpop.f32.mrf.mxu2  ;;  %v1678_v18 = vpop.f32.mrf.mxu3 }
 0x29e   :  { %v1665_v19 = vadd.f32 %v1664_v17, %v1651_v15 }
 0x2a0   :  { %v1679_v21 = vadd.f32 %v1678_v18, %v1665_v19  ;;  %v1692_v24 = vpop.f32.mrf.mxu0  ;;  %v1706_v30 = vpop.f32.mrf.mxu1 }
 0x2a1   :  { %v1693_v28 = vadd.f32 %v1692_v24, %v1302_v16 }
 0x2a2   :  { %1739 = vst [vmem:[#allocation10 + $0x10] sm:$0xff] %v1679_v21 }
 0x2a3   :  { %v1707_v31 = vadd.f32 %v1706_v30, %v1693_v28 }
 0x2a5   :  { %v1718_v25 = vpop.f32.mrf.mxu2  ;;  %v1732_v26 = vpop.f32.mrf.mxu3 }
 0x2a6   :  { %v1719_v27 = vadd.f32 %v1718_v25, %v1705_v23 }
 0x2a8   :  { %v1733_v29 = vadd.f32 %v1732_v26, %v1719_v27 }
 0x2aa   :  { %1738 = vst [vmem:[#allocation10 + $0x8] sm:$0xff] %v1733_v29 }
 0x2ad   :  { %v1720_v32 = vpop.f32.mrf.mxu2  ;;  %v1734_v4 = vpop.f32.mrf.mxu3 }
 0x2ae   :  { %v1721_v33 = vadd.f32 %v1720_v32, %v1707_v31 }
 0x2b0   :  { %v1735_v5 = vadd.f32 %v1734_v4, %v1721_v33 }
 0x2b2   :  { %1740 = vst [vmem:[#allocation10 + $0x18] sm:$0xff] %v1735_v5 }
 0x2b3   :  { %1753 = dma.vmem_to_hbm [thread:$0]  %s1746_s17, 512, %s1748_s20, [#allocation4], %s2870_s29, %s2870_s29, %s2871_s30  }
 0x2b4   :  { %2864 = dma.done.wait [#allocation4], 512  }
 0x2b5   :  { %2865 = vsyncadd [#allocation4], 4294966784 }
 0x2b6   :  { %1758 = vsyncpa [#allocation3], 1 }
 0x2b7   :  { %1759 = vsyncpa [#allocation6], 1 }
 0x2b8   :  { %1760 = vsyncpa [#allocation9], 1 }
 0x2b9   :  { %1761 = vsyncpa [#allocation4], 1 }

// kernel: parameter_autoencoder_fwd.1
= control target key start
LH: loop header
LB: loop body
LE: loop exit
PB: predicated region body
PF: predicated region fallthrough
CT: control target
= control target key end

     0   :  { %16 = vsyncpa [#allocation3], 0  ;;  %s3012_s0 = inlined_call_operand.vmem [shape: f32[16,256], index: 0, kind: input, shape index: {}]   ;;  %s3013_s1 = inlined_call_operand.vmem [shape: bf16[16,256], index: 1, kind: input, shape index: {}]   ;;  %s3014_s2 = inlined_call_operand.vmem [shape: bf16[16,128], index: 2, kind: input, shape index: {}]   ;;  %s3015_s3 = inlined_call_operand.hbm [shape: bf16[256,512], index: 3, kind: input, shape index: {}]   ;;  %s3016_s4 = inlined_call_operand.vmem [shape: f32[1,512], index: 4, kind: input, shape index: {}]   ;;  %s3017_s5 = inlined_call_operand.hbm [shape: bf16[512,128], index: 5, kind: input, shape index: {}]   ;;  %s3018_s6 = inlined_call_operand.vmem [shape: f32[1,128], index: 6, kind: input, shape index: {}]   ;;  %s3019_s7 = inlined_call_operand.hbm [shape: bf16[128,512], index: 7, kind: input, shape index: {}]   ;;  %s3020_s8 = inlined_call_operand.vmem [shape: f32[1,512], index: 8, kind: input, shape index: {}]   ;;  %s3021_s9 = inlined_call_operand.hbm [shape: bf16[512,256], index: 9, kind: input, shape index: {}]   ;;  %s3022_s10 = inlined_call_operand.vmem [shape: f32[1,256], index: 10, kind: input, shape index: {}]   ;;  %s3023_s11 = inlined_call_operand.hbm [shape: f32[16,256], index: 11, kind: output, shape index: {}]  }
   0x1   :  { %17 = vsyncpa [#allocation6], 0 }
   0x2   :  { %18 = vsyncpa [#allocation9], 0  ;;  %s45_s19 = sshll.u32 %s3017_s5, 4  ;;  %s46_s19 = int_to_ptr.hbm [resolvable:$true] %s45_s19 }
   0x3   :  { %19 = vsyncpa [#allocation4], 0  ;;  %s2866_s20 = smov [#allocation5]   ;;  %s30_s24 = sshll.u32 %s3015_s3, 4  ;;  %s31_s24 = int_to_ptr.hbm [resolvable:$true] %s30_s24 }
   0x4   :  { %s47_s21 = sshll.u32 %s2866_s20, 4  ;;  %s2867_s25 = smov 64   ;;  %s48_s21 = int_to_ptr.vmem [resolvable:$true] %s47_s21 }
   0x5   :  { %s2868_s26 = smov 4   ;;  %s2869_s27 = smov [#allocation2]  }
   0x6   :  { %53 = dma.hbm_to_vmem [thread:$0]  %s46_s19, 4096, %s48_s21, [#allocation6], %s2867_s25, %s2867_s25, %s2868_s26  }
   0x7   :  { %s32_s28 = sshll.u32 %s2869_s27, 4  ;;  %s2870_s29 = smov 256   ;;  %s33_s28 = int_to_ptr.vmem [resolvable:$true] %s32_s28 }
   0x8   :  { %s2871_s30 = smov 16   ;;  %s60_s13 = sshll.u32 %s3019_s7, 4  ;;  %s61_s13 = int_to_ptr.hbm [resolvable:$true] %s60_s13 }
   0x9   :  { %38 = dma.hbm_to_vmem [thread:$0]  %s31_s24, 8192, %s33_s28, [#allocation3], %s2870_s29, %s2870_s29, %s2871_s30  }
   0xa   :  { %s2872_s14 = smov [#allocation7]   ;;  %s75_s17 = sshll.u32 %s3021_s9, 4  ;;  %s76_s17 = int_to_ptr.hbm [resolvable:$true] %s75_s17 }
   0xb   :  { %s62_s3 = sshll.u32 %s2872_s14, 4  ;;  %s2873_s18 = smov [#allocation8]   ;;  %s63_s3 = int_to_ptr.vmem [resolvable:$true] %s62_s3 }
   0xc   :  { %68 = dma.hbm_to_vmem [thread:$0]  %s61_s13, 4096, %s63_s3, [#allocation6], %s2870_s29, %s2870_s29, %s2871_s30  }
   0xd   :  { %s77_s19 = sshll.u32 %s2873_s18, 4  ;;  %s2874_s20 = smov 128   ;;  %s78_s19 = int_to_ptr.vmem [resolvable:$true] %s77_s19 }
   0xe   :  { %s2875_s21 = smov 8  }
   0xf   :  { %83 = dma.hbm_to_vmem [thread:$0]  %s76_s17, 8192, %s78_s19, [#allocation9], %s2874_s20, %s2874_s20, %s2875_s21  }
  0x10   :  { %2858 = dma.done.wait [#allocation3], 8192  }
  0x11   :  { %2859 = vsyncadd [#allocation3], 4294959104 }
  0x12   :  { %2860 = dma.done.wait [#allocation6], 8192  }
  0x13   :  { %2861 = vsyncadd [#allocation6], 4294959104 }
  0x14   :  { %2862 = dma.done.wait [#allocation9], 8192  }
  0x15   :  { %2863 = vsyncadd [#allocation9], 4294959104  ;;  %v1876_v0 = vld [vmem:[#allocation2 + $0xe0] sm:$0xf]  ;;  %v2560_v1 = vld [vmem:[#allocation2 + $0xec] sm:$0xf0] }
  0x16   :  { %v2004_v2 = vld [vmem:[#allocation2 + $0x1e0] sm:$0xf]  ;;  %v1877_v3 = vor.u32 %v2560_v1, %v1876_v0  ;;  %v2592_v4 = vld [vmem:[#allocation2 + $0x1ec] sm:$0xf0]  ;;  %v2558_v5 = vld [vmem:[#allocation2 + $0xe4] sm:$0xf] }
  0x17   :  { %v1878_v6 = vld [vmem:[#allocation2 + $0xf0] sm:$0xf0]  ;;  %v2005_v7 = vor.u32 %v2592_v4, %v2004_v2  ;;  %v2590_v9 = vld [vmem:[#allocation2 + $0x1e4] sm:$0xf]  ;;  %v1860_v11 = vld [vmem:[#allocation2 + $0xc0] sm:$0xf] }
  0x18   :  { %v1881_v8 = vor.u32 %v2558_v5, %v1878_v6  ;;  %v2006_v10 = vld [vmem:[#allocation2 + $0x1f0] sm:$0xf0]  ;;  %516 = vmatpush.bf16.msra.mxu0 %v1877_v3  ;;  %v2556_v13 = vld [vmem:[#allocation2 + $0xcc] sm:$0xf0]  ;;  %v1988_v14 = vld [vmem:[#allocation2 + $0x1c0] sm:$0xf] }
  0x19   :  { %v2009_v12 = vor.u32 %v2590_v9, %v2006_v10  ;;  %v2588_v15 = vld [vmem:[#allocation2 + $0x1cc] sm:$0xf0]  ;;  %530 = vmatpush.bf16.msra.mxu1 %v2005_v7  ;;  %v1861_v16 = vor.u32 %v2556_v13, %v1860_v11  ;;  %v2554_v18 = vld [vmem:[#allocation2 + $0xc4] sm:$0xf]  ;;  %v1862_v19 = vld [vmem:[#allocation2 + $0xd0] sm:$0xf0] }
  0x1a   :  { %544 = vmatpush.bf16.msra.mxu2 %v1881_v8  ;;  %v1989_v17 = vor.u32 %v2588_v15, %v1988_v14  ;;  %v2586_v20 = vld [vmem:[#allocation2 + $0x1c4] sm:$0xf]  ;;  %v1865_v21 = vor.u32 %v2554_v18, %v1862_v19  ;;  %v1990_v22 = vld [vmem:[#allocation2 + $0x1d0] sm:$0xf0]  ;;  %v1844_v23 = vld [vmem:[#allocation2 + $0xa0] sm:$0xf] }
  0x1b   :  { %558 = vmatpush.bf16.msra.mxu3 %v2009_v12  ;;  %v2552_v24 = vld [vmem:[#allocation2 + $0xac] sm:$0xf0]  ;;  %v1993_v25 = vor.u32 %v2586_v20, %v1990_v22  ;;  %v1972_v26 = vld [vmem:[#allocation2 + $0x1a0] sm:$0xf]  ;;  %v2550_v28 = vld [vmem:[#allocation2 + $0xa4] sm:$0xf] }
  0x1c   :  { %v2584_v27 = vld [vmem:[#allocation2 + $0x1ac] sm:$0xf0]  ;;  %517 = vmatpush.bf16.msra.mxu0 %v1861_v16  ;;  %v1845_v29 = vor.u32 %v2552_v24, %v1844_v23  ;;  %v1846_v30 = vld [vmem:[#allocation2 + $0xb0] sm:$0xf0]  ;;  %v2582_v31 = vld [vmem:[#allocation2 + $0x1a4] sm:$0xf] }
  0x1d   :  { %v1974_v32 = vld [vmem:[#allocation2 + $0x1b0] sm:$0xf0]  ;;  %531 = vmatpush.bf16.msra.mxu1 %v1989_v17  ;;  %v1973_v33 = vor.u32 %v2584_v27, %v1972_v26  ;;  %v1849_v34 = vor.u32 %v2550_v28, %v1846_v30  ;;  %v1828_v35 = vld [vmem:[#allocation2 + $0x80] sm:$0xf]  ;;  %v2548_v36 = vld [vmem:[#allocation2 + $0x8c] sm:$0xf0] }
  0x1e   :  { %545 = vmatpush.bf16.msra.mxu2 %v1865_v21  ;;  %v1956_v37 = vld [vmem:[#allocation2 + $0x180] sm:$0xf]  ;;  %v1977_v38 = vor.u32 %v2582_v31, %v1974_v32  ;;  %v2580_v39 = vld [vmem:[#allocation2 + $0x18c] sm:$0xf0]  ;;  %v2546_v40 = vld [vmem:[#allocation2 + $0x84] sm:$0xf]  ;;  %v1829_v44 = vor.u32 %v2548_v36, %v1828_v35 }
  0x1f   :  { %559 = vmatpush.bf16.msra.mxu3 %v1993_v25  ;;  %v1830_v41 = vld [vmem:[#allocation2 + $0x90] sm:$0xf0]  ;;  %v2578_v42 = vld [vmem:[#allocation2 + $0x184] sm:$0xf]  ;;  %v1957_v45 = vor.u32 %v2580_v39, %v1956_v37  ;;  %v1812_v47 = vld [vmem:[#allocation2 + $0x60] sm:$0xf] }
  0x20   :  { %v1958_v43 = vld [vmem:[#allocation2 + $0x190] sm:$0xf0]  ;;  %518 = vmatpush.bf16.msra.mxu0 %v1845_v29  ;;  %v1833_v46 = vor.u32 %v2546_v40, %v1830_v41  ;;  %v2544_v48 = vld [vmem:[#allocation2 + $0x6c] sm:$0xf0]  ;;  %v1940_v49 = vld [vmem:[#allocation2 + $0x160] sm:$0xf] }
  0x21   :  { %532 = vmatpush.bf16.msra.mxu1 %v1973_v33  ;;  %v1961_v50 = vor.u32 %v2578_v42, %v1958_v43  ;;  %v2576_v51 = vld [vmem:[#allocation2 + $0x16c] sm:$0xf0]  ;;  %v2542_v52 = vld [vmem:[#allocation2 + $0x64] sm:$0xf]  ;;  %v1814_v53 = vld [vmem:[#allocation2 + $0x70] sm:$0xf0]  ;;  %v1813_v56 = vor.u32 %v2544_v48, %v1812_v47 }
  0x22   :  { %546 = vmatpush.bf16.msra.mxu2 %v1849_v34  ;;  %v2574_v54 = vld [vmem:[#allocation2 + $0x164] sm:$0xf]  ;;  %v1942_v55 = vld [vmem:[#allocation2 + $0x170] sm:$0xf0]  ;;  %v1941_v57 = vor.u32 %v2576_v51, %v1940_v49  ;;  %v1817_v58 = vor.u32 %v2542_v52, %v1814_v53  ;;  %v1796_v59 = vld [vmem:[#allocation2 + $0x40] sm:$0xf] }
  0x23   :  { %560 = vmatpush.bf16.msra.mxu3 %v1977_v38  ;;  %v2540_v60 = vld [vmem:[#allocation2 + $0x4c] sm:$0xf0]  ;;  %v1924_v61 = vld [vmem:[#allocation2 + $0x140] sm:$0xf]  ;;  %v1945_v62 = vor.u32 %v2574_v54, %v1942_v55  ;;  %v2538_v0 = vld [vmem:[#allocation2 + $0x44] sm:$0xf] }
  0x24   :  { %519 = vmatpush.bf16.msra.mxu0 %v1829_v44  ;;  %v2572_v63 = vld [vmem:[#allocation2 + $0x14c] sm:$0xf0]  ;;  %v1798_v1 = vld [vmem:[#allocation2 + $0x50] sm:$0xf0]  ;;  %v2570_v2 = vld [vmem:[#allocation2 + $0x144] sm:$0xf]  ;;  %v1797_v4 = vor.u32 %v2540_v60, %v1796_v59 }
  0x25   :  { %533 = vmatpush.bf16.msra.mxu1 %v1957_v45  ;;  %v1926_v3 = vld [vmem:[#allocation2 + $0x150] sm:$0xf0]  ;;  %v1780_v5 = vld [vmem:[#allocation2 + $0x20] sm:$0xf]  ;;  %v1925_v6 = vor.u32 %v2572_v63, %v1924_v61  ;;  %v1801_v7 = vor.u32 %v2538_v0, %v1798_v1  ;;  %v2536_v8 = vld [vmem:[#allocation2 + $0x2c] sm:$0xf0] }
  0x26   :  { %547 = vmatpush.bf16.msra.mxu2 %v1833_v46  ;;  %v1908_v9 = vld [vmem:[#allocation2 + $0x120] sm:$0xf]  ;;  %v2568_v10 = vld [vmem:[#allocation2 + $0x12c] sm:$0xf0]  ;;  %v1929_v11 = vor.u32 %v2570_v2, %v1926_v3  ;;  %v2534_v12 = vld [vmem:[#allocation2 + $0x24] sm:$0xf]  ;;  %v1781_v18 = vor.u32 %v2536_v8, %v1780_v5 }
  0x27   :  { %561 = vmatpush.bf16.msra.mxu3 %v1961_v50  ;;  %v1782_v13 = vld [vmem:[#allocation2 + $0x30] sm:$0xf0]  ;;  %v2566_v14 = vld [vmem:[#allocation2 + $0x124] sm:$0xf]  ;;  %v1764_v16 = vld [vmem:[#allocation2] sm:$0xf]  ;;  %v1909_v23 = vor.u32 %v2568_v10, %v1908_v9 }
  0x28   :  { %520 = vmatpush.bf16.msra.mxu0 %v1813_v56  ;;  %v1910_v15 = vld [vmem:[#allocation2 + $0x130] sm:$0xf0]  ;;  %v2532_v17 = vld [vmem:[#allocation2 + $0xc] sm:$0xf0]  ;;  %v1892_v19 = vld [vmem:[#allocation2 + $0x100] sm:$0xf]  ;;  %v1785_v24 = vor.u32 %v2534_v12, %v1782_v13 }
  0x29   :  { %534 = vmatpush.bf16.msra.mxu1 %v1941_v57  ;;  %v2564_v20 = vld [vmem:[#allocation2 + $0x10c] sm:$0xf0]  ;;  %v2530_v21 = vld [vmem:[#allocation2 + $0x4] sm:$0xf]  ;;  %v1766_v22 = vld [vmem:[#allocation2 + $0x10] sm:$0xf0]  ;;  %v1913_v30 = vor.u32 %v2566_v14, %v1910_v15  ;;  %v1765_v43 = vor.u32 %v2532_v17, %v1764_v16 }
  0x2a   :  { %548 = vmatpush.bf16.msra.mxu2 %v1817_v58  ;;  %v2562_v25 = vld [vmem:[#allocation2 + $0x104] sm:$0xf]  ;;  %v1894_v26 = vld [vmem:[#allocation2 + $0x110] sm:$0xf0]  ;;  %v1884_v27 = vld [vmem:[#allocation2 + $0xe8] sm:$0xf]  ;;  %v1893_v48 = vor.u32 %v2564_v20, %v1892_v19  ;;  %v1769_v49 = vor.u32 %v2530_v21, %v1766_v22 }
  0x2b   :  { %562 = vmatpush.bf16.msra.mxu3 %v1945_v62  ;;  %v2561_v28 = vld [vmem:[#allocation2 + $0xf4] sm:$0xf0]  ;;  %v106_v29 = vld [vmem:[%s3013_s1] sm:$0xff]  ;;  %v2012_v31 = vld [vmem:[#allocation2 + $0x1e8] sm:$0xf]  ;;  %v1897_v53 = vor.u32 %v2562_v25, %v1894_v26  ;;  %s1747_s20 = sshll.u32 %s3023_s11, 4  ;;  %s1748_s20 = int_to_ptr.hbm [resolvable:$true] %s1747_s20 }
  0x2c   :  { %521 = vmatpush.bf16.msra.mxu0 %v1797_v4  ;;  %v2593_v32 = vld [vmem:[#allocation2 + $0x1f4] sm:$0xf0]  ;;  %v2559_v33 = vld [vmem:[#allocation2 + $0xec] sm:$0xf]  ;;  %v1886_v34 = vld [vmem:[#allocation2 + $0xf8] sm:$0xf0]  ;;  %v108_v36 = vunpack.c.l.bf16 %v106_v29  ;;  %v109_v37 = vunpack.c.h.bf16 %v106_v29  ;;  %v1885_v54 = vor.u32 %v2561_v28, %v1884_v27 }
  0x2d   :  { %535 = vmatpush.bf16.msra.mxu1 %v1925_v6  ;;  %v107_v35 = vld [vmem:[%s3013_s1 + $0x8] sm:$0xff]  ;;  %v102_v39 = vld [vmem:[%s3012_s0] sm:$0xff]  ;;  %v104_v44 = vld [vmem:[%s3012_s0 + $0x10] sm:$0xff]  ;;  %v2013_v57 = vor.u32 %v2593_v32, %v2012_v31  ;;  %v1889_v58 = vor.u32 %v2559_v33, %v1886_v34 }
  0x2e   :  { %549 = vmatpush.bf16.msra.mxu2 %v1801_v7  ;;  %v2591_v38 = vld [vmem:[#allocation2 + $0x1ec] sm:$0xf]  ;;  %v110_v40 = vunpack.c.l.bf16 %v107_v35  ;;  %v111_v42 = vunpack.c.h.bf16 %v107_v35  ;;  %v112_v45 = vmul.f32 0.001, %v108_v36  ;;  %v105_v46 = vld [vmem:[%s3012_s0 + $0x18] sm:$0xff] }
  0x2f   :  { %563 = vmatpush.bf16.msra.mxu3 %v1929_v11  ;;  %v103_v41 = vld [vmem:[%s3012_s0 + $0x8] sm:$0xff]  ;;  %v113_v47 = vmul.f32 0.001, %v109_v37  ;;  %v2014_v50 = vld [vmem:[#allocation2 + $0x1f8] sm:$0xf0] }
  0x30   :  { %522 = vmatpush.bf16.msra.mxu0 %v1781_v18  ;;  %v114_v51 = vmul.f32 0.001, %v110_v40  ;;  %v115_v52 = vmul.f32 0.001, %v111_v42  ;;  %v116_v55 = vadd.f32 %v112_v45, %v102_v39  ;;  %v1868_v61 = vld [vmem:[#allocation2 + $0xc8] sm:$0xf]  ;;  %v2017_v0 = vor.u32 %v2591_v38, %v2014_v50 }
  0x31   :  { %536 = vmatpush.bf16.msra.mxu1 %v1909_v23  ;;  %v117_v56 = vadd.f32 %v113_v47, %v103_v41  ;;  %v2557_v62 = vld [vmem:[#allocation2 + $0xd4] sm:$0xf0]  ;;  %v1996_v63 = vld [vmem:[#allocation2 + $0x1c8] sm:$0xf]  ;;  %v2555_v2 = vld [vmem:[#allocation2 + $0xcc] sm:$0xf] }
  0x32   :  { %550 = vmatpush.bf16.msra.mxu2 %v1785_v24  ;;  %v118_v59 = vadd.f32 %v114_v51, %v104_v44  ;;  %v119_v60 = vadd.f32 %v115_v52, %v105_v46  ;;  %v2589_v1 = vld [vmem:[#allocation2 + $0x1d4] sm:$0xf0]  ;;  %v1870_v3 = vld [vmem:[#allocation2 + $0xd8] sm:$0xf0]  ;;  %v2587_v6 = vld [vmem:[#allocation2 + $0x1cc] sm:$0xf]  ;;  %v1869_v8 = vor.u32 %v2557_v62, %v1868_v61 }
  0x33   :  { %564 = vmatpush.bf16.msra.mxu3 %v1913_v30  ;;  %v1998_v7 = vld [vmem:[#allocation2 + $0x1d8] sm:$0xf0]  ;;  %v1997_v9 = vor.u32 %v2589_v1, %v1996_v63  ;;  %v1873_v10 = vor.u32 %v2555_v2, %v1870_v3  ;;  %v1852_v11 = vld [vmem:[#allocation2 + $0xa8] sm:$0xf]  ;;  %v2553_v12 = vld [vmem:[#allocation2 + $0xb4] sm:$0xf0] }
  0x34   :  { %523 = vmatpush.bf16.msra.mxu0 %v1765_v43  ;;  %v2973_v4 = vpack.c.bf16 %v118_v59, %v116_v55  ;;  %v2975_v5 = vpack.c.bf16 %v119_v60, %v117_v56  ;;  %v1980_v13 = vld [vmem:[#allocation2 + $0x1a8] sm:$0xf]  ;;  %v2001_v14 = vor.u32 %v2587_v6, %v1998_v7  ;;  %v2585_v15 = vld [vmem:[#allocation2 + $0x1b4] sm:$0xf0]  ;;  %v2551_v16 = vld [vmem:[#allocation2 + $0xac] sm:$0xf]  ;;  %v1853_v20 = vor.u32 %v2553_v12, %v1852_v11 }
  0x35   :  { %537 = vmatpush.bf16.msra.mxu1 %v1893_v48  ;;  %v1854_v17 = vld [vmem:[#allocation2 + $0xb8] sm:$0xf0]  ;;  %v2583_v18 = vld [vmem:[#allocation2 + $0x1ac] sm:$0xf]  ;;  %v1981_v21 = vor.u32 %v2585_v15, %v1980_v13  ;;  %v1836_v23 = vld [vmem:[#allocation2 + $0x88] sm:$0xf] }
  0x36   :  { %551 = vmatpush.bf16.msra.mxu2 %v1769_v49  ;;  %v1982_v19 = vld [vmem:[#allocation2 + $0x1b8] sm:$0xf0]  ;;  %v1857_v22 = vor.u32 %v2551_v16, %v1854_v17  ;;  %v2549_v24 = vld [vmem:[#allocation2 + $0x94] sm:$0xf0]  ;;  %v1964_v25 = vld [vmem:[#allocation2 + $0x188] sm:$0xf] }
  0x37   :  { %565 = vmatpush.bf16.msra.mxu3 %v1897_v53  ;;  %524 = vmatmul.bf16.vlgmr.msra.gmra.mxu0 %v2973_v4  ;;  %v1985_v26 = vor.u32 %v2583_v18, %v1982_v19  ;;  %v2581_v27 = vld [vmem:[#allocation2 + $0x194] sm:$0xf0]  ;;  %v2547_v28 = vld [vmem:[#allocation2 + $0x8c] sm:$0xf]  ;;  %v1838_v29 = vld [vmem:[#allocation2 + $0x98] sm:$0xf0]  ;;  %v1837_v32 = vor.u32 %v2549_v24, %v1836_v23 }
  0x38   :  { %572 = vmatpush.bf16.msrb.mxu0 %v1885_v54  ;;  %538 = vmatmul.bf16.vlgmr.msra.gmra.mxu1 %v2975_v5  ;;  %v2579_v30 = vld [vmem:[#allocation2 + $0x18c] sm:$0xf]  ;;  %v1966_v31 = vld [vmem:[#allocation2 + $0x198] sm:$0xf0]  ;;  %v1965_v33 = vor.u32 %v2581_v27, %v1964_v25  ;;  %v1841_v34 = vor.u32 %v2547_v28, %v1838_v29  ;;  %v1820_v35 = vld [vmem:[#allocation2 + $0x68] sm:$0xf] }
  0x39   :  { %586 = vmatpush.bf16.msrb.mxu1 %v2013_v57  ;;  %552 = vmatmul.bf16.vlgmr.msra.gmra.mxu2 %v2973_v4  ;;  %v2545_v36 = vld [vmem:[#allocation2 + $0x74] sm:$0xf0]  ;;  %v1948_v37 = vld [vmem:[#allocation2 + $0x168] sm:$0xf]  ;;  %v1969_v38 = vor.u32 %v2579_v30, %v1966_v31  ;;  %v2543_v40 = vld [vmem:[#allocation2 + $0x6c] sm:$0xf] }
  0x3a   :  { %600 = vmatpush.bf16.msrb.mxu2 %v1889_v58  ;;  %566 = vmatmul.bf16.vlgmr.msra.gmra.mxu3 %v2975_v5  ;;  %v2577_v39 = vld [vmem:[#allocation2 + $0x174] sm:$0xf0]  ;;  %v1822_v41 = vld [vmem:[#allocation2 + $0x78] sm:$0xf0]  ;;  %v2575_v42 = vld [vmem:[#allocation2 + $0x16c] sm:$0xf]  ;;  %v1821_v44 = vor.u32 %v2545_v36, %v1820_v35 }
  0x3b   :  { %614 = vmatpush.bf16.msrb.mxu3 %v2017_v0  ;;  %v1950_v43 = vld [vmem:[#allocation2 + $0x178] sm:$0xf0]  ;;  %v1949_v45 = vor.u32 %v2577_v39, %v1948_v37  ;;  %v1825_v46 = vor.u32 %v2543_v40, %v1822_v41  ;;  %v1804_v47 = vld [vmem:[#allocation2 + $0x48] sm:$0xf]  ;;  %v2541_v48 = vld [vmem:[#allocation2 + $0x54] sm:$0xf0] }
  0x3c   :  { %573 = vmatpush.bf16.msrb.mxu0 %v1869_v8  ;;  %v1932_v49 = vld [vmem:[#allocation2 + $0x148] sm:$0xf]  ;;  %v1953_v50 = vor.u32 %v2575_v42, %v1950_v43  ;;  %v2573_v51 = vld [vmem:[#allocation2 + $0x154] sm:$0xf0]  ;;  %v2539_v52 = vld [vmem:[#allocation2 + $0x4c] sm:$0xf]  ;;  %v1805_v56 = vor.u32 %v2541_v48, %v1804_v47 }
  0x3d   :  { %587 = vmatpush.bf16.msrb.mxu1 %v1997_v9  ;;  %v1806_v53 = vld [vmem:[#allocation2 + $0x58] sm:$0xf0]  ;;  %v2571_v54 = vld [vmem:[#allocation2 + $0x14c] sm:$0xf]  ;;  %v1933_v57 = vor.u32 %v2573_v51, %v1932_v49  ;;  %v1788_v59 = vld [vmem:[#allocation2 + $0x28] sm:$0xf] }
  0x3e   :  { %601 = vmatpush.bf16.msrb.mxu2 %v1873_v10  ;;  %v1934_v55 = vld [vmem:[#allocation2 + $0x158] sm:$0xf0]  ;;  %v1809_v58 = vor.u32 %v2539_v52, %v1806_v53  ;;  %v2537_v60 = vld [vmem:[#allocation2 + $0x34] sm:$0xf0]  ;;  %v1916_v61 = vld [vmem:[#allocation2 + $0x128] sm:$0xf] }
  0x3f   :  { %615 = vmatpush.bf16.msrb.mxu3 %v2001_v14  ;;  %v1937_v62 = vor.u32 %v2571_v54, %v1934_v55  ;;  %v2569_v63 = vld [vmem:[#allocation2 + $0x134] sm:$0xf0]  ;;  %v2535_v0 = vld [vmem:[#allocation2 + $0x2c] sm:$0xf]  ;;  %v1790_v1 = vld [vmem:[#allocation2 + $0x38] sm:$0xf0]  ;;  %v1789_v6 = vor.u32 %v2537_v60, %v1788_v59 }
  0x40   :  { %574 = vmatpush.bf16.msrb.mxu0 %v1853_v20  ;;  %v2567_v2 = vld [vmem:[#allocation2 + $0x12c] sm:$0xf]  ;;  %v1918_v3 = vld [vmem:[#allocation2 + $0x138] sm:$0xf0]  ;;  %v1917_v7 = vor.u32 %v2569_v63, %v1916_v61  ;;  %v1793_v8 = vor.u32 %v2535_v0, %v1790_v1  ;;  %v1772_v9 = vld [vmem:[#allocation2 + $0x8] sm:$0xf] }
  0x41   :  { %588 = vmatpush.bf16.msrb.mxu1 %v1981_v21  ;;  %v2533_v10 = vld [vmem:[#allocation2 + $0x14] sm:$0xf0]  ;;  %v1900_v11 = vld [vmem:[#allocation2 + $0x108] sm:$0xf]  ;;  %v1921_v12 = vor.u32 %v2567_v2, %v1918_v3  ;;  %v2531_v14 = vld [vmem:[#allocation2 + $0xc] sm:$0xf] }
  0x42   :  { %602 = vmatpush.bf16.msrb.mxu2 %v1857_v22  ;;  %v2565_v13 = vld [vmem:[#allocation2 + $0x114] sm:$0xf0]  ;;  %v1774_v15 = vld [vmem:[#allocation2 + $0x18] sm:$0xf0]  ;;  %v2563_v16 = vld [vmem:[#allocation2 + $0x10c] sm:$0xf]  ;;  %v1773_v18 = vor.u32 %v2533_v10, %v1772_v9 }
  0x43   :  { %616 = vmatpush.bf16.msrb.mxu3 %v1985_v26  ;;  %v1902_v17 = vld [vmem:[#allocation2 + $0x118] sm:$0xf0]  ;;  %v1901_v19 = vor.u32 %v2565_v13, %v1900_v11  ;;  %v1777_v20 = vor.u32 %v2531_v14, %v1774_v15  ;;  %v2600_v24 = vld [vmem:[#allocation5 + $0x30] sm:$0xff]  ;;  %v2599_v26 = vld [vmem:[#allocation5 + $0x28] sm:$0xff] }
  0x44   :  { %575 = vmatpush.bf16.msrb.mxu0 %v1837_v32  ;;  %v1905_v21 = vor.u32 %v2563_v16, %v1902_v17  ;;  %v2601_v22 = vld [vmem:[#allocation5 + $0x38] sm:$0xff]  ;;  %v2608_v25 = vld [vmem:[#allocation5 + $0x70] sm:$0xff]  ;;  %v2607_v27 = vld [vmem:[#allocation5 + $0x68] sm:$0xff] }
  0x45   :  { %589 = vmatpush.bf16.msrb.mxu1 %v1965_v33  ;;  %v2609_v23 = vld [vmem:[#allocation5 + $0x78] sm:$0xff]  ;;  %v2598_v28 = vld [vmem:[#allocation5 + $0x20] sm:$0xff]  ;;  %v2596_v31 = vld [vmem:[#allocation5 + $0x10] sm:$0xff] }
  0x46   :  { %603 = vmatpush.bf16.msrb.mxu2 %v1841_v34  ;;  %v2597_v29 = vld [vmem:[#allocation5 + $0x18] sm:$0xff]  ;;  %v2606_v30 = vld [vmem:[#allocation5 + $0x60] sm:$0xff]  ;;  %v2595_v33 = vld [vmem:[#allocation5 + $0x8] sm:$0xff] }
  0x47   :  { %617 = vmatpush.bf16.msrb.mxu3 %v1969_v38  ;;  %v2605_v32 = vld [vmem:[#allocation5 + $0x58] sm:$0xff]  ;;  %v2603_v35 = vld [vmem:[#allocation5 + $0x48] sm:$0xff]  ;;  %v2616_v36 = vld [vmem:[#allocation5 + $0xb0] sm:$0xff] }
  0x48   :  { %576 = vmatpush.bf16.msrb.mxu0 %v1821_v44  ;;  %v2617_v34 = vld [vmem:[#allocation5 + $0xb8] sm:$0xff]  ;;  %v2602_v37 = vld [vmem:[#allocation5 + $0x40] sm:$0xff]  ;;  %v2615_v39 = vld [vmem:[#allocation5 + $0xa8] sm:$0xff] }
  0x49   :  { %590 = vmatpush.bf16.msrb.mxu1 %v1949_v45  ;;  %v2625_v38 = vld [vmem:[#allocation5 + $0xf8] sm:$0xff]  ;;  %v2624_v40 = vld [vmem:[#allocation5 + $0xf0] sm:$0xff]  ;;  %v2614_v41 = vld [vmem:[#allocation5 + $0xa0] sm:$0xff] }
  0x4a   :  { %604 = vmatpush.bf16.msrb.mxu2 %v1825_v46  ;;  %v2988_v42 = vld [vmem:[%s3016_s4] sm:$0xf]  ;;  %v2623_v43 = vld [vmem:[#allocation5 + $0xe8] sm:$0xff]  ;;  %v2613_v44 = vld [vmem:[#allocation5 + $0x98] sm:$0xff] }
  0x4b   :  { %618 = vmatpush.bf16.msrb.mxu3 %v1953_v50  ;;  %v188_v45 = vperm.slane %v2988_v42, 0  ;;  %v2622_v47 = vld [vmem:[#allocation5 + $0xe0] sm:$0xff]  ;;  %v2612_v49 = vld [vmem:[#allocation5 + $0x90] sm:$0xff]  ;;  %v189_v51 = vperm.slane %v2988_v42, 1  ;;  %v2621_v52 = vld [vmem:[#allocation5 + $0xd8] sm:$0xff]  ;;  %v190_v16 = vperm.slane %v2988_v42, 2 }
  0x4c   :  { %577 = vmatpush.bf16.msrb.mxu0 %v1805_v56  ;;  %v2611_v55 = vld [vmem:[#allocation5 + $0x88] sm:$0xff]  ;;  %v2620_v59 = vld [vmem:[#allocation5 + $0xd0] sm:$0xff] }
  0x4d   :  { %591 = vmatpush.bf16.msrb.mxu1 %v1933_v57  ;;  %v2619_v2 = vld [vmem:[#allocation5 + $0xc8] sm:$0xff] }
  0x4e   :  { %605 = vmatpush.bf16.msrb.mxu2 %v1809_v58 }
  0x4f   :  { %619 = vmatpush.bf16.msrb.mxu3 %v1937_v62  ;;  %v2610_v62 = vld [vmem:[#allocation5 + $0x80] sm:$0xff] }
  0x50   :  { %578 = vmatpush.bf16.msrb.mxu0 %v1789_v6 }
  0x51   :  { %592 = vmatpush.bf16.msrb.mxu1 %v1917_v7 }
  0x52   :  { %606 = vmatpush.bf16.msrb.mxu2 %v1793_v8 }
  0x53   :  { %620 = vmatpush.bf16.msrb.mxu3 %v1921_v12  ;;  %v2618_v12 = vld [vmem:[#allocation5 + $0xc0] sm:$0xff] }
  0x54   :  { %579 = vmatpush.bf16.msrb.mxu0 %v1773_v18 }
  0x55   :  { %593 = vmatpush.bf16.msrb.mxu1 %v1901_v19 }
  0x56   :  { %607 = vmatpush.bf16.msrb.mxu2 %v1777_v20  ;;  %v191_v20 = vperm.slane %v2988_v42, 3  ;;  %v2268_v42 = vld [vmem:[#allocation7 + $0xe8] sm:$0xf] }
  0x57   :  { %621 = vmatpush.bf16.msrb.mxu3 %v1905_v21  ;;  %580 = vmatmul.bf16.vlgmr.msrb.gmra.mxu0 %v2973_v4 }
  0x58   :  { %900 = vmatpush.bf16.msra.mxu0 %v2601_v22  ;;  %594 = vmatmul.bf16.vlgmr.msrb.gmra.mxu1 %v2975_v5 }
  0x59   :  { %914 = vmatpush.bf16.msra.mxu1 %v2609_v23  ;;  %608 = vmatmul.bf16.vlgmr.msrb.gmra.mxu2 %v2973_v4  ;;  %v2604_v4 = vld [vmem:[#allocation5 + $0x50] sm:$0xff] }
  0x5a   :  { %622 = vmatmul.bf16.vlgmr.msrb.gmra.mxu3 %v2975_v5  ;;  %v2594_v5 = vld [vmem:[#allocation5] sm:$0xff]  ;;  %928 = vmatpush.bf16.msra.mxu2 %v2617_v34 }
  0x5b   :  { %942 = vmatpush.bf16.msra.mxu3 %v2625_v38  ;;  %v2656_v38 = vld [vmem:[#allocation7 + $0xec] sm:$0xf0] }
  0x5c   :  { %901 = vmatpush.bf16.msra.mxu0 %v2600_v24 }
  0x5d   :  { %915 = vmatpush.bf16.msra.mxu1 %v2608_v25 }
  0x5e   :  { %929 = vmatpush.bf16.msra.mxu2 %v2616_v36 }
  0x5f   :  { %943 = vmatpush.bf16.msra.mxu3 %v2624_v40 }
  0x60   :  { %902 = vmatpush.bf16.msra.mxu0 %v2599_v26 }
  0x61   :  { %916 = vmatpush.bf16.msra.mxu1 %v2607_v27 }
  0x62   :  { %930 = vmatpush.bf16.msra.mxu2 %v2615_v39  ;;  %v2654_v39 = vld [vmem:[#allocation7 + $0xe4] sm:$0xf] }
  0x63   :  { %944 = vmatpush.bf16.msra.mxu3 %v2623_v43  ;;  %v2657_v43 = vld [vmem:[#allocation7 + $0xf4] sm:$0xf0] }
  0x64   :  { %903 = vmatpush.bf16.msra.mxu0 %v2598_v28 }
  0x65   :  { %917 = vmatpush.bf16.msra.mxu1 %v2606_v30 }
  0x66   :  { %931 = vmatpush.bf16.msra.mxu2 %v2614_v41  ;;  %v2262_v41 = vld [vmem:[#allocation7 + $0xf0] sm:$0xf0] }
  0x67   :  { %945 = vmatpush.bf16.msra.mxu3 %v2622_v47  ;;  %v2270_v47 = vld [vmem:[#allocation7 + $0xf8] sm:$0xf0] }
  0x68   :  { %904 = vmatpush.bf16.msra.mxu0 %v2597_v29 }
  0x69   :  { %918 = vmatpush.bf16.msra.mxu1 %v2605_v32 }
  0x6a   :  { %932 = vmatpush.bf16.msra.mxu2 %v2613_v44  ;;  %v2265_v44 = vor.u32 %v2654_v39, %v2262_v41  ;;  %v2635_v41 = vld [vmem:[#allocation7 + $0x4c] sm:$0xf] }
  0x6b   :  { %946 = vmatpush.bf16.msra.mxu3 %v2621_v52  ;;  %v2246_v52 = vld [vmem:[#allocation7 + $0xd0] sm:$0xf0] }
  0x6c   :  { %905 = vmatpush.bf16.msra.mxu0 %v2596_v31 }
  0x6d   :  { %919 = vmatpush.bf16.msra.mxu1 %v2604_v4 }
  0x6e   :  { %933 = vmatpush.bf16.msra.mxu2 %v2612_v49 }
  0x6f   :  { %947 = vmatpush.bf16.msra.mxu3 %v2620_v59  ;;  %v2254_v59 = vld [vmem:[#allocation7 + $0xd8] sm:$0xf0] }
  0x70   :  { %906 = vmatpush.bf16.msra.mxu0 %v2595_v33 }
  0x71   :  { %920 = vmatpush.bf16.msra.mxu1 %v2603_v35 }
  0x72   :  { %934 = vmatpush.bf16.msra.mxu2 %v2611_v55  ;;  %v2252_v55 = vld [vmem:[#allocation7 + $0xc8] sm:$0xf] }
  0x73   :  { %948 = vmatpush.bf16.msra.mxu3 %v2619_v2 }
  0x74   :  { %907 = vmatpush.bf16.msra.mxu0 %v2594_v5 }
  0x75   :  { %921 = vmatpush.bf16.msra.mxu1 %v2602_v37  ;;  %v2260_v37 = vld [vmem:[#allocation7 + $0xe0] sm:$0xf] }
  0x76   :  { %935 = vmatpush.bf16.msra.mxu2 %v2610_v62  ;;  %v2261_v40 = vor.u32 %v2656_v38, %v2260_v37  ;;  %v2182_v37 = vld [vmem:[#allocation7 + $0x50] sm:$0xf0]  ;;  %v2188_v38 = vld [vmem:[#allocation7 + $0x48] sm:$0xf] }
  0x77   :  { %949 = vmatpush.bf16.msra.mxu3 %v2618_v12  ;;  %v2644_v12 = vld [vmem:[#allocation7 + $0x8c] sm:$0xf0] }
  0x78   :  { %1167 = vmatpush.bf16.msrb.mxu0 %v2261_v40  ;;  %v2637_v40 = vld [vmem:[#allocation7 + $0x54] sm:$0xf0] }
  0x79   :  { %1181 = vmatpush.bf16.msrb.mxu1 %v2265_v44 }
  0xb4   :  { %v525_v46 = vpop.f32.mrf.mxu0 }
  0xb5   :  { %v539_v48 = vpop.f32.mrf.mxu1  ;;  %v526_v50 = vadd.f32 %v525_v46, %v188_v45  ;;  %v2655_v46 = vld [vmem:[#allocation7 + $0xec] sm:$0xf] }
  0xb6   :  { %v2273_v49 = vor.u32 %v2655_v46, %v2270_v47  ;;  %v2632_v46 = vld [vmem:[#allocation7 + $0x2c] sm:$0xf0]  ;;  %v2630_v47 = vld [vmem:[#allocation7 + $0x24] sm:$0xf] }
  0xb7   :  { %v540_v56 = vadd.f32 %v539_v48, %v526_v50  ;;  %v2244_v48 = vld [vmem:[#allocation7 + $0xc0] sm:$0xf]  ;;  %v2652_v50 = vld [vmem:[#allocation7 + $0xcc] sm:$0xf0] }
  0xb8   :  { %1209 = vmatpush.bf16.msrb.mxu3 %v2273_v49  ;;  %v2166_v49 = vld [vmem:[#allocation7 + $0x30] sm:$0xf0] }
  0xb9   :  { %v628_v63 = vmax.f32 %v540_v56, 0.0  ;;  %v2653_v56 = vld [vmem:[#allocation7 + $0xd4] sm:$0xf0] }
  0xbc   :  { %v553_v53 = vpop.f32.mrf.mxu2  ;;  %v527_v58 = vpop.f32.mrf.mxu0 }
  0xbd   :  { %v567_v54 = vpop.f32.mrf.mxu3  ;;  %v554_v57 = vadd.f32 %v553_v53, %v189_v51  ;;  %v528_v60 = vadd.f32 %v527_v58, %v188_v45  ;;  %v541_v61 = vpop.f32.mrf.mxu1  ;;  %v2269_v45 = vor.u32 %v2657_v43, %v2268_v42  ;;  %v2245_v53 = vor.u32 %v2652_v50, %v2244_v48  ;;  %v2190_v42 = vld [vmem:[#allocation7 + $0x58] sm:$0xf0]  ;;  %v2172_v50 = vld [vmem:[#allocation7 + $0x28] sm:$0xf] }
  0xbe   :  { %v2253_v58 = vor.u32 %v2653_v56, %v2252_v55  ;;  %v2189_v43 = vor.u32 %v2637_v40, %v2188_v38  ;;  %v2193_v44 = vor.u32 %v2635_v41, %v2190_v42  ;;  %v2174_v55 = vld [vmem:[#allocation7 + $0x38] sm:$0xf0]  ;;  %v2701_v40 = vld [vmem:[#allocation8 + $0x154] sm:$0xf0]  ;;  %v2508_v41 = vld [vmem:[#allocation8 + $0x1d0] sm:$0xf] }
  0xbf   :  { %v542_v0 = vadd.f32 %v541_v61, %v528_v60  ;;  %v568_v1 = vadd.f32 %v567_v54, %v554_v57  ;;  %1195 = vmatpush.bf16.msrb.mxu2 %v2269_v45  ;;  %v2651_v57 = vld [vmem:[#allocation7 + $0xcc] sm:$0xf]  ;;  %v2228_v60 = vld [vmem:[#allocation7 + $0xa0] sm:$0xf]  ;;  %v2648_v61 = vld [vmem:[#allocation7 + $0xac] sm:$0xf0]  ;;  %1168 = vmatpush.bf16.msrb.mxu0 %v2245_v53 }
  0xc0   :  { %v2257_v62 = vor.u32 %v2651_v57, %v2254_v59  ;;  %v2229_v2 = vor.u32 %v2648_v61, %v2228_v60  ;;  %v2164_v45 = vld [vmem:[#allocation7 + $0x20] sm:$0xf]  ;;  %v2626_v60 = vld [vmem:[#allocation7 + $0x4] sm:$0xf]  ;;  %v2150_v61 = vld [vmem:[#allocation7 + $0x10] sm:$0xf0] }
  0xc1   :  { %v632_v3 = vmax.f32 %v542_v0, 0.0  ;;  %v629_v10 = vmax.f32 %v568_v1, 0.0  ;;  %v2230_v0 = vld [vmem:[#allocation7 + $0xb0] sm:$0xf0]  ;;  %v2236_v1 = vld [vmem:[#allocation7 + $0xa8] sm:$0xf]  ;;  %v2165_v48 = vor.u32 %v2632_v46, %v2164_v45 }
  0xc2   :  { %1210 = vmatpush.bf16.msrb.mxu3 %v2257_v62  ;;  %v2148_v57 = vld [vmem:[#allocation7] sm:$0xf]  ;;  %v2156_v62 = vld [vmem:[#allocation7 + $0x8] sm:$0xf] }
  0xc3   :  { %v636_v9 = vpack.c.bf16 %v632_v3, %v628_v63  ;;  %v2646_v63 = vld [vmem:[#allocation7 + $0xa4] sm:$0xf]  ;;  %v2649_v3 = vld [vmem:[#allocation7 + $0xb4] sm:$0xf0]  ;;  %1196 = vmatpush.bf16.msrb.mxu2 %v2253_v58  ;;  %1169 = vmatpush.bf16.msrb.mxu0 %v2229_v2  ;;  %v2628_v58 = vld [vmem:[#allocation7 + $0xc] sm:$0xf0] }
  0xc4   :  { %v555_v6 = vpop.f32.mrf.mxu2  ;;  %v2149_v59 = vor.u32 %v2628_v58, %v2148_v57  ;;  %v2158_v2 = vld [vmem:[#allocation7 + $0x18] sm:$0xf0]  ;;  %v2372_v42 = vld [vmem:[#allocation8 + $0xc0] sm:$0xf]  ;;  %v2364_v57 = vld [vmem:[#allocation8 + $0xb0] sm:$0xf] }
  0xc5   :  { %v556_v7 = vadd.f32 %v555_v6, %v189_v51  ;;  %v569_v8 = vpop.f32.mrf.mxu3  ;;  %908 = vmatmul.bf16.vlgmr.msra.gmra.mxu0 %v636_v9  ;;  %v2650_v51 = vld [vmem:[#allocation7 + $0xc4] sm:$0xf]  ;;  %v2647_v6 = vld [vmem:[#allocation7 + $0xac] sm:$0xf]  ;;  %v2237_v9 = vor.u32 %v2649_v3, %v2236_v1  ;;  %v2737_v45 = vld [vmem:[%s3018_s6] ss:$0 sm:$0xff] }
  0xc6   :  { %v2249_v54 = vor.u32 %v2650_v51, %v2246_v52  ;;  %v2633_v51 = vld [vmem:[#allocation7 + $0x34] sm:$0xf0]  ;;  %v2169_v52 = vor.u32 %v2630_v47, %v2166_v49  ;;  %v2627_v1 = vld [vmem:[#allocation7 + $0xc] sm:$0xf]  ;;  %v2436_v49 = vld [vmem:[#allocation8 + $0x140] sm:$0xf] }
  0xc7   :  { %v570_v11 = vadd.f32 %v569_v8, %v556_v7  ;;  %v2238_v7 = vld [vmem:[#allocation7 + $0xb8] sm:$0xf0]  ;;  %v2233_v8 = vor.u32 %v2646_v63, %v2230_v0  ;;  %1197 = vmatpush.bf16.msrb.mxu2 %v2237_v9  ;;  %v2173_v53 = vor.u32 %v2633_v51, %v2172_v50  ;;  %v2153_v63 = vor.u32 %v2626_v60, %v2150_v61  ;;  %v2629_v0 = vld [vmem:[#allocation7 + $0x14] sm:$0xf0]  ;;  %v2396_v9 = vld [vmem:[#allocation8 + $0xf0] sm:$0xf] }
  0xc8   :  { %1182 = vmatpush.bf16.msrb.mxu1 %v2249_v54  ;;  %v2631_v54 = vld [vmem:[#allocation7 + $0x2c] sm:$0xf]  ;;  %v2157_v3 = vor.u32 %v2629_v0, %v2156_v62  ;;  %v2699_v51 = vld [vmem:[#allocation8 + $0x144] sm:$0xf0]  ;;  %v2681_v58 = vld [vmem:[#allocation8 + $0xb4] sm:$0xf0] }
  0xc9   :  { %v633_v13 = vmax.f32 %v570_v11, 0.0  ;;  %v2212_v11 = vld [vmem:[#allocation7 + $0x80] sm:$0xf]  ;;  %v2177_v56 = vor.u32 %v2631_v54, %v2174_v55  ;;  %v2300_v55 = vld [vmem:[#allocation8 + $0x30] sm:$0xf]  ;;  %v2437_v60 = vor.u32 %v2699_v51, %v2436_v49 }
  0xca   :  { %v2428_v62 = vld [vmem:[#allocation8 + $0x130] sm:$0xf]  ;;  %v2334_v51 = vld [vmem:[#allocation8 + $0x78] sm:$0xf0] }
  0xcb   :  { %v637_v14 = vpack.c.bf16 %v633_v13, %v629_v10  ;;  %v2241_v10 = vor.u32 %v2647_v6, %v2238_v7  ;;  %v2642_v13 = vld [vmem:[#allocation7 + $0x84] sm:$0xf]  ;;  %v2161_v6 = vor.u32 %v2627_v1, %v2158_v2  ;;  %v2332_v7 = vld [vmem:[#allocation8 + $0x70] sm:$0xf]  ;;  %v2697_v1 = vld [vmem:[#allocation8 + $0x134] sm:$0xf0] }
  0xcc   :  { %1183 = vmatpush.bf16.msrb.mxu1 %v2233_v8  ;;  %v2673_v8 = vld [vmem:[#allocation8 + $0x74] sm:$0xf0]  ;;  %v2492_v2 = vld [vmem:[#allocation8 + $0x1b0] sm:$0xf] }
  0xcd   :  { %922 = vmatmul.bf16.vlgmr.msra.gmra.mxu1 %v637_v14  ;;  %1211 = vmatpush.bf16.msrb.mxu3 %v2241_v10  ;;  %v2213_v14 = vor.u32 %v2644_v12, %v2212_v11  ;;  %v2333_v10 = vor.u32 %v2673_v8, %v2332_v7  ;;  %v2689_v11 = vld [vmem:[#allocation8 + $0xf4] sm:$0xf0]  ;;  %v2324_v12 = vld [vmem:[#allocation8 + $0x60] sm:$0xf]  ;;  %v2365_v8 = vor.u32 %v2681_v58, %v2364_v57 }
  0xcf   :  { %1170 = vmatpush.bf16.msrb.mxu0 %v2213_v14  ;;  %v2397_v14 = vor.u32 %v2689_v11, %v2396_v9  ;;  %v2292_v9 = vld [vmem:[#allocation8 + $0x20] sm:$0xf] }
  0xd0   :  { %v2356_v11 = vld [vmem:[#allocation8 + $0xa0] sm:$0xf] }
  0xd4   :  { %v581_v15 = vpop.f32.mrf.mxu0 }
  0xd5   :  { %v595_v17 = vpop.f32.mrf.mxu1  ;;  %v582_v18 = vadd.f32 %v581_v15, %v190_v16  ;;  %v2214_v15 = vld [vmem:[#allocation7 + $0x90] sm:$0xf0] }
  0xd7   :  { %v596_v23 = vadd.f32 %v595_v17, %v582_v18  ;;  %v2645_v17 = vld [vmem:[#allocation7 + $0x94] sm:$0xf0]  ;;  %v2217_v18 = vor.u32 %v2642_v13, %v2214_v15  ;;  %v2671_v13 = vld [vmem:[#allocation8 + $0x64] sm:$0xf0]  ;;  %v2388_v15 = vld [vmem:[#allocation8 + $0xe0] sm:$0xf] }
  0xd9   :  { %v630_v28 = vmax.f32 %v596_v23, 0.0  ;;  %1184 = vmatpush.bf16.msrb.mxu1 %v2217_v18  ;;  %v2196_v23 = vld [vmem:[#allocation7 + $0x60] sm:$0xf]  ;;  %v2325_v18 = vor.u32 %v2671_v13, %v2324_v12  ;;  %v2679_v12 = vld [vmem:[#allocation8 + $0xa4] sm:$0xf0] }
  0xdc   :  { %v609_v19 = vpop.f32.mrf.mxu2  ;;  %v583_v22 = vpop.f32.mrf.mxu0 }
  0xdd   :  { %v623_v21 = vpop.f32.mrf.mxu3  ;;  %v584_v24 = vadd.f32 %v583_v22, %v190_v16  ;;  %v597_v25 = vpop.f32.mrf.mxu1  ;;  %v610_v27 = vadd.f32 %v609_v19, %v191_v20  ;;  %v2220_v16 = vld [vmem:[#allocation7 + $0x88] sm:$0xf] }
  0xde   :  { %v2221_v19 = vor.u32 %v2645_v17, %v2220_v16  ;;  %v2687_v16 = vld [vmem:[#allocation8 + $0xe4] sm:$0xf0]  ;;  %v2460_v17 = vld [vmem:[#allocation8 + $0x170] sm:$0xf] }
  0xdf   :  { %v598_v26 = vadd.f32 %v597_v25, %v584_v24  ;;  %v624_v32 = vadd.f32 %v623_v21, %v610_v27  ;;  %v2222_v21 = vld [vmem:[#allocation7 + $0x98] sm:$0xf0]  ;;  %v2640_v24 = vld [vmem:[#allocation7 + $0x6c] sm:$0xf0]  ;;  %v2638_v25 = vld [vmem:[#allocation7 + $0x64] sm:$0xf] }
  0xe0   :  { %1198 = vmatpush.bf16.msrb.mxu2 %v2221_v19  ;;  %v2198_v27 = vld [vmem:[#allocation7 + $0x70] sm:$0xf0]  ;;  %v2705_v19 = vld [vmem:[#allocation8 + $0x174] sm:$0xf0] }
  0xe1   :  { %v634_v29 = vmax.f32 %v598_v26, 0.0  ;;  %v631_v34 = vmax.f32 %v624_v32, 0.0  ;;  %v2197_v26 = vor.u32 %v2640_v24, %v2196_v23  ;;  %v2206_v32 = vld [vmem:[#allocation7 + $0x78] sm:$0xf0]  ;;  %v2461_v23 = vor.u32 %v2705_v19, %v2460_v17  ;;  %v2420_v17 = vld [vmem:[#allocation8 + $0x120] sm:$0xf] }
  0xe3   :  { %v638_v30 = vpack.c.bf16 %v634_v29, %v630_v28  ;;  %v2204_v28 = vld [vmem:[#allocation7 + $0x68] sm:$0xf]  ;;  %v2201_v29 = vor.u32 %v2638_v25, %v2198_v27  ;;  %1171 = vmatpush.bf16.msrb.mxu0 %v2197_v26  ;;  %v2316_v25 = vld [vmem:[#allocation8 + $0x50] sm:$0xf]  ;;  %v2669_v26 = vld [vmem:[#allocation8 + $0x54] sm:$0xf0] }
  0xe4   :  { %v611_v31 = vpop.f32.mrf.mxu2  ;;  %v2380_v27 = vld [vmem:[#allocation8 + $0xd0] sm:$0xf] }
  0xe5   :  { %v612_v33 = vadd.f32 %v611_v31, %v191_v20  ;;  %v625_v4 = vpop.f32.mrf.mxu3  ;;  %936 = vmatmul.bf16.vlgmr.msra.gmra.mxu2 %v638_v30  ;;  %v2643_v20 = vld [vmem:[#allocation7 + $0x8c] sm:$0xf]  ;;  %v2641_v30 = vld [vmem:[#allocation7 + $0x74] sm:$0xf0]  ;;  %1185 = vmatpush.bf16.msrb.mxu1 %v2201_v29  ;;  %v2452_v29 = vld [vmem:[#allocation8 + $0x160] sm:$0xf] }
  0xe6   :  { %v2225_v22 = vor.u32 %v2643_v20, %v2222_v21  ;;  %v2639_v31 = vld [vmem:[#allocation7 + $0x6c] sm:$0xf]  ;;  %v2524_v20 = vld [vmem:[#allocation8 + $0x1f0] sm:$0xf]  ;;  %v2721_v21 = vld [vmem:[#allocation8 + $0x1f4] sm:$0xf0] }
  0xe7   :  { %v626_v5 = vadd.f32 %v625_v4, %v612_v33  ;;  %v2205_v33 = vor.u32 %v2641_v30, %v2204_v28  ;;  %v2209_v4 = vor.u32 %v2639_v31, %v2206_v32  ;;  %v2525_v24 = vor.u32 %v2721_v21, %v2524_v20  ;;  %v2685_v28 = vld [vmem:[#allocation8 + $0xd4] sm:$0xf0]  ;;  %v2703_v30 = vld [vmem:[#allocation8 + $0x164] sm:$0xf0] }
  0xe8   :  { %1212 = vmatpush.bf16.msrb.mxu3 %v2225_v22  ;;  %v2389_v22 = vor.u32 %v2687_v16, %v2388_v15  ;;  %v2453_v32 = vor.u32 %v2703_v30, %v2452_v29  ;;  %v2381_v38 = vor.u32 %v2685_v28, %v2380_v27  ;;  %v2429_v15 = vor.u32 %v2697_v1, %v2428_v62  ;;  %v2284_v27 = vld [vmem:[#allocation8 + $0x10] sm:$0xf]  ;;  %v2661_v28 = vld [vmem:[#allocation8 + $0x14] sm:$0xf0]  ;;  %v2670_v62 = vld [vmem:[#allocation8 + $0x64] sm:$0xf] }
  0xe9   :  { %v635_v35 = vmax.f32 %v626_v5, 0.0  ;;  %v2180_v5 = vld [vmem:[#allocation7 + $0x40] sm:$0xf]  ;;  %1199 = vmatpush.bf16.msrb.mxu2 %v2205_v33 }
  0xea   :  { %v2516_v33 = vld [vmem:[#allocation8 + $0x1e0] sm:$0xf] }
  0xeb   :  { %v639_v36 = vpack.c.bf16 %v635_v35, %v631_v34  ;;  %v2636_v34 = vld [vmem:[#allocation7 + $0x4c] sm:$0xf0] }
  0xec   :  { %1213 = vmatpush.bf16.msrb.mxu3 %v2209_v4  ;;  %v2181_v35 = vor.u32 %v2636_v34, %v2180_v5  ;;  %v2719_v4 = vld [vmem:[#allocation8 + $0x1e4] sm:$0xf0]  ;;  %v2317_v5 = vor.u32 %v2669_v26, %v2316_v25  ;;  %v2357_v26 = vor.u32 %v2679_v12, %v2356_v11  ;;  %v2704_v12 = vld [vmem:[#allocation8 + $0x174] sm:$0xf] }
  0xed   :  { %950 = vmatmul.bf16.vlgmr.msra.gmra.mxu3 %v639_v36  ;;  %v2634_v36 = vld [vmem:[#allocation7 + $0x44] sm:$0xf]  ;;  %1200 = vmatpush.bf16.msrb.mxu2 %v2189_v43  ;;  %v2517_v34 = vor.u32 %v2719_v4, %v2516_v33  ;;  %v2683_v43 = vld [vmem:[#allocation8 + $0xc4] sm:$0xf0] }
  0xee   :  { %v2185_v39 = vor.u32 %v2634_v36, %v2182_v37  ;;  %1172 = vmatpush.bf16.msrb.mxu0 %v2181_v35  ;;  %v2308_v35 = vld [vmem:[#allocation8 + $0x40] sm:$0xf]  ;;  %v2667_v36 = vld [vmem:[#allocation8 + $0x44] sm:$0xf0]  ;;  %v2373_v54 = vor.u32 %v2683_v43, %v2372_v42 }
  0xef   :  { %v2309_v50 = vor.u32 %v2667_v36, %v2308_v35  ;;  %v2659_v42 = vld [vmem:[#allocation8 + $0x4] sm:$0xf0]  ;;  %v2340_v43 = vld [vmem:[#allocation8 + $0x80] sm:$0xf] }
  0xf0   :  { %1186 = vmatpush.bf16.msrb.mxu1 %v2185_v39  ;;  %1214 = vmatpush.bf16.msrb.mxu3 %v2193_v44  ;;  %v2444_v39 = vld [vmem:[#allocation8 + $0x150] sm:$0xf]  ;;  %v2717_v44 = vld [vmem:[#allocation8 + $0x1d4] sm:$0xf0] }
  0xf1   :  { %1201 = vmatpush.bf16.msrb.mxu2 %v2173_v53  ;;  %v2445_v47 = vor.u32 %v2701_v40, %v2444_v39  ;;  %v2715_v53 = vld [vmem:[#allocation8 + $0x1c4] sm:$0xf0] }
  0xf2   :  { %1173 = vmatpush.bf16.msrb.mxu0 %v2165_v48  ;;  %v2509_v48 = vor.u32 %v2717_v44, %v2508_v41  ;;  %v2276_v41 = vld [vmem:[#allocation8] sm:$0xf]  ;;  %v2675_v44 = vld [vmem:[#allocation8 + $0x84] sm:$0xf0] }
  0xf3   :  { %v2341_v49 = vor.u32 %v2675_v44, %v2340_v43  ;;  %v2366_v44 = vld [vmem:[#allocation8 + $0xb8] sm:$0xf0] }
  0xf4   :  { %1187 = vmatpush.bf16.msrb.mxu1 %v2169_v52  ;;  %1215 = vmatpush.bf16.msrb.mxu3 %v2177_v56  ;;  %v2500_v52 = vld [vmem:[#allocation8 + $0x1c0] sm:$0xf]  ;;  %v2665_v56 = vld [vmem:[#allocation8 + $0x34] sm:$0xf0] }
  0xf5   :  { %1202 = vmatpush.bf16.msrb.mxu2 %v2157_v3  ;;  %v2501_v61 = vor.u32 %v2715_v53, %v2500_v52  ;;  %v2301_v0 = vor.u32 %v2665_v56, %v2300_v55  ;;  %v2713_v3 = vld [vmem:[#allocation8 + $0x1b4] sm:$0xf0]  ;;  %v2688_v52 = vld [vmem:[#allocation8 + $0xf4] sm:$0xf]  ;;  %v2412_v55 = vld [vmem:[#allocation8 + $0x110] sm:$0xf] }
  0xf6   :  { %1174 = vmatpush.bf16.msrb.mxu0 %v2149_v59  ;;  %v2723_v59 = vld [vmem:[%s3014_s2] sm:$0xff]   ;;  %v2493_v16 = vor.u32 %v2713_v3, %v2492_v2  ;;  %v2693_v56 = vld [vmem:[#allocation8 + $0x114] sm:$0xf0]  ;;  %v2390_v2 = vld [vmem:[#allocation8 + $0xe8] sm:$0xf0] }
  0xf7   :  { %v2725_v20 = vunpack.c.h.bf16 %v2723_v59  ;;  %v2413_v58 = vor.u32 %v2693_v56, %v2412_v55  ;;  %v2404_v3 = vld [vmem:[#allocation8 + $0x100] sm:$0xf]  ;;  %v2358_v56 = vld [vmem:[#allocation8 + $0xa8] sm:$0xf0] }
  0xf8   :  { %1188 = vmatpush.bf16.msrb.mxu1 %v2153_v63  ;;  %1216 = vmatpush.bf16.msrb.mxu3 %v2161_v6 }
  0xf9   :  { %1653 = vmatpush.bf16.msra.mxu2 %v2461_v23  ;;  %v2484_v23 = vld [vmem:[#allocation8 + $0x1a0] sm:$0xf]  ;;  %v961_v36 = vmul.f32 0.05, %v2725_v20  ;;  %v2684_v20 = vld [vmem:[#allocation8 + $0xd4] sm:$0xf] }
  0xfa   :  { %1625 = vmatpush.bf16.msra.mxu0 %v2333_v10  ;;  %v2663_v10 = vld [vmem:[#allocation8 + $0x24] sm:$0xf0] }
  0xfb   :  { %v2293_v21 = vor.u32 %v2663_v10, %v2292_v9  ;;  %v2468_v9 = vld [vmem:[#allocation8 + $0x180] sm:$0xf]  ;;  %v2707_v10 = vld [vmem:[#allocation8 + $0x184] sm:$0xf0] }
  0xfc   :  { %1639 = vmatpush.bf16.msra.mxu1 %v2397_v14  ;;  %1667 = vmatpush.bf16.msra.mxu3 %v2525_v24  ;;  %v2724_v14 = vunpack.c.l.bf16 %v2723_v59  ;;  %v2711_v24 = vld [vmem:[#allocation8 + $0x1a4] sm:$0xf0]  ;;  %v2476_v59 = vld [vmem:[#allocation8 + $0x190] sm:$0xf]  ;;  %v2469_v11 = vor.u32 %v2707_v10, %v2468_v9 }
  0xfd   :  { %1654 = vmatpush.bf16.msra.mxu2 %v2453_v32  ;;  %v2677_v32 = vld [vmem:[#allocation8 + $0x94] sm:$0xf0] }
  0xfe   :  { %1626 = vmatpush.bf16.msra.mxu0 %v2325_v18  ;;  %v960_v33 = vmul.f32 0.05, %v2724_v14  ;;  %v2720_v14 = vld [vmem:[#allocation8 + $0x1f4] sm:$0xf] }
 0x100   :  { %1640 = vmatpush.bf16.msra.mxu1 %v2389_v22  ;;  %1668 = vmatpush.bf16.msra.mxu3 %v2517_v34  ;;  %v2695_v22 = vld [vmem:[#allocation8 + $0x124] sm:$0xf0] }
 0x101   :  { %1655 = vmatpush.bf16.msra.mxu2 %v2445_v47  ;;  %v2421_v4 = vor.u32 %v2695_v22, %v2420_v17  ;;  %v2668_v17 = vld [vmem:[#allocation8 + $0x54] sm:$0xf] }
 0x102   :  { %1627 = vmatpush.bf16.msra.mxu0 %v2317_v5  ;;  %v2485_v5 = vor.u32 %v2711_v24, %v2484_v23  ;;  %v2702_v24 = vld [vmem:[#allocation8 + $0x164] sm:$0xf] }
 0x104   :  { %1641 = vmatpush.bf16.msra.mxu1 %v2381_v38  ;;  %1669 = vmatpush.bf16.msra.mxu3 %v2509_v48  ;;  %v2277_v48 = vor.u32 %v2659_v42, %v2276_v41  ;;  %v2302_v41 = vld [vmem:[#allocation8 + $0x38] sm:$0xf0]  ;;  %v2680_v42 = vld [vmem:[#allocation8 + $0xb4] sm:$0xf] }
 0x105   :  { %1656 = vmatpush.bf16.msra.mxu2 %v2437_v60  ;;  %v2709_v60 = vld [vmem:[#allocation8 + $0x194] sm:$0xf0] }
 0x106   :  { %1628 = vmatpush.bf16.msra.mxu0 %v2309_v50  ;;  %v2672_v50 = vld [vmem:[#allocation8 + $0x74] sm:$0xf] }
 0x107   :  { %v2337_v53 = vor.u32 %v2672_v50, %v2334_v51  ;;  %v2502_v50 = vld [vmem:[#allocation8 + $0x1c8] sm:$0xf0] }
 0x108   :  { %1642 = vmatpush.bf16.msra.mxu1 %v2373_v54  ;;  %1670 = vmatpush.bf16.msra.mxu3 %v2501_v61  ;;  %v2398_v54 = vld [vmem:[#allocation8 + $0xf8] sm:$0xf0]  ;;  %v2477_v61 = vor.u32 %v2709_v60, %v2476_v59  ;;  %v2712_v60 = vld [vmem:[#allocation8 + $0x1b4] sm:$0xf] }
 0x109   :  { %1657 = vmatpush.bf16.msra.mxu2 %v2429_v15  ;;  %v2401_v57 = vor.u32 %v2688_v52, %v2398_v54  ;;  %v2662_v52 = vld [vmem:[#allocation8 + $0x24] sm:$0xf]  ;;  %v2430_v59 = vld [vmem:[#allocation8 + $0x138] sm:$0xf0] }
 0x10a   :  { %1629 = vmatpush.bf16.msra.mxu0 %v2301_v0  ;;  %v2686_v0 = vld [vmem:[#allocation8 + $0xe4] sm:$0xf] }
 0x10b   :  { %v2678_v54 = vld [vmem:[#allocation8 + $0xa4] sm:$0xf] }
 0x10c   :  { %1643 = vmatpush.bf16.msra.mxu1 %v2365_v8  ;;  %1671 = vmatpush.bf16.msra.mxu3 %v2493_v16  ;;  %v2526_v16 = vld [vmem:[#allocation8 + $0x1f8] sm:$0xf0] }
 0x10d   :  { %1658 = vmatpush.bf16.msra.mxu2 %v2421_v4  ;;  %v2374_v4 = vld [vmem:[#allocation8 + $0xc8] sm:$0xf0] }
 0x10e   :  { %1630 = vmatpush.bf16.msra.mxu0 %v2293_v21  ;;  %v2382_v21 = vld [vmem:[#allocation8 + $0xd8] sm:$0xf0] }
 0x10f   :  { %v2385_v23 = vor.u32 %v2684_v20, %v2382_v21  ;;  %v2692_v20 = vld [vmem:[#allocation8 + $0x114] sm:$0xf]  ;;  %v2414_v21 = vld [vmem:[#allocation8 + $0x118] sm:$0xf0] }
 0x110   :  { %1644 = vmatpush.bf16.msra.mxu1 %v2357_v26  ;;  %1672 = vmatpush.bf16.msra.mxu3 %v2485_v5  ;;  %v2718_v26 = vld [vmem:[#allocation8 + $0x1e4] sm:$0xf] }
 0x111   :  { %1659 = vmatpush.bf16.msra.mxu2 %v2413_v58  ;;  %v2696_v58 = vld [vmem:[#allocation8 + $0x134] sm:$0xf] }
 0x114   :  { %1673 = vmatpush.bf16.msra.mxu3 %v2477_v61  ;;  %v2433_v61 = vor.u32 %v2696_v58, %v2430_v59 }
 0x118   :  { %1674 = vmatpush.bf16.msra.mxu3 %v2469_v11  ;;  %v2710_v11 = vld [vmem:[#allocation8 + $0x1a4] sm:$0xf] }
 0x142   :  { %v909_v31 = vpop.f32.mrf.mxu0 }
 0x143   :  { %v910_v63 = vadd.f32 %v2737_v45, %v909_v31  ;;  %v2348_v31 = vld [vmem:[#allocation8 + $0x90] sm:$0xf] }
 0x144   :  { %v2349_v39 = vor.u32 %v2677_v32, %v2348_v31  ;;  %v2310_v31 = vld [vmem:[#allocation8 + $0x48] sm:$0xf0]  ;;  %v2682_v32 = vld [vmem:[#allocation8 + $0xc4] sm:$0xf] }
 0x145   :  { %v2377_v5 = vor.u32 %v2682_v32, %v2374_v4 }
 0x146   :  { %1645 = vmatpush.bf16.msra.mxu1 %v2349_v39 }
 0x14a   :  { %v923_v37 = vpop.f32.mrf.mxu1  ;;  %v911_v6 = vpop.f32.mrf.mxu0  ;;  %1646 = vmatpush.bf16.msra.mxu1 %v2341_v49 }
 0x14b   :  { %v924_v18 = vadd.f32 %v923_v37, %v910_v63  ;;  %v912_v19 = vadd.f32 %v2737_v45, %v911_v6  ;;  %v2285_v37 = vor.u32 %v2661_v28, %v2284_v27  ;;  %v2326_v63 = vld [vmem:[#allocation8 + $0x68] sm:$0xf0]  ;;  %v2691_v6 = vld [vmem:[#allocation8 + $0x104] sm:$0xf0] }
 0x14c   :  { %v2329_v1 = vor.u32 %v2670_v62, %v2326_v63  ;;  %v2405_v8 = vor.u32 %v2691_v6, %v2404_v3  ;;  %v2518_v28 = vld [vmem:[#allocation8 + $0x1e8] sm:$0xf0]  ;;  %v2494_v62 = vld [vmem:[#allocation8 + $0x1b8] sm:$0xf0] }
 0x14d   :  { %1631 = vmatpush.bf16.msra.mxu0 %v2285_v37  ;;  %v2497_v63 = vor.u32 %v2712_v60, %v2494_v62  ;;  %v2350_v6 = vld [vmem:[#allocation8 + $0x98] sm:$0xf0] }
 0x14e   :  { %1660 = vmatpush.bf16.msra.mxu2 %v2405_v8  ;;  %v2422_v8 = vld [vmem:[#allocation8 + $0x128] sm:$0xf0] }
 0x151   :  { %1632 = vmatpush.bf16.msra.mxu0 %v2277_v48  ;;  %v2714_v48 = vld [vmem:[#allocation8 + $0x1c4] sm:$0xf] }
 0x152   :  { %v925_v13 = vpop.f32.mrf.mxu1  ;;  %v2505_v51 = vor.u32 %v2714_v48, %v2502_v50 }
 0x153   :  { %v926_v29 = vadd.f32 %v925_v13, %v912_v19  ;;  %v2462_v13 = vld [vmem:[#allocation8 + $0x178] sm:$0xf0] }
 0x154   :  { %v2465_v15 = vor.u32 %v2704_v12, %v2462_v13  ;;  %v2318_v19 = vld [vmem:[#allocation8 + $0x58] sm:$0xf0]  ;;  %v2486_v12 = vld [vmem:[#allocation8 + $0x1a8] sm:$0xf0]  ;;  %v2658_v13 = vld [vmem:[#allocation8 + $0x4] sm:$0xf] }
 0x155   :  { %v2321_v22 = vor.u32 %v2668_v17, %v2318_v19  ;;  %v2342_v17 = vld [vmem:[#allocation8 + $0x88] sm:$0xf0] }
 0x168   :  { %v937_v46 = vpop.f32.mrf.mxu2 }
 0x169   :  { %v938_v30 = vadd.f32 %v937_v46, %v924_v18  ;;  %v2529_v18 = vor.u32 %v2720_v14, %v2526_v16  ;;  %v2489_v14 = vor.u32 %v2710_v11, %v2486_v12  ;;  %v2674_v16 = vld [vmem:[#allocation8 + $0x84] sm:$0xf] }
 0x16a   :  { %v2345_v19 = vor.u32 %v2674_v16, %v2342_v17 }
 0x170   :  { %v951_v7 = vpop.f32.mrf.mxu3  ;;  %v939_v25 = vpop.f32.mrf.mxu2 }
 0x171   :  { %v952_v34 = vadd.f32 %v951_v7, %v938_v30  ;;  %v940_v35 = vadd.f32 %v939_v25, %v926_v29  ;;  %v2393_v7 = vor.u32 %v2686_v0, %v2390_v2  ;;  %v2454_v25 = vld [vmem:[#allocation8 + $0x168] sm:$0xf0]  ;;  %v2521_v29 = vor.u32 %v2718_v26, %v2518_v28  ;;  %v2666_v30 = vld [vmem:[#allocation8 + $0x44] sm:$0xf]  ;;  %v2660_v0 = vld [vmem:[#allocation8 + $0x14] sm:$0xf] }
 0x172   :  { %v2457_v27 = vor.u32 %v2702_v24, %v2454_v25  ;;  %v2676_v2 = vld [vmem:[#allocation8 + $0x94] sm:$0xf]  ;;  %v2417_v24 = vor.u32 %v2692_v20, %v2414_v21  ;;  %v2690_v26 = vld [vmem:[#allocation8 + $0x104] sm:$0xf] }
 0x173   :  { %v962_v45 = vadd.f32 %v960_v33, %v952_v34  ;;  %v2313_v33 = vor.u32 %v2666_v30, %v2310_v31  ;;  %v2700_v34 = vld [vmem:[#allocation8 + $0x154] sm:$0xf]  ;;  %v2353_v9 = vor.u32 %v2676_v2, %v2350_v6  ;;  %v2706_v28 = vld [vmem:[#allocation8 + $0x184] sm:$0xf] }
 0x178   :  { %v953_v38 = vpop.f32.mrf.mxu3 }
 0x179   :  { %v954_v40 = vadd.f32 %v953_v38, %v940_v35  ;;  %v2446_v35 = vld [vmem:[#allocation8 + $0x158] sm:$0xf0] }
 0x17a   :  { %v2449_v37 = vor.u32 %v2700_v34, %v2446_v35  ;;  %v2510_v38 = vld [vmem:[#allocation8 + $0x1d8] sm:$0xf0] }
 0x17b   :  { %v963_v46 = vadd.f32 %v961_v36, %v954_v40  ;;  %v2716_v36 = vld [vmem:[#allocation8 + $0x1d4] sm:$0xf] }
 0x17c   :  { %v2513_v39 = vor.u32 %v2716_v36, %v2510_v38  ;;  %v2664_v40 = vld [vmem:[#allocation8 + $0x34] sm:$0xf] }
 0x17d   :  { %v964_v47 = vpack.c.bf16 %v963_v46, %v962_v45  ;;  %v2305_v43 = vor.u32 %v2664_v40, %v2302_v41  ;;  %v2369_v45 = vor.u32 %v2680_v42, %v2366_v44  ;;  %v2698_v46 = vld [vmem:[#allocation8 + $0x144] sm:$0xf] }
 0x17f   :  { %1175 = vmatmul.bf16.vlgmr.msrb.gmra.mxu0 %v964_v47  ;;  %1189 = vmatmul.bf16.vlgmr.msrb.gmra.mxu1 %v964_v47 }
 0x180   :  { %1203 = vmatmul.bf16.vlgmr.msrb.gmra.mxu2 %v964_v47  ;;  %1217 = vmatmul.bf16.vlgmr.msrb.gmra.mxu3 %v964_v47  ;;  %v2438_v47 = vld [vmem:[#allocation8 + $0x148] sm:$0xf0] }
 0x181   :  { %1681 = vmatpush.bf16.msrb.mxu0 %v2337_v53  ;;  %1695 = vmatpush.bf16.msrb.mxu1 %v2401_v57  ;;  %v2441_v49 = vor.u32 %v2698_v46, %v2438_v47  ;;  %v2294_v53 = vld [vmem:[#allocation8 + $0x28] sm:$0xf0]  ;;  %v2361_v57 = vor.u32 %v2678_v54, %v2358_v56 }
 0x182   :  { %1709 = vmatpush.bf16.msrb.mxu2 %v2465_v15  ;;  %1723 = vmatpush.bf16.msrb.mxu3 %v2529_v18  ;;  %v2297_v55 = vor.u32 %v2662_v52, %v2294_v53  ;;  %v2278_v15 = vld [vmem:[#allocation8 + $0x8] sm:$0xf0] }
 0x183   :  { %v2281_v18 = vor.u32 %v2658_v13, %v2278_v15 }
 0x185   :  { %1682 = vmatpush.bf16.msrb.mxu0 %v2329_v1  ;;  %1696 = vmatpush.bf16.msrb.mxu1 %v2393_v7  ;;  %v2286_v1 = vld [vmem:[#allocation8 + $0x18] sm:$0xf0]  ;;  %v2694_v7 = vld [vmem:[#allocation8 + $0x124] sm:$0xf] }
 0x186   :  { %1710 = vmatpush.bf16.msrb.mxu2 %v2457_v27  ;;  %1724 = vmatpush.bf16.msrb.mxu3 %v2521_v29  ;;  %v2289_v3 = vor.u32 %v2660_v0, %v2286_v1  ;;  %v2425_v10 = vor.u32 %v2694_v7, %v2422_v8  ;;  %v2406_v27 = vld [vmem:[#allocation8 + $0x108] sm:$0xf0]  ;;  %v997_v29 = vld [vmem:[%s3020_s8] sm:$0xf] }
 0x187   :  { %v2409_v32 = vor.u32 %v2690_v26, %v2406_v27  ;;  %v1000_v34 = vperm.slane %v997_v29, 1  ;;  %v1002_v44 = vperm.slane %v997_v29, 3  ;;  %v1299_v0 = vld [vmem:[%s3022_s10] sm:$0x3]  ;;  %s2876_s10 = smov [#allocation10]  }
 0x188   :  { %v1301_v1 = vperm.slane %v1299_v0, 0  ;;  %v1302_v16 = vperm.slane %v1299_v0, 1  ;;  %s1745_s17 = sshll.u32 %s2876_s10, 4  ;;  %s1746_s17 = int_to_ptr.vmem [resolvable:$true] %s1745_s17 }
 0x189   :  { %1683 = vmatpush.bf16.msrb.mxu0 %v2321_v22  ;;  %1697 = vmatpush.bf16.msrb.mxu1 %v2385_v23  ;;  %v2708_v22 = vld [vmem:[#allocation8 + $0x194] sm:$0xf]  ;;  %v2478_v23 = vld [vmem:[#allocation8 + $0x198] sm:$0xf0] }
 0x18a   :  { %1711 = vmatpush.bf16.msrb.mxu2 %v2449_v37  ;;  %1725 = vmatpush.bf16.msrb.mxu3 %v2513_v39  ;;  %v2481_v25 = vor.u32 %v2708_v22, %v2478_v23 }
 0x18d   :  { %1684 = vmatpush.bf16.msrb.mxu0 %v2313_v33  ;;  %1698 = vmatpush.bf16.msrb.mxu1 %v2377_v5  ;;  %v2470_v33 = vld [vmem:[#allocation8 + $0x188] sm:$0xf0]  ;;  %v999_v5 = vperm.slane %v997_v29, 0 }
 0x18e   :  { %1712 = vmatpush.bf16.msrb.mxu2 %v2441_v49  ;;  %1726 = vmatpush.bf16.msrb.mxu3 %v2505_v51  ;;  %v2473_v4 = vor.u32 %v2706_v28, %v2470_v33 }
 0x191   :  { %1685 = vmatpush.bf16.msrb.mxu0 %v2305_v43  ;;  %1699 = vmatpush.bf16.msrb.mxu1 %v2369_v45  ;;  %v1001_v43 = vperm.slane %v997_v29, 2 }
 0x192   :  { %1713 = vmatpush.bf16.msrb.mxu2 %v2433_v61  ;;  %1727 = vmatpush.bf16.msrb.mxu3 %v2497_v63 }
 0x195   :  { %1686 = vmatpush.bf16.msrb.mxu0 %v2297_v55  ;;  %1700 = vmatpush.bf16.msrb.mxu1 %v2361_v57 }
 0x196   :  { %1714 = vmatpush.bf16.msrb.mxu2 %v2425_v10  ;;  %1728 = vmatpush.bf16.msrb.mxu3 %v2489_v14 }
 0x199   :  { %1687 = vmatpush.bf16.msrb.mxu0 %v2289_v3  ;;  %1701 = vmatpush.bf16.msrb.mxu1 %v2353_v9 }
 0x19a   :  { %1715 = vmatpush.bf16.msrb.mxu2 %v2417_v24  ;;  %1729 = vmatpush.bf16.msrb.mxu3 %v2481_v25 }
 0x19d   :  { %1688 = vmatpush.bf16.msrb.mxu0 %v2281_v18  ;;  %1702 = vmatpush.bf16.msrb.mxu1 %v2345_v19 }
 0x19e   :  { %1716 = vmatpush.bf16.msrb.mxu2 %v2409_v32  ;;  %1730 = vmatpush.bf16.msrb.mxu3 %v2473_v4 }
 0x1fc   :  { %v1176_v30 = vpop.f32.mrf.mxu0  ;;  %v1190_v31 = vpop.f32.mrf.mxu1 }
 0x1fd   :  { %v1177_v35 = vadd.f32 %v1176_v30, %v999_v5  ;;  %v1191_v36 = vadd.f32 %v1190_v31, %v1000_v34 }
 0x1ff   :  { %v1223_v45 = vmax.f32 %v1177_v35, 0.0  ;;  %v1224_v46 = vmax.f32 %v1191_v36, 0.0 }
 0x203   :  { %v1204_v37 = vpop.f32.mrf.mxu2  ;;  %v1218_v38 = vpop.f32.mrf.mxu3 }
 0x204   :  { %v1178_v39 = vpop.f32.mrf.mxu0  ;;  %v1192_v40 = vpop.f32.mrf.mxu1  ;;  %v1205_v51 = vadd.f32 %v1204_v37, %v1001_v43  ;;  %v1219_v52 = vadd.f32 %v1218_v38, %v1002_v44 }
 0x205   :  { %v1179_v41 = vadd.f32 %v1178_v39, %v999_v5  ;;  %v1193_v42 = vadd.f32 %v1192_v40, %v1000_v34 }
 0x206   :  { %v1225_v57 = vmax.f32 %v1205_v51, 0.0  ;;  %v1226_v58 = vmax.f32 %v1219_v52, 0.0 }
 0x207   :  { %v1227_v47 = vmax.f32 %v1179_v41, 0.0  ;;  %v1228_v48 = vmax.f32 %v1193_v42, 0.0 }
 0x209   :  { %v1231_v49 = vpack.c.bf16 %v1227_v47, %v1223_v45  ;;  %v1232_v50 = vpack.c.bf16 %v1228_v48, %v1224_v46 }
 0x20b   :  { %v1206_v53 = vpop.f32.mrf.mxu2  ;;  %v1220_v54 = vpop.f32.mrf.mxu3  ;;  %1633 = vmatmul.bf16.vlgmr.msra.gmra.mxu0 %v1231_v49  ;;  %1647 = vmatmul.bf16.vlgmr.msra.gmra.mxu1 %v1232_v50 }
 0x20c   :  { %v1207_v55 = vadd.f32 %v1206_v53, %v1001_v43  ;;  %v1221_v56 = vadd.f32 %v1220_v54, %v1002_v44 }
 0x20e   :  { %v1229_v59 = vmax.f32 %v1207_v55, 0.0  ;;  %v1230_v60 = vmax.f32 %v1221_v56, 0.0 }
 0x210   :  { %v1233_v61 = vpack.c.bf16 %v1229_v59, %v1225_v57  ;;  %v1234_v62 = vpack.c.bf16 %v1230_v60, %v1226_v58 }
 0x212   :  { %1661 = vmatmul.bf16.vlgmr.msra.gmra.mxu2 %v1233_v61  ;;  %1675 = vmatmul.bf16.vlgmr.msra.gmra.mxu3 %v1234_v62 }
 0x21b   :  { %1689 = vmatmul.bf16.vlgmr.msrb.gmra.mxu0 %v1231_v49  ;;  %1703 = vmatmul.bf16.vlgmr.msrb.gmra.mxu1 %v1232_v50 }
 0x222   :  { %1717 = vmatmul.bf16.vlgmr.msrb.gmra.mxu2 %v1233_v61  ;;  %1731 = vmatmul.bf16.vlgmr.msrb.gmra.mxu3 %v1234_v62 }
 0x288   :  { %v1634_v63 = vpop.f32.mrf.mxu0  ;;  %v1648_v2 = vpop.f32.mrf.mxu1 }
 0x289   :  { %v1635_v3 = vadd.f32 %v1634_v63, %v1301_v1 }
 0x28b   :  { %v1649_v7 = vadd.f32 %v1648_v2, %v1635_v3 }
 0x290   :  { %v1636_v6 = vpop.f32.mrf.mxu0  ;;  %v1650_v11 = vpop.f32.mrf.mxu1 }
 0x291   :  { %v1637_v12 = vadd.f32 %v1636_v6, %v1301_v1 }
 0x293   :  { %v1651_v15 = vadd.f32 %v1650_v11, %v1637_v12 }
 0x295   :  { %v1662_v8 = vpop.f32.mrf.mxu2  ;;  %v1676_v9 = vpop.f32.mrf.mxu3 }
 0x296   :  { %v1663_v10 = vadd.f32 %v1662_v8, %v1649_v7 }
 0x298   :  { %v1677_v13 = vadd.f32 %v1676_v9, %v1663_v10  ;;  %v1690_v14 = vpop.f32.mrf.mxu0  ;;  %v1704_v22 = vpop.f32.mrf.mxu1 }
 0x299   :  { %v1691_v20 = vadd.f32 %v1690_v14, %v1302_v16 }
 0x29a   :  { %1737 = vst [vmem:[#allocation10] sm:$0xff] %v1677_v13 }
 0x29b   :  { %v1705_v23 = vadd.f32 %v1704_v22, %v1691_v20 }
 0x29d   :  { %v1664_v17 = vpop.f32.mrf.mxu2  ;;  %v1678_v18 = vpop.f32.mrf.mxu3 }
 0x29e   :  { %v1665_v19 = vadd.f32 %v1664_v17, %v1651_v15 }
 0x2a0   :  { %v1679_v21 = vadd.f32 %v1678_v18, %v1665_v19  ;;  %v1692_v24 = vpop.f32.mrf.mxu0  ;;  %v1706_v30 = vpop.f32.mrf.mxu1 }
 0x2a1   :  { %v1693_v28 = vadd.f32 %v1692_v24, %v1302_v16 }
 0x2a2   :  { %1739 = vst [vmem:[#allocation10 + $0x10] sm:$0xff] %v1679_v21 }
 0x2a3   :  { %v1707_v31 = vadd.f32 %v1706_v30, %v1693_v28 }
 0x2a5   :  { %v1718_v25 = vpop.f32.mrf.mxu2  ;;  %v1732_v26 = vpop.f32.mrf.mxu3 }
 0x2a6   :  { %v1719_v27 = vadd.f32 %v1718_v25, %v1705_v23 }
 0x2a8   :  { %v1733_v29 = vadd.f32 %v1732_v26, %v1719_v27 }
 0x2aa   :  { %1738 = vst [vmem:[#allocation10 + $0x8] sm:$0xff] %v1733_v29 }
 0x2ad   :  { %v1720_v32 = vpop.f32.mrf.mxu2  ;;  %v1734_v4 = vpop.f32.mrf.mxu3 }
 0x2ae   :  { %v1721_v33 = vadd.f32 %v1720_v32, %v1707_v31 }
 0x2b0   :  { %v1735_v5 = vadd.f32 %v1734_v4, %v1721_v33 }
 0x2b2   :  { %1740 = vst [vmem:[#allocation10 + $0x18] sm:$0xff] %v1735_v5 }
 0x2b3   :  { %1753 = dma.vmem_to_hbm [thread:$0]  %s1746_s17, 512, %s1748_s20, [#allocation4], %s2870_s29, %s2870_s29, %s2871_s30  }
 0x2b4   :  { %2864 = dma.done.wait [#allocation4], 512  }
 0x2b5   :  { %2865 = vsyncadd [#allocation4], 4294966784 }
 0x2b6   :  { %1758 = vsyncpa [#allocation3], 1 }
 0x2b7   :  { %1759 = vsyncpa [#allocation6], 1 }
 0x2b8   :  { %1760 = vsyncpa [#allocation9], 1 }
 0x2b9   :  { %1761 = vsyncpa [#allocation4], 1 }

</bundles_post_ra>
